<compile_context>
chip_gen: v5e
topology: v5e:2x2
jax: 0.10.0
libtpu: 0.0.40
codegen_flags: <defaults>
</compile_context>

<pallas_src>
import jax
import jax.numpy as jnp
from jax.experimental import pallas as pl
from jax.experimental.pallas import tpu as pltpu

# ---------------------------------------------------------------------------
# Model dimensions (module defaults)
# ---------------------------------------------------------------------------
RADIO_F_DIM = 1580
DEEP_F_DIM = 256
OUTPUT_DIM = 128
HEAD_HIDDEN_1 = 128
LEAKY_SLOPE = 0.01  # nn.LeakyReLU default


def _round_up(x, m):
    return (x + m - 1) // m * m


RADIO_F_PAD = _round_up(RADIO_F_DIM, 128)  # 1664 = 13 * 128


def _leaky_relu(x):
    return jnp.where(x > 0, x, LEAKY_SLOPE * x)


# ---------------------------------------------------------------------------
# Pallas kernel: one batch tile of the whole forward pass (6 MXU matmuls + VPU head)
# ---------------------------------------------------------------------------
def _mcvae_fwd_kernel(
    patho_ref, pheno_ref,
    wp1_ref, bp1_ref, wp2_ref, bp2_ref,
    wq1_ref, bq1_ref, wq2_ref, bq2_ref,
    wfp_ref, wfq_ref, bh1_ref, wh2_ref, bh2_ref,
    out_ref,
):
    f32 = jnp.float32
    bf16 = jnp.bfloat16

    def dense(x_bf16, w_ref, b_ref):
        # bf16 x bf16 MXU matmul with f32 accumulation; bias add in f32.
        return jnp.dot(x_bf16, w_ref[...], preferred_element_type=f32) + b_ref[...]

    # --- encoder_patho layers 1-2: 1580(pad 1664) -> 512 -> 256 ---
    hp = _leaky_relu(dense(patho_ref[...], wp1_ref, bp1_ref))
    hp = _leaky_relu(dense(hp.astype(bf16), wp2_ref, bp2_ref))

    # --- encoder_pheno layers 1-2: 256 -> 512 -> 256 ---
    hq = _leaky_relu(dense(pheno_ref[...], wq1_ref, bq1_ref))
    hq = _leaky_relu(dense(hq.astype(bf16), wq2_ref, bq2_ref))

    # --- fused (encoder 3rd Linear ∘ head 1st Linear on the concat halves) ---
    # wfp = wp3 @ wh1[:128], wfq = wq3 @ wh1[128:], bh1_eff = bh1 + bp3@wh1a + bq3@wh1b
    h = (
        jnp.dot(hp.astype(bf16), wfp_ref[...], preferred_element_type=f32)
        + jnp.dot(hq.astype(bf16), wfq_ref[...], preferred_element_type=f32)
        + bh1_ref[...]
    )
    h = jnp.maximum(h, 0.0)  # ReLU (actf='ReLU'); Dropout(p=0.4) is identity at inference.

    # Final Linear(128, 1): an N=1 MXU matmul would waste the systolic array;
    # do it on the VPU/XLU as a multiply + lane reduction instead.
    y = jnp.sum(h * wh2_ref[...], axis=-1, keepdims=True) + bh2_ref[0, 0]
    out_ref[...] = y.astype(out_ref.dtype)


# ---------------------------------------------------------------------------
# Wrapper: padding, bf16 casts, weight fusion, grid / BlockSpecs
# ---------------------------------------------------------------------------
def _default_batch_tile():
    try:
        kind = jax.devices()[0].device_kind.lower()
    except Exception:
        return 256
    # Bigger tiles amortize per-grid-step overhead; 512 on the 256x256-MXU parts.
    if "v6" in kind or "v7" in kind:
        return 512
    return 256


def mcvae_brca_mut_forward(patho_feats, pheno_feats, params, *, batch_tile=None):
    """Returns y of shape (B,) — matches the torch forward's y.squeeze(1)."""
    B = patho_feats.shape[0]
    if batch_tile is None:
        batch_tile = _default_batch_tile()
    tb = min(batch_tile, _round_up(max(B, 8), 8))
    b_pad = _round_up(B, tb)
    grid = (b_pad // tb,)

    f32, bf16 = jnp.float32, jnp.bfloat16

    # Zero-pad inputs: batch -> multiple of tb, patho features 1580 -> 1664 (13*128).
    patho = jnp.zeros((b_pad, RADIO_F_PAD), bf16)
    patho = patho.at[:B, :RADIO_F_DIM].set(patho_feats.astype(bf16))
    pheno = jnp.zeros((b_pad, DEEP_F_DIM), bf16)
    pheno = pheno.at[:B, :].set(pheno_feats.astype(bf16))

    # Weights in bf16 (f32 accumulation inside the kernel). wp1 rows zero-padded to 1664.
    wp1 = jnp.zeros((RADIO_F_PAD, 4 * OUTPUT_DIM), bf16)
    wp1 = wp1.at[:RADIO_F_DIM, :].set(params["wp1"].astype(bf16))
    wp2 = params["wp2"].astype(bf16)
    wq1 = params["wq1"].astype(bf16)
    wq2 = params["wq2"].astype(bf16)

    # Algebraic fusion (done once in f32, then cast): since there is no nonlinearity between
    # the encoders' last Linear and the head's first Linear, precompose them.
    wfp = (params["wp3"].astype(f32) @ params["wh1a"].astype(f32)).astype(bf16)  # (256,128)
    wfq = (params["wq3"].astype(f32) @ params["wh1b"].astype(f32)).astype(bf16)  # (256,128)
    bh1_eff = (
        params["bh1"].astype(f32)
        + params["bp3"].astype(f32) @ params["wh1a"].astype(f32)
        + params["bq3"].astype(f32) @ params["wh1b"].astype(f32)
    )  # (1,128)

    bp1 = params["bp1"].astype(f32)
    bp2 = params["bp2"].astype(f32)
    bq1 = params["bq1"].astype(f32)
    bq2 = params["bq2"].astype(f32)
    wh2_row = params["wh2"].reshape(1, HEAD_HIDDEN_1).astype(f32)  # (1,128) row for VPU reduce
    bh2 = params["bh2"].reshape(1, 1).astype(f32)                  # scalar via SMEM

    operands = (
        patho, pheno,
        wp1, bp1, wp2, bp2,
        wq1, bq1, wq2, bq2,
        wfp, wfq, bh1_eff, wh2_row, bh2,
    )

    def batch_spec(n_cols):
        return pl.BlockSpec((tb, n_cols), lambda i: (i, 0))

    def resident_spec(arr):
        # Constant index_map: the block index never changes across the grid, so Pallas keeps
        # the tile resident in VMEM (no re-DMA between consecutive steps).
        return pl.BlockSpec(arr.shape, lambda i: (0, 0))

    in_specs = (
        [batch_spec(RADIO_F_PAD), batch_spec(DEEP_F_DIM)]
        + [resident_spec(a) for a in operands[2:-1]]
        + [pl.BlockSpec(memory_space=pltpu.MemorySpace.SMEM)]  # bh2 (1,1) scalar
    )

    out = pl.pallas_call(
        _mcvae_fwd_kernel,
        out_shape=jax.ShapeDtypeStruct((b_pad, 1), f32),
        grid=grid,
        in_specs=in_specs,
        out_specs=pl.BlockSpec((tb, 1), lambda i: (i, 0)),
        compiler_params=pltpu.CompilerParams(
            dimension_semantics=("parallel",),  # megacore sharding on v7x; harmless elsewhere
            vmem_limit_bytes=32 << 20,
        ),
    )(*operands)
    return out[:B, 0]


# ---------------------------------------------------------------------------
# Deterministic parameter initialization (xavier-normal weights, zero biases)
# ---------------------------------------------------------------------------
def _xavier_normal(key, fan_in, fan_out):
    std = jnp.sqrt(2.0 / (fan_in + fan_out))
    return jax.random.normal(key, (fan_in, fan_out), jnp.float32) * std


def init_params(key):
    ks = jax.random.split(key, 8)
    od = OUTPUT_DIM
    params = {
        # encoder_patho: 1580 -> 512 -> 256 -> 128
        "wp1": _xavier_normal(ks[0], RADIO_F_DIM, 4 * od),
        "bp1": jnp.zeros((1, 4 * od), jnp.float32),
        "wp2": _xavier_normal(ks[1], 4 * od, 2 * od),
        "bp2": jnp.zeros((1, 2 * od), jnp.float32),
        "wp3": _xavier_normal(ks[2], 2 * od, od),
        "bp3": jnp.zeros((1, od), jnp.float32),
        # encoder_pheno: 256 -> 512 -> 256 -> 128
        "wq1": _xavier_normal(ks[3], DEEP_F_DIM, 4 * od),
        "bq1": jnp.zeros((1, 4 * od), jnp.float32),
        "wq2": _xavier_normal(ks[4], 4 * od, 2 * od),
        "bq2": jnp.zeros((1, 2 * od), jnp.float32),
        "wq3": _xavier_normal(ks[5], 2 * od, od),
        "bq3": jnp.zeros((1, od), jnp.float32),
        # head: Linear(2*od, HEAD_HIDDEN_1) split into the two concat halves, then Linear(128,1)
        "bh1": jnp.zeros((1, HEAD_HIDDEN_1), jnp.float32),
        "wh2": _xavier_normal(ks[7], HEAD_HIDDEN_1, 1),
        "bh2": jnp.zeros((1, 1), jnp.float32),
    }
    wh1 = _xavier_normal(ks[6], 2 * od, HEAD_HIDDEN_1)
    params["wh1a"] = wh1[:od]
    params["wh1b"] = wh1[od:]
    return params


# ---------------------------------------------------------------------------
# Pure-JAX reference following the original (unfused) torch layer structure,
# with the same bf16-weight casts, for correctness comparison.
# ---------------------------------------------------------------------------
def reference_forward(patho, pheno, p):
    f32, bf16 = jnp.float32, jnp.bfloat16

    def dense(x, w, b):
        return jnp.dot(x.astype(bf16), w.astype(bf16), preferred_element_type=f32) + b

    hp = _leaky_relu(dense(patho, p["wp1"], p["bp1"]))
    hp = _leaky_relu(dense(hp, p["wp2"], p["bp2"]))
    mu_p = dense(hp, p["wp3"], p["bp3"])

    hq = _leaky_relu(dense(pheno, p["wq1"], p["bq1"]))
    hq = _leaky_relu(dense(hq, p["wq2"], p["bq2"]))
    mu_q = dense(hq, p["wq3"], p["bq3"])

    h = (
        jnp.dot(mu_p.astype(bf16), p["wh1a"].astype(bf16), preferred_element_type=f32)
        + jnp.dot(mu_q.astype(bf16), p["wh1b"].astype(bf16), preferred_element_type=f32)
        + p["bh1"]
    )
    h = jnp.maximum(h, 0.0)
    y = h @ p["wh2"] + p["bh2"]
    return y[:, 0]


if __name__ == "__main__":
    key = jax.random.PRNGKey(0)
    k_in1, k_in2, k_par = jax.random.split(key, 3)

    # Small demo shapes consistent with the module: batch=2, patho=1580 feats, pheno=256 feats.
    B = 2
    patho_feats = jax.random.normal(k_in1, (B, RADIO_F_DIM), jnp.float32)
    pheno_feats = jax.random.normal(k_in2, (B, DEEP_F_DIM), jnp.float32)
    params = init_params(k_par)

    y = jax.block_until_ready(mcvae_brca_mut_forward(patho_feats, pheno_feats, params))
    y_ref = reference_forward(patho_feats, pheno_feats, params)
    assert y.shape == (B,)
    assert jnp.allclose(y, y_ref, atol=2e-2, rtol=2e-2), (y, y_ref)

    # Multi-tile sanity check: exercises a 3-step batch grid with resident weights.
    k3, k4 = jax.random.split(k_in1)
    B2 = 300
    patho2 = jax.random.normal(k3, (B2, RADIO_F_DIM), jnp.float32)
    pheno2 = jax.random.normal(k4, (B2, DEEP_F_DIM), jnp.float32)
    y2 = jax.block_until_ready(
        mcvae_brca_mut_forward(patho2, pheno2, params, batch_tile=128)
    )
    y2_ref = reference_forward(patho2, pheno2, params)
    assert y2.shape == (B2,)
    assert jnp.allclose(y2, y2_ref, atol=2e-2, rtol=2e-2)

    print("KERNEL_OK")
</pallas_src>

<mosaic_0001>
module attributes {stable_mosaic.version = 11 : i64} {
  func.func @_mcvae_fwd_kernel(%arg0: i32, %arg1: memref<8x1664xbf16, #tpu.memory_space<vmem>>, %arg2: memref<8x256xbf16, #tpu.memory_space<vmem>>, %arg3: memref<1664x512xbf16, #tpu.memory_space<vmem>>, %arg4: memref<1x512xf32, #tpu.memory_space<vmem>>, %arg5: memref<512x256xbf16, #tpu.memory_space<vmem>>, %arg6: memref<1x256xf32, #tpu.memory_space<vmem>>, %arg7: memref<256x512xbf16, #tpu.memory_space<vmem>>, %arg8: memref<1x512xf32, #tpu.memory_space<vmem>>, %arg9: memref<512x256xbf16, #tpu.memory_space<vmem>>, %arg10: memref<1x256xf32, #tpu.memory_space<vmem>>, %arg11: memref<256x128xbf16, #tpu.memory_space<vmem>>, %arg12: memref<256x128xbf16, #tpu.memory_space<vmem>>, %arg13: memref<1x128xf32, #tpu.memory_space<vmem>>, %arg14: memref<1x128xf32, #tpu.memory_space<vmem>>, %arg15: memref<1x1xf32, #tpu.memory_space<smem>>, %arg16: memref<8x1xf32, #tpu.memory_space<vmem>>) attributes {dimension_semantics = [#tpu.dimension_semantics<parallel>], iteration_bounds = array<i64: 1>, scalar_prefetch = 0 : i64, scratch_operands = 0 : i64, tpu.core_type = #tpu.core_type<tc>, window_params = [{transform_indices = @transform_0, window_bounds = array<i64: 8, 1664>}, {transform_indices = @transform_1, window_bounds = array<i64: 8, 256>}, {pipeline_mode = #tpu.pipeline_mode<synchronous>, transform_indices = @transform_2, window_bounds = array<i64: 1664, 512>}, {pipeline_mode = #tpu.pipeline_mode<synchronous>, transform_indices = @transform_3, window_bounds = array<i64: 1, 512>}, {pipeline_mode = #tpu.pipeline_mode<synchronous>, transform_indices = @transform_4, window_bounds = array<i64: 512, 256>}, {pipeline_mode = #tpu.pipeline_mode<synchronous>, transform_indices = @transform_5, window_bounds = array<i64: 1, 256>}, {pipeline_mode = #tpu.pipeline_mode<synchronous>, transform_indices = @transform_6, window_bounds = array<i64: 256, 512>}, {pipeline_mode = #tpu.pipeline_mode<synchronous>, transform_indices = @transform_7, window_bounds = array<i64: 1, 512>}, {pipeline_mode = #tpu.pipeline_mode<synchronous>, transform_indices = @transform_8, window_bounds = array<i64: 512, 256>}, {pipeline_mode = #tpu.pipeline_mode<synchronous>, transform_indices = @transform_9, window_bounds = array<i64: 1, 256>}, {pipeline_mode = #tpu.pipeline_mode<synchronous>, transform_indices = @transform_10, window_bounds = array<i64: 256, 128>}, {pipeline_mode = #tpu.pipeline_mode<synchronous>, transform_indices = @transform_11, window_bounds = array<i64: 256, 128>}, {pipeline_mode = #tpu.pipeline_mode<synchronous>, transform_indices = @transform_12, window_bounds = array<i64: 1, 128>}, {pipeline_mode = #tpu.pipeline_mode<synchronous>, transform_indices = @transform_13, window_bounds = array<i64: 1, 128>}, {transform_indices = @transform_14, window_bounds = array<i64: 1, 1>}, {transform_indices = @transform_15, window_bounds = array<i64: 8, 1>}]} {
    %c0 = arith.constant 0 : index
    %c0_0 = arith.constant 0 : index
    %0 = vector.load %arg1[%c0, %c0_0] : memref<8x1664xbf16, #tpu.memory_space<vmem>>, vector<8x1664xbf16>
    %c0_1 = arith.constant 0 : index
    %c0_2 = arith.constant 0 : index
    %1 = vector.load %arg3[%c0_1, %c0_2] : memref<1664x512xbf16, #tpu.memory_space<vmem>>, vector<1664x512xbf16>
    %cst = arith.constant dense<0.000000e+00> : vector<8x512xf32>
    %2 = tpu.matmul %0, %1, %cst {dimension_numbers = #tpu.dot_dimension_numbers<[1], [0], [0], [1], [0, 0, 1, 1], [], []>} : vector<8x1664xbf16>, vector<1664x512xbf16>, vector<8x512xf32> -> vector<8x512xf32>
    %c0_3 = arith.constant 0 : index
    %c0_4 = arith.constant 0 : index
    %3 = vector.load %arg4[%c0_3, %c0_4] : memref<1x512xf32, #tpu.memory_space<vmem>>, vector<1x512xf32>
    %4 = vector.broadcast %3 : vector<1x512xf32> to vector<8x512xf32>
    %5 = arith.addf %2, %4 : vector<8x512xf32>
    %cst_5 = arith.constant 0.000000e+00 : f32
    %6 = vector.broadcast %cst_5 : f32 to vector<8x512xf32>
    %7 = arith.cmpf ogt, %5, %6 : vector<8x512xf32>
    %cst_6 = arith.constant 0.00999999977 : f32
    %8 = vector.broadcast %cst_6 : f32 to vector<8x512xf32>
    %9 = arith.mulf %8, %5 : vector<8x512xf32>
    %10 = arith.select %7, %5, %9 : vector<8x512xi1>, vector<8x512xf32>
    %11 = arith.truncf %10 : vector<8x512xf32> to vector<8x512xbf16>
    %c0_7 = arith.constant 0 : index
    %c0_8 = arith.constant 0 : index
    %12 = vector.load %arg5[%c0_7, %c0_8] : memref<512x256xbf16, #tpu.memory_space<vmem>>, vector<512x256xbf16>
    %cst_9 = arith.constant dense<0.000000e+00> : vector<8x256xf32>
    %13 = tpu.matmul %11, %12, %cst_9 {dimension_numbers = #tpu.dot_dimension_numbers<[1], [0], [0], [1], [0, 0, 1, 1], [], []>} : vector<8x512xbf16>, vector<512x256xbf16>, vector<8x256xf32> -> vector<8x256xf32>
    %c0_10 = arith.constant 0 : index
    %c0_11 = arith.constant 0 : index
    %14 = vector.load %arg6[%c0_10, %c0_11] : memref<1x256xf32, #tpu.memory_space<vmem>>, vector<1x256xf32>
    %15 = vector.broadcast %14 : vector<1x256xf32> to vector<8x256xf32>
    %16 = arith.addf %13, %15 : vector<8x256xf32>
    %cst_12 = arith.constant 0.000000e+00 : f32
    %17 = vector.broadcast %cst_12 : f32 to vector<8x256xf32>
    %18 = arith.cmpf ogt, %16, %17 : vector<8x256xf32>
    %cst_13 = arith.constant 0.00999999977 : f32
    %19 = vector.broadcast %cst_13 : f32 to vector<8x256xf32>
    %20 = arith.mulf %19, %16 : vector<8x256xf32>
    %21 = arith.select %18, %16, %20 : vector<8x256xi1>, vector<8x256xf32>
    %c0_14 = arith.constant 0 : index
    %c0_15 = arith.constant 0 : index
    %22 = vector.load %arg2[%c0_14, %c0_15] : memref<8x256xbf16, #tpu.memory_space<vmem>>, vector<8x256xbf16>
    %c0_16 = arith.constant 0 : index
    %c0_17 = arith.constant 0 : index
    %23 = vector.load %arg7[%c0_16, %c0_17] : memref<256x512xbf16, #tpu.memory_space<vmem>>, vector<256x512xbf16>
    %cst_18 = arith.constant dense<0.000000e+00> : vector<8x512xf32>
    %24 = tpu.matmul %22, %23, %cst_18 {dimension_numbers = #tpu.dot_dimension_numbers<[1], [0], [0], [1], [0, 0, 1, 1], [], []>} : vector<8x256xbf16>, vector<256x512xbf16>, vector<8x512xf32> -> vector<8x512xf32>
    %c0_19 = arith.constant 0 : index
    %c0_20 = arith.constant 0 : index
    %25 = vector.load %arg8[%c0_19, %c0_20] : memref<1x512xf32, #tpu.memory_space<vmem>>, vector<1x512xf32>
    %26 = vector.broadcast %25 : vector<1x512xf32> to vector<8x512xf32>
    %27 = arith.addf %24, %26 : vector<8x512xf32>
    %cst_21 = arith.constant 0.000000e+00 : f32
    %28 = vector.broadcast %cst_21 : f32 to vector<8x512xf32>
    %29 = arith.cmpf ogt, %27, %28 : vector<8x512xf32>
    %cst_22 = arith.constant 0.00999999977 : f32
    %30 = vector.broadcast %cst_22 : f32 to vector<8x512xf32>
    %31 = arith.mulf %30, %27 : vector<8x512xf32>
    %32 = arith.select %29, %27, %31 : vector<8x512xi1>, vector<8x512xf32>
    %33 = arith.truncf %32 : vector<8x512xf32> to vector<8x512xbf16>
    %c0_23 = arith.constant 0 : index
    %c0_24 = arith.constant 0 : index
    %34 = vector.load %arg9[%c0_23, %c0_24] : memref<512x256xbf16, #tpu.memory_space<vmem>>, vector<512x256xbf16>
    %cst_25 = arith.constant dense<0.000000e+00> : vector<8x256xf32>
    %35 = tpu.matmul %33, %34, %cst_25 {dimension_numbers = #tpu.dot_dimension_numbers<[1], [0], [0], [1], [0, 0, 1, 1], [], []>} : vector<8x512xbf16>, vector<512x256xbf16>, vector<8x256xf32> -> vector<8x256xf32>
    %c0_26 = arith.constant 0 : index
    %c0_27 = arith.constant 0 : index
    %36 = vector.load %arg10[%c0_26, %c0_27] : memref<1x256xf32, #tpu.memory_space<vmem>>, vector<1x256xf32>
    %37 = vector.broadcast %36 : vector<1x256xf32> to vector<8x256xf32>
    %38 = arith.addf %35, %37 : vector<8x256xf32>
    %cst_28 = arith.constant 0.000000e+00 : f32
    %39 = vector.broadcast %cst_28 : f32 to vector<8x256xf32>
    %40 = arith.cmpf ogt, %38, %39 : vector<8x256xf32>
    %cst_29 = arith.constant 0.00999999977 : f32
    %41 = vector.broadcast %cst_29 : f32 to vector<8x256xf32>
    %42 = arith.mulf %41, %38 : vector<8x256xf32>
    %43 = arith.select %40, %38, %42 : vector<8x256xi1>, vector<8x256xf32>
    %44 = arith.truncf %21 : vector<8x256xf32> to vector<8x256xbf16>
    %c0_30 = arith.constant 0 : index
    %c0_31 = arith.constant 0 : index
    %45 = vector.load %arg11[%c0_30, %c0_31] : memref<256x128xbf16, #tpu.memory_space<vmem>>, vector<256x128xbf16>
    %cst_32 = arith.constant dense<0.000000e+00> : vector<8x128xf32>
    %46 = tpu.matmul %44, %45, %cst_32 {dimension_numbers = #tpu.dot_dimension_numbers<[1], [0], [0], [1], [0, 0, 1, 1], [], []>} : vector<8x256xbf16>, vector<256x128xbf16>, vector<8x128xf32> -> vector<8x128xf32>
    %47 = arith.truncf %43 : vector<8x256xf32> to vector<8x256xbf16>
    %c0_33 = arith.constant 0 : index
    %c0_34 = arith.constant 0 : index
    %48 = vector.load %arg12[%c0_33, %c0_34] : memref<256x128xbf16, #tpu.memory_space<vmem>>, vector<256x128xbf16>
    %cst_35 = arith.constant dense<0.000000e+00> : vector<8x128xf32>
    %49 = tpu.matmul %47, %48, %cst_35 {dimension_numbers = #tpu.dot_dimension_numbers<[1], [0], [0], [1], [0, 0, 1, 1], [], []>} : vector<8x256xbf16>, vector<256x128xbf16>, vector<8x128xf32> -> vector<8x128xf32>
    %50 = arith.addf %46, %49 : vector<8x128xf32>
    %c0_36 = arith.constant 0 : index
    %c0_37 = arith.constant 0 : index
    %51 = vector.load %arg13[%c0_36, %c0_37] : memref<1x128xf32, #tpu.memory_space<vmem>>, vector<1x128xf32>
    %52 = vector.broadcast %51 : vector<1x128xf32> to vector<8x128xf32>
    %53 = arith.addf %50, %52 : vector<8x128xf32>
    %cst_38 = arith.constant 0.000000e+00 : f32
    %54 = vector.broadcast %cst_38 : f32 to vector<8x128xf32>
    %55 = arith.maximumf %53, %54 : vector<8x128xf32>
    %c0_39 = arith.constant 0 : index
    %c0_40 = arith.constant 0 : index
    %56 = vector.load %arg14[%c0_39, %c0_40] : memref<1x128xf32, #tpu.memory_space<vmem>>, vector<1x128xf32>
    %57 = vector.broadcast %56 : vector<1x128xf32> to vector<8x128xf32>
    %58 = arith.mulf %55, %57 : vector<8x128xf32>
    %cst_41 = arith.constant dense<0.000000e+00> : vector<8xf32>
    %59 = vector.multi_reduction <add>, %58, %cst_41 [1] : vector<8x128xf32> to vector<8xf32>
    %60 = vector.shape_cast %59 : vector<8xf32> to vector<8x1xf32>
    %c0_42 = arith.constant 0 : index
    %c0_43 = arith.constant 0 : index
    %61 = memref.load %arg15[%c0_42, %c0_43] : memref<1x1xf32, #tpu.memory_space<smem>>
    %62 = vector.broadcast %61 : f32 to vector<8x1xf32>
    %63 = arith.addf %60, %62 : vector<8x1xf32>
    %c0_44 = arith.constant 0 : index
    %c0_45 = arith.constant 0 : index
    %64 = vector.load %arg16[%c0_44, %c0_45] : memref<8x1xf32, #tpu.memory_space<vmem>>, vector<8x1xf32>
    tpu.vector_store %arg16[%c0_44, %c0_45], %63 {strides = array<i32>} : memref<8x1xf32, #tpu.memory_space<vmem>>, vector<8x1xf32>,
    return
  }
  func.func @transform_0(%arg0: i32) -> (i32, i32) {
    %c0_i32 = arith.constant 0 : i32
    %c0_i32_0 = arith.constant 0 : i32
    return %arg0, %c0_i32 : i32, i32
  }
  func.func @transform_1(%arg0: i32) -> (i32, i32) {
    %c0_i32 = arith.constant 0 : i32
    %c0_i32_0 = arith.constant 0 : i32
    return %arg0, %c0_i32 : i32, i32
  }
  func.func @transform_2(%arg0: i32) -> (i32, i32) {
    %c0_i32 = arith.constant 0 : i32
    %c0_i32_0 = arith.constant 0 : i32
    %c0_i32_1 = arith.constant 0 : i32
    return %c0_i32, %c0_i32_0 : i32, i32
  }
  func.func @transform_3(%arg0: i32) -> (i32, i32) {
    %c0_i32 = arith.constant 0 : i32
    %c0_i32_0 = arith.constant 0 : i32
    %c0_i32_1 = arith.constant 0 : i32
    return %c0_i32, %c0_i32_0 : i32, i32
  }
  func.func @transform_4(%arg0: i32) -> (i32, i32) {
    %c0_i32 = arith.constant 0 : i32
    %c0_i32_0 = arith.constant 0 : i32
    %c0_i32_1 = arith.constant 0 : i32
    return %c0_i32, %c0_i32_0 : i32, i32
  }
  func.func @transform_5(%arg0: i32) -> (i32, i32) {
    %c0_i32 = arith.constant 0 : i32
    %c0_i32_0 = arith.constant 0 : i32
    %c0_i32_1 = arith.constant 0 : i32
    return %c0_i32, %c0_i32_0 : i32, i32
  }
  func.func @transform_6(%arg0: i32) -> (i32, i32) {
    %c0_i32 = arith.constant 0 : i32
    %c0_i32_0 = arith.constant 0 : i32
    %c0_i32_1 = arith.constant 0 : i32
    return %c0_i32, %c0_i32_0 : i32, i32
  }
  func.func @transform_7(%arg0: i32) -> (i32, i32) {
    %c0_i32 = arith.constant 0 : i32
    %c0_i32_0 = arith.constant 0 : i32
    %c0_i32_1 = arith.constant 0 : i32
    return %c0_i32, %c0_i32_0 : i32, i32
  }
  func.func @transform_8(%arg0: i32) -> (i32, i32) {
    %c0_i32 = arith.constant 0 : i32
    %c0_i32_0 = arith.constant 0 : i32
    %c0_i32_1 = arith.constant 0 : i32
    return %c0_i32, %c0_i32_0 : i32, i32
  }
  func.func @transform_9(%arg0: i32) -> (i32, i32) {
    %c0_i32 = arith.constant 0 : i32
    %c0_i32_0 = arith.constant 0 : i32
    %c0_i32_1 = arith.constant 0 : i32
    return %c0_i32, %c0_i32_0 : i32, i32
  }
  func.func @transform_10(%arg0: i32) -> (i32, i32) {
    %c0_i32 = arith.constant 0 : i32
    %c0_i32_0 = arith.constant 0 : i32
    %c0_i32_1 = arith.constant 0 : i32
    return %c0_i32, %c0_i32_0 : i32, i32
  }
  func.func @transform_11(%arg0: i32) -> (i32, i32) {
    %c0_i32 = arith.constant 0 : i32
    %c0_i32_0 = arith.constant 0 : i32
    %c0_i32_1 = arith.constant 0 : i32
    return %c0_i32, %c0_i32_0 : i32, i32
  }
  func.func @transform_12(%arg0: i32) -> (i32, i32) {
    %c0_i32 = arith.constant 0 : i32
    %c0_i32_0 = arith.constant 0 : i32
    %c0_i32_1 = arith.constant 0 : i32
    return %c0_i32, %c0_i32_0 : i32, i32
  }
  func.func @transform_13(%arg0: i32) -> (i32, i32) {
    %c0_i32 = arith.constant 0 : i32
    %c0_i32_0 = arith.constant 0 : i32
    %c0_i32_1 = arith.constant 0 : i32
    return %c0_i32, %c0_i32_0 : i32, i32
  }
  func.func @transform_14(%arg0: i32) -> (i32, i32) {
    %c0_i32 = arith.constant 0 : i32
    %c0_i32_0 = arith.constant 0 : i32
    %c0_i32_1 = arith.constant 0 : i32
    return %c0_i32, %c0_i32_0 : i32, i32
  }
  func.func @transform_15(%arg0: i32) -> (i32, i32) {
    %c0_i32 = arith.constant 0 : i32
    %c0_i32_0 = arith.constant 0 : i32
    return %arg0, %c0_i32 : i32, i32
  }
}

</mosaic_0001>

<bundles_post_ra>
// kernel: tpu_custom_call.1
= control target key start
LH: loop header
LB: loop body
LE: loop exit
PB: predicated region body
PF: predicated region fallthrough
CT: control target
= control target key end

     0   :  { %21 = vsyncpa [#allocation4], 0  ;;  %s9317_s0 = inlined_call_operand.hbm [shape: bf16[8,1664], index: 0, kind: input, shape index: {}]   ;;  %s9318_s1 = inlined_call_operand.hbm [shape: bf16[8,256], index: 1, kind: input, shape index: {}]   ;;  %s9319_s2 = inlined_call_operand.hbm [shape: bf16[1664,512], index: 2, kind: input, shape index: {}]   ;;  %s9320_s3 = inlined_call_operand.hbm [shape: f32[1,512], index: 3, kind: input, shape index: {}]   ;;  %s9321_s4 = inlined_call_operand.hbm [shape: bf16[512,256], index: 4, kind: input, shape index: {}]   ;;  %s9322_s5 = inlined_call_operand.hbm [shape: f32[1,256], index: 5, kind: input, shape index: {}]   ;;  %s9323_s6 = inlined_call_operand.hbm [shape: bf16[256,512], index: 6, kind: input, shape index: {}]   ;;  %s9324_s7 = inlined_call_operand.hbm [shape: f32[1,512], index: 7, kind: input, shape index: {}]   ;;  %s9325_s8 = inlined_call_operand.hbm [shape: bf16[512,256], index: 8, kind: input, shape index: {}]   ;;  %s9326_s9 = inlined_call_operand.hbm [shape: f32[1,256], index: 9, kind: input, shape index: {}]   ;;  %s9327_s10 = inlined_call_operand.hbm [shape: bf16[256,128], index: 10, kind: input, shape index: {}]   ;;  %s9328_s11 = inlined_call_operand.hbm [shape: bf16[256,128], index: 11, kind: input, shape index: {}]   ;;  %s9329_s12 = inlined_call_operand.hbm [shape: f32[1,128], index: 12, kind: input, shape index: {}]   ;;  %s9330_s13 = inlined_call_operand.hbm [shape: f32[1,128], index: 13, kind: input, shape index: {}]   ;;  %s9331_s14 = inlined_call_operand.<no memory space> [shape: f32[1,1], index: 14, kind: input, shape index: {}]   ;;  %s9332_s15 = inlined_call_operand.vmem [shape: f32[8,1], index: 15, kind: output, shape index: {}]  }
   0x1   :  { %22 = vsyncpa [#allocation6], 0 }
   0x2   :  { %23 = vsyncpa [#allocation9], 0 }
   0x3   :  { %24 = vsyncpa [#allocation12], 0 }
   0x4   :  { %25 = vsyncpa [#allocation15], 0 }
   0x5   :  { %26 = vsyncpa [#allocation18], 0 }
   0x6   :  { %27 = vsyncpa [#allocation21], 0  ;;  %s45_s20 = sshll.u32 %s9318_s1, 4  ;;  %s46_s20 = int_to_ptr.hbm [resolvable:$true] %s45_s20 }
   0x7   :  { %28 = vsyncpa [#allocation24], 0  ;;  %s8944_s21 = smov [#allocation5]   ;;  %s69_s25 = sshll.u32 %s9320_s3, 4  ;;  %s70_s25 = int_to_ptr.hbm [resolvable:$true] %s69_s25 }
   0x8   :  { %s47_s22 = sshll.u32 %s8944_s21, 4  ;;  %s8945_s26 = smov [#allocation8]   ;;  %s48_s22 = int_to_ptr.vmem [resolvable:$true] %s47_s22 }
   0x9   :  { %50 = dma.hbm_to_vmem [thread:$0]  %s46_s20, 128, %s48_s22, [#allocation6]  }
   0xa   :  { %s71_s27 = sshll.u32 %s8945_s26, 4  ;;  %s93_s30 = sshll.u32 %s9322_s5, 4  ;;  %s72_s27 = int_to_ptr.vmem [resolvable:$true] %s71_s27  ;;  %s94_s30 = int_to_ptr.hbm [resolvable:$true] %s93_s30 }
   0xb   :  { %74 = dma.hbm_to_vmem [thread:$0]  %s70_s25, 64, %s72_s27, [#allocation9]  }
   0xc   :  { %s117_s17 = sshll.u32 %s9324_s7, 4  ;;  %s8946_s18 = smov [#allocation11]   ;;  %s118_s17 = int_to_ptr.hbm [resolvable:$true] %s117_s17 }
   0xd   :  { %s95_s19 = sshll.u32 %s8946_s18, 4  ;;  %s8947_s3 = smov [#allocation14]   ;;  %s96_s19 = int_to_ptr.vmem [resolvable:$true] %s95_s19 }
   0xe   :  { %98 = dma.hbm_to_vmem [thread:$0]  %s94_s30, 32, %s96_s19, [#allocation12]  }
   0xf   :  { %s119_s20 = sshll.u32 %s8947_s3, 4  ;;  %s141_s23 = sshll.u32 %s9326_s9, 4  ;;  %s120_s20 = int_to_ptr.vmem [resolvable:$true] %s119_s20  ;;  %s142_s23 = int_to_ptr.hbm [resolvable:$true] %s141_s23 }
  0x10   :  { %122 = dma.hbm_to_vmem [thread:$0]  %s118_s17, 64, %s120_s20, [#allocation15]  }
  0x11   :  { %s8948_s5 = smov [#allocation17]   ;;  %s164_s7 = sshll.u32 %s9328_s11, 4  ;;  %s165_s7 = int_to_ptr.hbm [resolvable:$true] %s164_s7 }
  0x12   :  { %s143_s24 = sshll.u32 %s8948_s5, 4  ;;  %s8949_s27 = smov [#allocation20]   ;;  %s144_s24 = int_to_ptr.vmem [resolvable:$true] %s143_s24 }
  0x13   :  { %146 = dma.hbm_to_vmem [thread:$0]  %s142_s23, 32, %s144_s24, [#allocation18]  }
  0x14   :  { %s166_s28 = sshll.u32 %s8949_s27, 4  ;;  %s34_s1 = sshll.u32 %s9317_s0, 4  ;;  %s167_s28 = int_to_ptr.vmem [resolvable:$true] %s166_s28  ;;  %s35_s1 = int_to_ptr.hbm [resolvable:$true] %s34_s1 }
  0x15   :  { %s8950_s9 = smov 64   ;;  %s8951_s16 = smov 4  }
  0x16   :  { %172 = dma.hbm_to_vmem [thread:$0]  %s165_s7, 2048, %s167_s28, [#allocation21], %s8950_s9, %s8950_s9, %s8951_s16  }
  0x17   :  { %s55_s11 = sshll.u32 %s9319_s2, 4  ;;  %s8952_s19 = smov [#allocation3]   ;;  %s56_s11 = int_to_ptr.hbm [resolvable:$true] %s55_s11 }
  0x18   :  { %s36_s3 = sshll.u32 %s8952_s19, 4  ;;  %s8953_s20 = smov [#allocation7]   ;;  %s37_s3 = int_to_ptr.vmem [resolvable:$true] %s36_s3 }
  0x19   :  { %39 = dma.hbm_to_vmem [thread:$0]  %s35_s1, 832, %s37_s3, [#allocation4]  }
  0x1a   :  { %s57_s21 = sshll.u32 %s8953_s20, 4  ;;  %s8954_s0 = smov 256   ;;  %s58_s21 = int_to_ptr.vmem [resolvable:$true] %s57_s21 }
  0x1b   :  { %s8955_s22 = smov 16   ;;  %s79_s24 = sshll.u32 %s9321_s4, 4  ;;  %s80_s24 = int_to_ptr.hbm [resolvable:$true] %s79_s24 }
  0x1c   :  { %63 = dma.hbm_to_vmem [thread:$0]  %s56_s11, 53248, %s58_s21, [#allocation6], %s8954_s0, %s8954_s0, %s8955_s22  }
  0x1d   :  { %s8956_s25 = smov [#allocation10]   ;;  %s103_s27 = sshll.u32 %s9323_s6, 4  ;;  %s104_s27 = int_to_ptr.hbm [resolvable:$true] %s103_s27 }
  0x1e   :  { %s81_s26 = sshll.u32 %s8956_s25, 4  ;;  %s8957_s28 = smov 128   ;;  %s82_s26 = int_to_ptr.vmem [resolvable:$true] %s81_s26 }
  0x1f   :  { %s8958_s29 = smov 8   ;;  %s8959_s30 = smov [#allocation13]  }
  0x20   :  { %87 = dma.hbm_to_vmem [thread:$0]  %s80_s24, 8192, %s82_s26, [#allocation9], %s8957_s28, %s8957_s28, %s8958_s29  }
  0x21   :  { %s105_s1 = sshll.u32 %s8959_s30, 4  ;;  %s127_s11 = sshll.u32 %s9325_s8, 4  ;;  %s106_s1 = int_to_ptr.vmem [resolvable:$true] %s105_s1  ;;  %s128_s11 = int_to_ptr.hbm [resolvable:$true] %s127_s11 }
  0x22   :  { %111 = dma.hbm_to_vmem [thread:$0]  %s104_s27, 8192, %s106_s1, [#allocation12], %s8954_s0, %s8954_s0, %s8955_s22  }
  0x23   :  { %s151_s3 = sshll.u32 %s9327_s10, 4  ;;  %s8960_s20 = smov [#allocation16]   ;;  %s152_s3 = int_to_ptr.hbm [resolvable:$true] %s151_s3 }
  0x24   :  { %s129_s21 = sshll.u32 %s8960_s20, 4  ;;  %s8961_s6 = smov [#allocation19]   ;;  %s130_s21 = int_to_ptr.vmem [resolvable:$true] %s129_s21 }
  0x25   :  { %135 = dma.hbm_to_vmem [thread:$0]  %s128_s11, 8192, %s130_s21, [#allocation15], %s8957_s28, %s8957_s28, %s8958_s29  }
  0x26   :  { %s153_s23 = sshll.u32 %s8961_s6, 4  ;;  %s178_s25 = sshll.u32 %s9329_s12, 4  ;;  %s154_s23 = int_to_ptr.vmem [resolvable:$true] %s153_s23  ;;  %s179_s25 = int_to_ptr.hbm [resolvable:$true] %s178_s25 }
  0x27   :  { %159 = dma.hbm_to_vmem [thread:$0]  %s152_s3, 2048, %s154_s23, [#allocation18], %s8950_s9, %s8950_s9, %s8951_s16  }
  0x28   :  { %s189_s10 = sshll.u32 %s9330_s13, 4  ;;  %s8962_s22 = smov [#allocation22]   ;;  %s190_s10 = int_to_ptr.hbm [resolvable:$true] %s189_s10 }
  0x29   :  { %s180_s26 = sshll.u32 %s8962_s22, 4  ;;  %s8963_s2 = smov [#allocation23]   ;;  %s181_s26 = int_to_ptr.vmem [resolvable:$true] %s180_s26 }
  0x2a   :  { %183 = dma.hbm_to_vmem [thread:$0]  %s179_s25, 16, %s181_s26, [#allocation21]  }
  0x2b   :  { %s191_s7 = sshll.u32 %s8963_s2, 4  ;;  %s192_s7 = int_to_ptr.vmem [resolvable:$true] %s191_s7 }
  0x2c   :  { %194 = dma.hbm_to_vmem [thread:$0]  %s190_s10, 16, %s192_s7, [#allocation24]  }
  0x2d   :  { %8928 = dma.done.wait [#allocation4], 832  }
  0x2e   :  { %8929 = vsyncadd [#allocation4], 4294966464 }
  0x2f   :  { %8930 = dma.done.wait [#allocation6], 53376  }
  0x30   :  { %8931 = vsyncadd [#allocation6], 4294913920 }
  0x31   :  { %8932 = dma.done.wait [#allocation9], 8256  }
  0x32   :  { %8933 = vsyncadd [#allocation9], 4294959040 }
  0x33   :  { %8934 = dma.done.wait [#allocation12], 8224  }
  0x34   :  { %8935 = vsyncadd [#allocation12], 4294959072 }
  0x35   :  { %8936 = dma.done.wait [#allocation15], 8256  }
  0x36   :  { %8937 = vsyncadd [#allocation15], 4294959040 }
  0x37   :  { %8938 = dma.done.wait [#allocation18], 2080  }
  0x38   :  { %8939 = vsyncadd [#allocation18], 4294965216 }
  0x39   :  { %8940 = dma.done.wait [#allocation21], 2064  }
  0x3a   :  { %8941 = vsyncadd [#allocation21], 4294965232 }
  0x3b   :  { %8942 = dma.done.wait [#allocation24], 16  }
  0x3c   :  { %8943 = vsyncadd [#allocation24], 4294967280  ;;  %v5482_v0 = vld [vmem:[#allocation7 + $0xe0] sm:$0xf]  ;;  %v7958_v1 = vld [vmem:[#allocation7 + $0xec] sm:$0xf0] }
  0x3d   :  { %v5610_v2 = vld [vmem:[#allocation7 + $0x1e0] sm:$0xf]  ;;  %v5483_v3 = vor.u32 %v7958_v1, %v5482_v0  ;;  %v7990_v4 = vld [vmem:[#allocation7 + $0x1ec] sm:$0xf0]  ;;  %vm5354_vm12 = vcmask 7168  }
  0x3e   :  { %v5738_v5 = vld [vmem:[#allocation7 + $0x2e0] sm:$0xf]  ;;  %v8022_v6 = vld [vmem:[#allocation7 + $0x2ec] sm:$0xf0]  ;;  %v5611_v7 = vor.u32 %v7990_v4, %v5610_v2 }
  0x3f   :  { %v5739_v8 = vor.u32 %v8022_v6, %v5738_v5  ;;  %v5866_v9 = vld [vmem:[#allocation7 + $0x3e0] sm:$0xf]  ;;  %v8054_v10 = vld [vmem:[#allocation7 + $0x3ec] sm:$0xf0]  ;;  %2812 = vmatpush.bf16.msra.mxu0 %v5483_v3 }
  0x40   :  { %v5466_v11 = vld [vmem:[#allocation7 + $0xc0] sm:$0xf]  ;;  %v5867_v12 = vor.u32 %v8054_v10, %v5866_v9  ;;  %v7954_v13 = vld [vmem:[#allocation7 + $0xcc] sm:$0xf0]  ;;  %2825 = vmatpush.bf16.msra.mxu1 %v5611_v7 }
  0x41   :  { %v5594_v14 = vld [vmem:[#allocation7 + $0x1c0] sm:$0xf]  ;;  %v7986_v15 = vld [vmem:[#allocation7 + $0x1cc] sm:$0xf0]  ;;  %2838 = vmatpush.bf16.msra.mxu2 %v5739_v8  ;;  %v5467_v16 = vor.u32 %v7954_v13, %v5466_v11 }
  0x42   :  { %v5595_v17 = vor.u32 %v7986_v15, %v5594_v14  ;;  %v5722_v18 = vld [vmem:[#allocation7 + $0x2c0] sm:$0xf]  ;;  %v8018_v19 = vld [vmem:[#allocation7 + $0x2cc] sm:$0xf0]  ;;  %2851 = vmatpush.bf16.msra.mxu3 %v5867_v12 }
  0x43   :  { %v5850_v20 = vld [vmem:[#allocation7 + $0x3c0] sm:$0xf]  ;;  %v5723_v21 = vor.u32 %v8018_v19, %v5722_v18  ;;  %v8050_v22 = vld [vmem:[#allocation7 + $0x3cc] sm:$0xf0]  ;;  %2813 = vmatpush.bf16.msra.mxu0 %v5467_v16 }
  0x44   :  { %v5450_v23 = vld [vmem:[#allocation7 + $0xa0] sm:$0xf]  ;;  %v7950_v24 = vld [vmem:[#allocation7 + $0xac] sm:$0xf0]  ;;  %v5851_v25 = vor.u32 %v8050_v22, %v5850_v20  ;;  %2826 = vmatpush.bf16.msra.mxu1 %v5595_v17 }
  0x45   :  { %v5578_v26 = vld [vmem:[#allocation7 + $0x1a0] sm:$0xf]  ;;  %v7982_v27 = vld [vmem:[#allocation7 + $0x1ac] sm:$0xf0]  ;;  %v5451_v29 = vor.u32 %v7950_v24, %v5450_v23  ;;  %2839 = vmatpush.bf16.msra.mxu2 %v5723_v21 }
  0x46   :  { %v5706_v28 = vld [vmem:[#allocation7 + $0x2a0] sm:$0xf]  ;;  %v8014_v30 = vld [vmem:[#allocation7 + $0x2ac] sm:$0xf0]  ;;  %v5579_v33 = vor.u32 %v7982_v27, %v5578_v26  ;;  %2852 = vmatpush.bf16.msra.mxu3 %v5851_v25 }
  0x47   :  { %v5834_v31 = vld [vmem:[#allocation7 + $0x3a0] sm:$0xf]  ;;  %v8046_v32 = vld [vmem:[#allocation7 + $0x3ac] sm:$0xf0]  ;;  %v5707_v34 = vor.u32 %v8014_v30, %v5706_v28  ;;  %2814 = vmatpush.bf16.msra.mxu0 %v5451_v29 }
  0x48   :  { %v5434_v35 = vld [vmem:[#allocation7 + $0x80] sm:$0xf]  ;;  %v7946_v36 = vld [vmem:[#allocation7 + $0x8c] sm:$0xf0]  ;;  %v5835_v38 = vor.u32 %v8046_v32, %v5834_v31  ;;  %2827 = vmatpush.bf16.msra.mxu1 %v5579_v33 }
  0x49   :  { %v5562_v37 = vld [vmem:[#allocation7 + $0x180] sm:$0xf]  ;;  %v7978_v39 = vld [vmem:[#allocation7 + $0x18c] sm:$0xf0]  ;;  %v5435_v44 = vor.u32 %v7946_v36, %v5434_v35  ;;  %2840 = vmatpush.bf16.msra.mxu2 %v5707_v34 }
  0x4a   :  { %v5690_v40 = vld [vmem:[#allocation7 + $0x280] sm:$0xf]  ;;  %v8010_v41 = vld [vmem:[#allocation7 + $0x28c] sm:$0xf0]  ;;  %v5563_v45 = vor.u32 %v7978_v39, %v5562_v37  ;;  %2853 = vmatpush.bf16.msra.mxu3 %v5835_v38 }
  0x4b   :  { %v5818_v42 = vld [vmem:[#allocation7 + $0x380] sm:$0xf]  ;;  %v8042_v43 = vld [vmem:[#allocation7 + $0x38c] sm:$0xf0]  ;;  %v5691_v46 = vor.u32 %v8010_v41, %v5690_v40  ;;  %2815 = vmatpush.bf16.msra.mxu0 %v5435_v44 }
  0x4c   :  { %v5418_v47 = vld [vmem:[#allocation7 + $0x60] sm:$0xf]  ;;  %v7942_v48 = vld [vmem:[#allocation7 + $0x6c] sm:$0xf0]  ;;  %v5819_v50 = vor.u32 %v8042_v43, %v5818_v42  ;;  %2828 = vmatpush.bf16.msra.mxu1 %v5563_v45 }
  0x4d   :  { %v5546_v49 = vld [vmem:[#allocation7 + $0x160] sm:$0xf]  ;;  %v7974_v51 = vld [vmem:[#allocation7 + $0x16c] sm:$0xf0]  ;;  %v5419_v56 = vor.u32 %v7942_v48, %v5418_v47  ;;  %2841 = vmatpush.bf16.msra.mxu2 %v5691_v46 }
  0x4e   :  { %v5674_v52 = vld [vmem:[#allocation7 + $0x260] sm:$0xf]  ;;  %v8006_v53 = vld [vmem:[#allocation7 + $0x26c] sm:$0xf0]  ;;  %v5547_v57 = vor.u32 %v7974_v51, %v5546_v49  ;;  %2854 = vmatpush.bf16.msra.mxu3 %v5819_v50 }
  0x4f   :  { %v5802_v54 = vld [vmem:[#allocation7 + $0x360] sm:$0xf]  ;;  %v8038_v55 = vld [vmem:[#allocation7 + $0x36c] sm:$0xf0]  ;;  %v5675_v58 = vor.u32 %v8006_v53, %v5674_v52  ;;  %2816 = vmatpush.bf16.msra.mxu0 %v5419_v56 }
  0x50   :  { %v5402_v59 = vld [vmem:[#allocation7 + $0x40] sm:$0xf]  ;;  %v7938_v60 = vld [vmem:[#allocation7 + $0x4c] sm:$0xf0]  ;;  %v5803_v62 = vor.u32 %v8038_v55, %v5802_v54  ;;  %2829 = vmatpush.bf16.msra.mxu1 %v5547_v57 }
  0x51   :  { %v5530_v61 = vld [vmem:[#allocation7 + $0x140] sm:$0xf]  ;;  %v7970_v63 = vld [vmem:[#allocation7 + $0x14c] sm:$0xf0]  ;;  %v5403_v4 = vor.u32 %v7938_v60, %v5402_v59  ;;  %2842 = vmatpush.bf16.msra.mxu2 %v5675_v58 }
  0x52   :  { %v5658_v0 = vld [vmem:[#allocation7 + $0x240] sm:$0xf]  ;;  %v8002_v1 = vld [vmem:[#allocation7 + $0x24c] sm:$0xf0]  ;;  %v5531_v5 = vor.u32 %v7970_v63, %v5530_v61  ;;  %2855 = vmatpush.bf16.msra.mxu3 %v5803_v62 }
  0x53   :  { %v5786_v2 = vld [vmem:[#allocation7 + $0x340] sm:$0xf]  ;;  %v8034_v3 = vld [vmem:[#allocation7 + $0x34c] sm:$0xf0]  ;;  %v5659_v6 = vor.u32 %v8002_v1, %v5658_v0  ;;  %2817 = vmatpush.bf16.msra.mxu0 %v5403_v4 }
  0x54   :  { %v5386_v7 = vld [vmem:[#allocation7 + $0x20] sm:$0xf]  ;;  %v7934_v8 = vld [vmem:[#allocation7 + $0x2c] sm:$0xf0]  ;;  %v5787_v10 = vor.u32 %v8034_v3, %v5786_v2  ;;  %2830 = vmatpush.bf16.msra.mxu1 %v5531_v5  ;;  %v253_v3 = vld [vmem:[#allocation3] sm:$0xff] }
  0x55   :  { %v5514_v9 = vld [vmem:[#allocation7 + $0x120] sm:$0xf]  ;;  %v7966_v11 = vld [vmem:[#allocation7 + $0x12c] sm:$0xf0]  ;;  %v5387_v16 = vor.u32 %v7934_v8, %v5386_v7  ;;  %2843 = vmatpush.bf16.msra.mxu2 %v5659_v6 }
  0x56   :  { %v5642_v12 = vld [vmem:[#allocation7 + $0x220] sm:$0xf]  ;;  %v7998_v13 = vld [vmem:[#allocation7 + $0x22c] sm:$0xf0]  ;;  %v5515_v19 = vor.u32 %v7966_v11, %v5514_v9  ;;  %2856 = vmatpush.bf16.msra.mxu3 %v5787_v10  ;;  %v693_v9 = vunpack.c.l.b16 %v253_v3 }
  0x57   :  { %v5770_v14 = vld [vmem:[#allocation7 + $0x320] sm:$0xf]  ;;  %v8030_v15 = vld [vmem:[#allocation7 + $0x32c] sm:$0xf0]  ;;  %v5643_v20 = vor.u32 %v7998_v13, %v5642_v12  ;;  %2818 = vmatpush.bf16.msra.mxu0 %v5387_v16 }
  0x58   :  { %v5370_v17 = vld [vmem:[#allocation7] sm:$0xf]  ;;  %v7930_v18 = vld [vmem:[#allocation7 + $0xc] sm:$0xf0]  ;;  %v5771_v24 = vor.u32 %v8030_v15, %v5770_v14  ;;  %2831 = vmatpush.bf16.msra.mxu1 %v5515_v19  ;;  %v694_v15 = vunpack.c.h.b16 %v253_v3  ;;  %v9094_v19 = vpack.c.b16 %v693_v9, %v693_v9 }
  0x59   :  { %v5498_v21 = vld [vmem:[#allocation7 + $0x100] sm:$0xf]  ;;  %v7962_v22 = vld [vmem:[#allocation7 + $0x10c] sm:$0xf0]  ;;  %v5371_v31 = vor.u32 %v7930_v18, %v5370_v17  ;;  %2844 = vmatpush.bf16.msra.mxu2 %v5643_v20 }
  0x5a   :  { %v5626_v23 = vld [vmem:[#allocation7 + $0x200] sm:$0xf]  ;;  %v7994_v25 = vld [vmem:[#allocation7 + $0x20c] sm:$0xf0]  ;;  %v5499_v35 = vor.u32 %v7962_v22, %v5498_v21  ;;  %2857 = vmatpush.bf16.msra.mxu3 %v5771_v24  ;;  %v9098_v22 = vpack.c.b16 %v694_v15, %v694_v15 }
  0x5b   :  { %v5754_v26 = vld [vmem:[#allocation7 + $0x300] sm:$0xf]  ;;  %v8026_v27 = vld [vmem:[#allocation7 + $0x30c] sm:$0xf0]  ;;  %v5627_v36 = vor.u32 %v7994_v25, %v5626_v23  ;;  %2819 = vmatpush.bf16.msra.mxu0 %v5371_v31 }
  0x5c   :  { %v5994_v28 = vld [vmem:[#allocation7 + $0x4e0] sm:$0xf]  ;;  %v8086_v29 = vld [vmem:[#allocation7 + $0x4ec] sm:$0xf0]  ;;  %v5755_v39 = vor.u32 %v8026_v27, %v5754_v26  ;;  %2832 = vmatpush.bf16.msra.mxu1 %v5499_v35 }
  0x5d   :  { %v6122_v30 = vld [vmem:[#allocation7 + $0x5e0] sm:$0xf]  ;;  %v8118_v32 = vld [vmem:[#allocation7 + $0x5ec] sm:$0xf0]  ;;  %v5995_v40 = vor.u32 %v8086_v29, %v5994_v28  ;;  %2845 = vmatpush.bf16.msra.mxu2 %v5627_v36 }
  0x5e   :  { %v6250_v33 = vld [vmem:[#allocation7 + $0x6e0] sm:$0xf]  ;;  %v8150_v34 = vld [vmem:[#allocation7 + $0x6ec] sm:$0xf0]  ;;  %v6123_v41 = vor.u32 %v8118_v32, %v6122_v30  ;;  %2858 = vmatpush.bf16.msra.mxu3 %v5755_v39  ;;  %2820 = vmatmul.bf16.vlgmr.msra.gmra.mxu0 %v9094_v19 }
  0x5f   :  { %v6378_v37 = vld [vmem:[#allocation7 + $0x7e0] sm:$0xf]  ;;  %v8182_v38 = vld [vmem:[#allocation7 + $0x7ec] sm:$0xf0]  ;;  %v6251_v42 = vor.u32 %v8150_v34, %v6250_v33  ;;  %2864 = vmatpush.bf16.msrb.mxu0 %v5995_v40  ;;  %2833 = vmatmul.bf16.vlgmr.msra.gmra.mxu1 %v9098_v22 }
  0x60   :  { %v5978_v43 = vld [vmem:[#allocation7 + $0x4c0] sm:$0xf]  ;;  %v8082_v44 = vld [vmem:[#allocation7 + $0x4cc] sm:$0xf0]  ;;  %v6379_v46 = vor.u32 %v8182_v38, %v6378_v37  ;;  %2877 = vmatpush.bf16.msrb.mxu1 %v6123_v41 }
  0x61   :  { %v6106_v45 = vld [vmem:[#allocation7 + $0x5c0] sm:$0xf]  ;;  %v8114_v47 = vld [vmem:[#allocation7 + $0x5cc] sm:$0xf0]  ;;  %v5979_v52 = vor.u32 %v8082_v44, %v5978_v43  ;;  %2890 = vmatpush.bf16.msrb.mxu2 %v6251_v42 }
  0x62   :  { %v6234_v48 = vld [vmem:[#allocation7 + $0x6c0] sm:$0xf]  ;;  %v8146_v49 = vld [vmem:[#allocation7 + $0x6cc] sm:$0xf0]  ;;  %v6107_v54 = vor.u32 %v8114_v47, %v6106_v45  ;;  %2903 = vmatpush.bf16.msrb.mxu3 %v6379_v46 }
  0x63   :  { %v6362_v50 = vld [vmem:[#allocation7 + $0x7c0] sm:$0xf]  ;;  %v8178_v51 = vld [vmem:[#allocation7 + $0x7cc] sm:$0xf0]  ;;  %v6235_v55 = vor.u32 %v8146_v49, %v6234_v48  ;;  %2865 = vmatpush.bf16.msrb.mxu0 %v5979_v52 }
  0x64   :  { %v5962_v53 = vld [vmem:[#allocation7 + $0x4a0] sm:$0xf]  ;;  %v8078_v56 = vld [vmem:[#allocation7 + $0x4ac] sm:$0xf0]  ;;  %v6363_v59 = vor.u32 %v8178_v51, %v6362_v50  ;;  %2878 = vmatpush.bf16.msrb.mxu1 %v6107_v54 }
  0x65   :  { %v6090_v57 = vld [vmem:[#allocation7 + $0x5a0] sm:$0xf]  ;;  %v8110_v58 = vld [vmem:[#allocation7 + $0x5ac] sm:$0xf0]  ;;  %v5963_v0 = vor.u32 %v8078_v56, %v5962_v53  ;;  %2891 = vmatpush.bf16.msrb.mxu2 %v6235_v55 }
  0x66   :  { %v6218_v60 = vld [vmem:[#allocation7 + $0x6a0] sm:$0xf]  ;;  %v8142_v61 = vld [vmem:[#allocation7 + $0x6ac] sm:$0xf0]  ;;  %v6091_v1 = vor.u32 %v8110_v58, %v6090_v57  ;;  %2904 = vmatpush.bf16.msrb.mxu3 %v6363_v59 }
  0x67   :  { %v6346_v62 = vld [vmem:[#allocation7 + $0x7a0] sm:$0xf]  ;;  %v8174_v63 = vld [vmem:[#allocation7 + $0x7ac] sm:$0xf0]  ;;  %v6219_v4 = vor.u32 %v8142_v61, %v6218_v60  ;;  %2866 = vmatpush.bf16.msrb.mxu0 %v5963_v0 }
  0x68   :  { %v254_v2 = vld [vmem:[#allocation3 + $0x8] sm:$0xff]  ;;  %v5946_v5 = vld [vmem:[#allocation7 + $0x480] sm:$0xf]  ;;  %v6347_v11 = vor.u32 %v8174_v63, %v6346_v62  ;;  %2879 = vmatpush.bf16.msrb.mxu1 %v6091_v1 }
  0x69   :  { %v8074_v6 = vld [vmem:[#allocation7 + $0x48c] sm:$0xf0]  ;;  %v6074_v7 = vld [vmem:[#allocation7 + $0x580] sm:$0xf]  ;;  %v695_v8 = vunpack.c.l.b16 %v254_v2  ;;  %v696_v10 = vunpack.c.h.b16 %v254_v2  ;;  %2892 = vmatpush.bf16.msrb.mxu2 %v6219_v4 }
  0x6a   :  { %v8106_v12 = vld [vmem:[#allocation7 + $0x58c] sm:$0xf0]  ;;  %v6202_v13 = vld [vmem:[#allocation7 + $0x680] sm:$0xf]  ;;  %v5947_v21 = vor.u32 %v8074_v6, %v5946_v5  ;;  %2905 = vmatpush.bf16.msrb.mxu3 %v6347_v11 }
  0x6b   :  { %v8138_v14 = vld [vmem:[#allocation7 + $0x68c] sm:$0xf0]  ;;  %v6330_v16 = vld [vmem:[#allocation7 + $0x780] sm:$0xf]  ;;  %v9092_v18 = vpack.c.b16 %v695_v8, %v695_v8  ;;  %v9096_v20 = vpack.c.b16 %v696_v10, %v696_v10  ;;  %v6075_v23 = vor.u32 %v8106_v12, %v6074_v7  ;;  %v255_v7 = vld [vmem:[#allocation3 + $0x10] sm:$0xff] }
  0x6c   :  { %v8170_v17 = vld [vmem:[#allocation7 + $0x78c] sm:$0xf0]  ;;  %v6203_v24 = vor.u32 %v8138_v14, %v6202_v13  ;;  %v5930_v25 = vld [vmem:[#allocation7 + $0x460] sm:$0xf]  ;;  %2867 = vmatpush.bf16.msrb.mxu0 %v5947_v21 }
  0x6d   :  { %v8070_v26 = vld [vmem:[#allocation7 + $0x46c] sm:$0xf0]  ;;  %v6058_v27 = vld [vmem:[#allocation7 + $0x560] sm:$0xf]  ;;  %v6331_v28 = vor.u32 %v8170_v17, %v6330_v16  ;;  %2846 = vmatmul.bf16.vlgmr.msra.gmra.mxu2 %v9092_v18  ;;  %2859 = vmatmul.bf16.vlgmr.msra.gmra.mxu3 %v9096_v20 }
  0x6e   :  { %v8102_v29 = vld [vmem:[#allocation7 + $0x56c] sm:$0xf0]  ;;  %v6186_v30 = vld [vmem:[#allocation7 + $0x660] sm:$0xf]  ;;  %v5931_v34 = vor.u32 %v8070_v26, %v5930_v25  ;;  %2880 = vmatpush.bf16.msrb.mxu1 %v6075_v23  ;;  %2893 = vmatpush.bf16.msrb.mxu2 %v6203_v24  ;;  %v697_v24 = vunpack.c.l.b16 %v255_v7 }
  0x6f   :  { %v8134_v31 = vld [vmem:[#allocation7 + $0x66c] sm:$0xf0]  ;;  %v6314_v32 = vld [vmem:[#allocation7 + $0x760] sm:$0xf]  ;;  %v6059_v35 = vor.u32 %v8102_v29, %v6058_v27  ;;  %2906 = vmatpush.bf16.msrb.mxu3 %v6331_v28  ;;  %v698_v28 = vunpack.c.h.b16 %v255_v7 }
  0x70   :  { %v8166_v33 = vld [vmem:[#allocation7 + $0x76c] sm:$0xf0]  ;;  %v6187_v36 = vor.u32 %v8134_v31, %v6186_v30  ;;  %v5914_v37 = vld [vmem:[#allocation7 + $0x440] sm:$0xf]  ;;  %2868 = vmatpush.bf16.msrb.mxu0 %v5931_v34 }
  0x71   :  { %v8066_v38 = vld [vmem:[#allocation7 + $0x44c] sm:$0xf0]  ;;  %v6042_v39 = vld [vmem:[#allocation7 + $0x540] sm:$0xf]  ;;  %v6315_v40 = vor.u32 %v8166_v33, %v6314_v32 }
  0x72   :  { %v8098_v41 = vld [vmem:[#allocation7 + $0x54c] sm:$0xf0]  ;;  %v6170_v42 = vld [vmem:[#allocation7 + $0x640] sm:$0xf]  ;;  %v5915_v46 = vor.u32 %v8066_v38, %v5914_v37  ;;  %2881 = vmatpush.bf16.msrb.mxu1 %v6059_v35  ;;  %2894 = vmatpush.bf16.msrb.mxu2 %v6187_v36 }
  0x73   :  { %v8130_v43 = vld [vmem:[#allocation7 + $0x64c] sm:$0xf0]  ;;  %v6298_v44 = vld [vmem:[#allocation7 + $0x740] sm:$0xf]  ;;  %v6043_v47 = vor.u32 %v8098_v41, %v6042_v39  ;;  %2907 = vmatpush.bf16.msrb.mxu3 %v6315_v40  ;;  %v9106_v41 = vpack.c.b16 %v697_v24, %v697_v24 }
  0x74   :  { %v8162_v45 = vld [vmem:[#allocation7 + $0x74c] sm:$0xf0]  ;;  %v6171_v48 = vor.u32 %v8130_v43, %v6170_v42  ;;  %v5898_v49 = vld [vmem:[#allocation7 + $0x420] sm:$0xf]  ;;  %2869 = vmatpush.bf16.msrb.mxu0 %v5915_v46 }
  0x75   :  { %v8062_v50 = vld [vmem:[#allocation7 + $0x42c] sm:$0xf0]  ;;  %v6026_v51 = vld [vmem:[#allocation7 + $0x520] sm:$0xf]  ;;  %v6299_v52 = vor.u32 %v8162_v45, %v6298_v44  ;;  %v9110_v44 = vpack.c.b16 %v698_v28, %v698_v28 }
  0x76   :  { %v8094_v53 = vld [vmem:[#allocation7 + $0x52c] sm:$0xf0]  ;;  %v6154_v54 = vld [vmem:[#allocation7 + $0x620] sm:$0xf]  ;;  %v5899_v59 = vor.u32 %v8062_v50, %v5898_v49  ;;  %2882 = vmatpush.bf16.msrb.mxu1 %v6043_v47  ;;  %2895 = vmatpush.bf16.msrb.mxu2 %v6171_v48 }
  0x77   :  { %v8126_v55 = vld [vmem:[#allocation7 + $0x62c] sm:$0xf0]  ;;  %v6282_v56 = vld [vmem:[#allocation7 + $0x720] sm:$0xf]  ;;  %v6027_v63 = vor.u32 %v8094_v53, %v6026_v51  ;;  %2908 = vmatpush.bf16.msrb.mxu3 %v6299_v52 }
  0x78   :  { %v8158_v57 = vld [vmem:[#allocation7 + $0x72c] sm:$0xf0]  ;;  %v5882_v58 = vld [vmem:[#allocation7 + $0x400] sm:$0xf]  ;;  %v6155_v0 = vor.u32 %v8126_v55, %v6154_v54  ;;  %2870 = vmatpush.bf16.msrb.mxu0 %v5899_v59 }
  0x79   :  { %v8058_v60 = vld [vmem:[#allocation7 + $0x40c] sm:$0xf0]  ;;  %v6010_v61 = vld [vmem:[#allocation7 + $0x500] sm:$0xf]  ;;  %v6283_v4 = vor.u32 %v8158_v57, %v6282_v56 }
  0x7a   :  { %v8090_v62 = vld [vmem:[#allocation7 + $0x50c] sm:$0xf0]  ;;  %v6138_v1 = vld [vmem:[#allocation7 + $0x600] sm:$0xf]  ;;  %v5883_v11 = vor.u32 %v8058_v60, %v5882_v58  ;;  %2883 = vmatpush.bf16.msrb.mxu1 %v6027_v63  ;;  %2896 = vmatpush.bf16.msrb.mxu2 %v6155_v0 }
  0x7b   :  { %v8122_v2 = vld [vmem:[#allocation7 + $0x60c] sm:$0xf0]  ;;  %v256_v3 = vld [vmem:[#allocation3 + $0x18] sm:$0xff]  ;;  %v6011_v16 = vor.u32 %v8090_v62, %v6010_v61  ;;  %2909 = vmatpush.bf16.msrb.mxu3 %v6283_v4 }
  0x7c   :  { %v6266_v5 = vld [vmem:[#allocation7 + $0x700] sm:$0xf]  ;;  %v8154_v6 = vld [vmem:[#allocation7 + $0x70c] sm:$0xf0]  ;;  %v699_v15 = vunpack.c.l.b16 %v256_v3  ;;  %v6139_v17 = vor.u32 %v8122_v2, %v6138_v1  ;;  %v700_v25 = vunpack.c.h.b16 %v256_v3  ;;  %2871 = vmatpush.bf16.msrb.mxu0 %v5883_v11 }
  0x7d   :  { %v6506_v8 = vld [vmem:[#allocation7 + $0x8e0] sm:$0xf]  ;;  %v8214_v9 = vld [vmem:[#allocation7 + $0x8ec] sm:$0xf0]  ;;  %v6267_v26 = vor.u32 %v8154_v6, %v6266_v5 }
  0x7e   :  { %v6634_v10 = vld [vmem:[#allocation7 + $0x9e0] sm:$0xf]  ;;  %v8246_v12 = vld [vmem:[#allocation7 + $0x9ec] sm:$0xf0]  ;;  %v6507_v27 = vor.u32 %v8214_v9, %v6506_v8  ;;  %v9104_v38 = vpack.c.b16 %v699_v15, %v699_v15  ;;  %2884 = vmatpush.bf16.msrb.mxu1 %v6011_v16  ;;  %2897 = vmatpush.bf16.msrb.mxu2 %v6139_v17  ;;  %v9108_v42 = vpack.c.b16 %v700_v25, %v700_v25 }
  0x7f   :  { %v6762_v13 = vld [vmem:[#allocation7 + $0xae0] sm:$0xf]  ;;  %v8278_v14 = vld [vmem:[#allocation7 + $0xaec] sm:$0xf0]  ;;  %v6635_v29 = vor.u32 %v8246_v12, %v6634_v10  ;;  %2910 = vmatpush.bf16.msrb.mxu3 %v6267_v26  ;;  %2872 = vmatmul.bf16.vlgmr.msrb.gmra.mxu0 %v9106_v41 }
  0x80   :  { %v6890_v21 = vld [vmem:[#allocation7 + $0xbe0] sm:$0xf]  ;;  %v8310_v23 = vld [vmem:[#allocation7 + $0xbec] sm:$0xf0]  ;;  %v6763_v30 = vor.u32 %v8278_v14, %v6762_v13  ;;  %2916 = vmatpush.bf16.msra.mxu0 %v6507_v27 }
  0x81   :  { %v6490_v31 = vld [vmem:[#allocation7 + $0x8c0] sm:$0xf]  ;;  %v8210_v32 = vld [vmem:[#allocation7 + $0x8cc] sm:$0xf0]  ;;  %v6891_v34 = vor.u32 %v8310_v23, %v6890_v21  ;;  %2898 = vmatmul.bf16.vlgmr.msrb.gmra.mxu2 %v9104_v38  ;;  %2885 = vmatmul.bf16.vlgmr.msrb.gmra.mxu1 %v9110_v44 }
  0x82   :  { %v6618_v33 = vld [vmem:[#allocation7 + $0x9c0] sm:$0xf]  ;;  %v8242_v35 = vld [vmem:[#allocation7 + $0x9cc] sm:$0xf0]  ;;  %v6491_v43 = vor.u32 %v8210_v32, %v6490_v31  ;;  %2929 = vmatpush.bf16.msra.mxu1 %v6635_v29  ;;  %2942 = vmatpush.bf16.msra.mxu2 %v6763_v30 }
  0x83   :  { %v6746_v36 = vld [vmem:[#allocation7 + $0xac0] sm:$0xf]  ;;  %v8274_v37 = vld [vmem:[#allocation7 + $0xacc] sm:$0xf0]  ;;  %v6619_v45 = vor.u32 %v8242_v35, %v6618_v33  ;;  %2955 = vmatpush.bf16.msra.mxu3 %v6891_v34 }
  0x84   :  { %v6874_v39 = vld [vmem:[#allocation7 + $0xbc0] sm:$0xf]  ;;  %v8306_v40 = vld [vmem:[#allocation7 + $0xbcc] sm:$0xf0]  ;;  %v6747_v46 = vor.u32 %v8274_v37, %v6746_v36  ;;  %2911 = vmatmul.bf16.vlgmr.msrb.gmra.mxu3 %v9108_v42  ;;  %2917 = vmatpush.bf16.msra.mxu0 %v6491_v43 }
  0x85   :  { %v6474_v47 = vld [vmem:[#allocation7 + $0x8a0] sm:$0xf]  ;;  %v8206_v48 = vld [vmem:[#allocation7 + $0x8ac] sm:$0xf0]  ;;  %v6875_v50 = vor.u32 %v8306_v40, %v6874_v39 }
  0x86   :  { %v6602_v49 = vld [vmem:[#allocation7 + $0x9a0] sm:$0xf]  ;;  %v8238_v51 = vld [vmem:[#allocation7 + $0x9ac] sm:$0xf0]  ;;  %v6475_v56 = vor.u32 %v8206_v48, %v6474_v47  ;;  %2930 = vmatpush.bf16.msra.mxu1 %v6619_v45  ;;  %2943 = vmatpush.bf16.msra.mxu2 %v6747_v46 }
  0x87   :  { %v6730_v52 = vld [vmem:[#allocation7 + $0xaa0] sm:$0xf]  ;;  %v8270_v53 = vld [vmem:[#allocation7 + $0xaac] sm:$0xf0]  ;;  %v6603_v57 = vor.u32 %v8238_v51, %v6602_v49  ;;  %2956 = vmatpush.bf16.msra.mxu3 %v6875_v50 }
  0x88   :  { %v6858_v54 = vld [vmem:[#allocation7 + $0xba0] sm:$0xf]  ;;  %v8302_v55 = vld [vmem:[#allocation7 + $0xbac] sm:$0xf0]  ;;  %v6731_v58 = vor.u32 %v8270_v53, %v6730_v52  ;;  %2918 = vmatpush.bf16.msra.mxu0 %v6475_v56 }
  0x89   :  { %v6458_v59 = vld [vmem:[#allocation7 + $0x880] sm:$0xf]  ;;  %v8202_v60 = vld [vmem:[#allocation7 + $0x88c] sm:$0xf0]  ;;  %v6859_v62 = vor.u32 %v8302_v55, %v6858_v54 }
  0x8a   :  { %v6586_v61 = vld [vmem:[#allocation7 + $0x980] sm:$0xf]  ;;  %v8234_v63 = vld [vmem:[#allocation7 + $0x98c] sm:$0xf0]  ;;  %v6459_v4 = vor.u32 %v8202_v60, %v6458_v59  ;;  %2931 = vmatpush.bf16.msra.mxu1 %v6603_v57  ;;  %2944 = vmatpush.bf16.msra.mxu2 %v6731_v58  ;;  %v257_v57 = vld [vmem:[#allocation3 + $0x20] sm:$0xff] }
  0x8b   :  { %v6714_v0 = vld [vmem:[#allocation7 + $0xa80] sm:$0xf]  ;;  %v8266_v1 = vld [vmem:[#allocation7 + $0xa8c] sm:$0xf0]  ;;  %v6587_v5 = vor.u32 %v8234_v63, %v6586_v61  ;;  %2957 = vmatpush.bf16.msra.mxu3 %v6859_v62 }
  0x8c   :  { %v6842_v2 = vld [vmem:[#allocation7 + $0xb80] sm:$0xf]  ;;  %v8298_v3 = vld [vmem:[#allocation7 + $0xb8c] sm:$0xf0]  ;;  %v6715_v6 = vor.u32 %v8266_v1, %v6714_v0  ;;  %2919 = vmatpush.bf16.msra.mxu0 %v6459_v4  ;;  %v7956_v0 = vld [vmem:[#allocation7 + $0xe4] sm:$0xf] }
  0x8d   :  { %v6442_v7 = vld [vmem:[#allocation7 + $0x860] sm:$0xf]  ;;  %v8198_v8 = vld [vmem:[#allocation7 + $0x86c] sm:$0xf0]  ;;  %v6843_v10 = vor.u32 %v8298_v3, %v6842_v2  ;;  %v5484_v2 = vld [vmem:[#allocation7 + $0xf0] sm:$0xf0] }
  0x8e   :  { %v6570_v9 = vld [vmem:[#allocation7 + $0x960] sm:$0xf]  ;;  %v8230_v11 = vld [vmem:[#allocation7 + $0x96c] sm:$0xf0]  ;;  %v6443_v16 = vor.u32 %v8198_v8, %v6442_v7  ;;  %2932 = vmatpush.bf16.msra.mxu1 %v6587_v5  ;;  %2945 = vmatpush.bf16.msra.mxu2 %v6715_v6  ;;  %v7988_v3 = vld [vmem:[#allocation7 + $0x1e4] sm:$0xf]  ;;  %v701_v5 = vunpack.c.l.b16 %v257_v57 }
  0x8f   :  { %v6698_v12 = vld [vmem:[#allocation7 + $0xa60] sm:$0xf]  ;;  %v8262_v13 = vld [vmem:[#allocation7 + $0xa6c] sm:$0xf0]  ;;  %v6571_v17 = vor.u32 %v8230_v11, %v6570_v9  ;;  %2958 = vmatpush.bf16.msra.mxu3 %v6843_v10  ;;  %v5612_v4 = vld [vmem:[#allocation7 + $0x1f0] sm:$0xf0]  ;;  %v702_v11 = vunpack.c.h.b16 %v257_v57 }
  0x90   :  { %v6826_v14 = vld [vmem:[#allocation7 + $0xb60] sm:$0xf]  ;;  %v8294_v15 = vld [vmem:[#allocation7 + $0xb6c] sm:$0xf0]  ;;  %v6699_v21 = vor.u32 %v8262_v13, %v6698_v12  ;;  %2920 = vmatpush.bf16.msra.mxu0 %v6443_v16  ;;  %v8020_v8 = vld [vmem:[#allocation7 + $0x2e4] sm:$0xf]  ;;  %v5615_v16 = vor.u32 %v7988_v3, %v5612_v4 }
  0x91   :  { %v6426_v23 = vld [vmem:[#allocation7 + $0x840] sm:$0xf]  ;;  %v8194_v24 = vld [vmem:[#allocation7 + $0x84c] sm:$0xf0]  ;;  %v6827_v26 = vor.u32 %v8294_v15, %v6826_v14  ;;  %v5740_v9 = vld [vmem:[#allocation7 + $0x2f0] sm:$0xf0]  ;;  %v5487_v15 = vor.u32 %v7956_v0, %v5484_v2 }
  0x92   :  { %v6554_v25 = vld [vmem:[#allocation7 + $0x940] sm:$0xf]  ;;  %v8226_v27 = vld [vmem:[#allocation7 + $0x94c] sm:$0xf0]  ;;  %v6427_v32 = vor.u32 %v8194_v24, %v6426_v23  ;;  %2933 = vmatpush.bf16.msra.mxu1 %v6571_v17  ;;  %2946 = vmatpush.bf16.msra.mxu2 %v6699_v21  ;;  %v7952_v23 = vld [vmem:[#allocation7 + $0xc4] sm:$0xf]  ;;  %v5743_v24 = vor.u32 %v8020_v8, %v5740_v9 }
  0x93   :  { %v6682_v28 = vld [vmem:[#allocation7 + $0xa40] sm:$0xf]  ;;  %v8258_v29 = vld [vmem:[#allocation7 + $0xa4c] sm:$0xf0]  ;;  %v6555_v35 = vor.u32 %v8226_v27, %v6554_v25  ;;  %2959 = vmatpush.bf16.msra.mxu3 %v6827_v26  ;;  %v9116_v25 = vpack.c.b16 %v701_v5, %v701_v5  ;;  %v5468_v26 = vld [vmem:[#allocation7 + $0xd0] sm:$0xf0] }
  0x94   :  { %v6810_v30 = vld [vmem:[#allocation7 + $0xb40] sm:$0xf]  ;;  %v8290_v31 = vld [vmem:[#allocation7 + $0xb4c] sm:$0xf0]  ;;  %v6683_v36 = vor.u32 %v8258_v29, %v6682_v28  ;;  %2921 = vmatpush.bf16.msra.mxu0 %v6427_v32  ;;  %v7984_v27 = vld [vmem:[#allocation7 + $0x1c4] sm:$0xf] }
  0x95   :  { %v6410_v33 = vld [vmem:[#allocation7 + $0x820] sm:$0xf]  ;;  %v8190_v34 = vld [vmem:[#allocation7 + $0x82c] sm:$0xf0]  ;;  %v6811_v43 = vor.u32 %v8290_v31, %v6810_v30  ;;  %v5596_v28 = vld [vmem:[#allocation7 + $0x1d0] sm:$0xf0]  ;;  %v9120_v30 = vpack.c.b16 %v702_v11, %v702_v11 }
  0x96   :  { %v6538_v37 = vld [vmem:[#allocation7 + $0x920] sm:$0xf]  ;;  %v8222_v39 = vld [vmem:[#allocation7 + $0x92c] sm:$0xf0]  ;;  %v6411_v49 = vor.u32 %v8190_v34, %v6410_v33  ;;  %2934 = vmatpush.bf16.msra.mxu1 %v6555_v35  ;;  %2947 = vmatpush.bf16.msra.mxu2 %v6683_v36  ;;  %v8016_v31 = vld [vmem:[#allocation7 + $0x2c4] sm:$0xf]  ;;  %v5471_v35 = vor.u32 %v7952_v23, %v5468_v26  ;;  %v5599_v36 = vor.u32 %v7984_v27, %v5596_v28 }
  0x97   :  { %v6666_v40 = vld [vmem:[#allocation7 + $0xa20] sm:$0xf]  ;;  %v8254_v45 = vld [vmem:[#allocation7 + $0xa2c] sm:$0xf0]  ;;  %v6539_v53 = vor.u32 %v8222_v39, %v6538_v37  ;;  %2960 = vmatpush.bf16.msra.mxu3 %v6811_v43  ;;  %v5724_v32 = vld [vmem:[#allocation7 + $0x2d0] sm:$0xf0] }
  0x98   :  { %v6794_v46 = vld [vmem:[#allocation7 + $0xb20] sm:$0xf]  ;;  %v8286_v47 = vld [vmem:[#allocation7 + $0xb2c] sm:$0xf0]  ;;  %v6667_v54 = vor.u32 %v8254_v45, %v6666_v40  ;;  %2922 = vmatpush.bf16.msra.mxu0 %v6411_v49  ;;  %v7948_v40 = vld [vmem:[#allocation7 + $0xa4] sm:$0xf]  ;;  %v5727_v43 = vor.u32 %v8016_v31, %v5724_v32 }
  0x99   :  { %v6394_v48 = vld [vmem:[#allocation7 + $0x800] sm:$0xf]  ;;  %v8186_v50 = vld [vmem:[#allocation7 + $0x80c] sm:$0xf0]  ;;  %v6795_v58 = vor.u32 %v8286_v47, %v6794_v46  ;;  %v5452_v45 = vld [vmem:[#allocation7 + $0xb0] sm:$0xf0] }
  0x9a   :  { %v6522_v51 = vld [vmem:[#allocation7 + $0x900] sm:$0xf]  ;;  %v8218_v52 = vld [vmem:[#allocation7 + $0x90c] sm:$0xf0]  ;;  %v6395_v1 = vor.u32 %v8186_v50, %v6394_v48  ;;  %2935 = vmatpush.bf16.msra.mxu1 %v6539_v53  ;;  %2948 = vmatpush.bf16.msra.mxu2 %v6667_v54  ;;  %v7980_v46 = vld [vmem:[#allocation7 + $0x1a4] sm:$0xf] }
  0x9b   :  { %v6650_v55 = vld [vmem:[#allocation7 + $0xa00] sm:$0xf]  ;;  %v8250_v56 = vld [vmem:[#allocation7 + $0xa0c] sm:$0xf0]  ;;  %v6523_v6 = vor.u32 %v8218_v52, %v6522_v51  ;;  %2961 = vmatpush.bf16.msra.mxu3 %v6795_v58  ;;  %v5580_v47 = vld [vmem:[#allocation7 + $0x1b0] sm:$0xf0]  ;;  %v5455_v51 = vor.u32 %v7948_v40, %v5452_v45 }
  0x9c   :  { %v6778_v59 = vld [vmem:[#allocation7 + $0xb00] sm:$0xf]  ;;  %v8282_v60 = vld [vmem:[#allocation7 + $0xb0c] sm:$0xf0]  ;;  %v6651_v7 = vor.u32 %v8250_v56, %v6650_v55  ;;  %2923 = vmatpush.bf16.msra.mxu0 %v6395_v1  ;;  %v8012_v48 = vld [vmem:[#allocation7 + $0x2a4] sm:$0xf]  ;;  %v5583_v52 = vor.u32 %v7980_v46, %v5580_v47 }
  0x9d   :  { %v258_v61 = vld [vmem:[#allocation3 + $0x28] sm:$0xff]  ;;  %v7018_v62 = vld [vmem:[#allocation7 + $0xce0] sm:$0xf]  ;;  %v6779_v12 = vor.u32 %v8282_v60, %v6778_v59  ;;  %v5708_v49 = vld [vmem:[#allocation7 + $0x2b0] sm:$0xf0] }
  0x9e   :  { %v8342_v63 = vld [vmem:[#allocation7 + $0xcec] sm:$0xf0]  ;;  %v703_v10 = vunpack.c.l.b16 %v258_v61  ;;  %v704_v14 = vunpack.c.h.b16 %v258_v61  ;;  %v7002_v17 = vld [vmem:[#allocation7 + $0xcc0] sm:$0xf]  ;;  %2936 = vmatpush.bf16.msra.mxu1 %v6523_v6  ;;  %2949 = vmatpush.bf16.msra.mxu2 %v6651_v7  ;;  %v7944_v55 = vld [vmem:[#allocation7 + $0x84] sm:$0xf]  ;;  %v5711_v56 = vor.u32 %v8012_v48, %v5708_v49 }
  0x9f   :  { %v7019_v13 = vor.u32 %v8342_v63, %v7018_v62  ;;  %v8338_v21 = vld [vmem:[#allocation7 + $0xccc] sm:$0xf0]  ;;  %2962 = vmatpush.bf16.msra.mxu3 %v6779_v12  ;;  %v6986_v37 = vld [vmem:[#allocation7 + $0xca0] sm:$0xf]  ;;  %2924 = vmatmul.bf16.vlgmr.msra.gmra.mxu0 %v9116_v25  ;;  %v5436_v57 = vld [vmem:[#allocation7 + $0x90] sm:$0xf0] }
  0xa0   :  { %v9118_v29 = vpack.c.b16 %v703_v10, %v703_v10  ;;  %v9122_v33 = vpack.c.b16 %v704_v14, %v704_v14  ;;  %v7003_v34 = vor.u32 %v8338_v21, %v7002_v17  ;;  %v8334_v39 = vld [vmem:[#allocation7 + $0xcac] sm:$0xf0]  ;;  %v6970_v53 = vld [vmem:[#allocation7 + $0xc80] sm:$0xf]  ;;  %v7976_v58 = vld [vmem:[#allocation7 + $0x184] sm:$0xf]  ;;  %v5439_v63 = vor.u32 %v7944_v55, %v5436_v57 }
  0xa1   :  { %2968 = vmatpush.bf16.msrb.mxu0 %v7019_v13  ;;  %2937 = vmatmul.bf16.vlgmr.msra.gmra.mxu1 %v9120_v30  ;;  %v6987_v50 = vor.u32 %v8334_v39, %v6986_v37  ;;  %v8330_v54 = vld [vmem:[#allocation7 + $0xc8c] sm:$0xf0]  ;;  %v5564_v59 = vld [vmem:[#allocation7 + $0x190] sm:$0xf0]  ;;  %v8008_v60 = vld [vmem:[#allocation7 + $0x284] sm:$0xf] }
  0xa2   :  { %2981 = vmatpush.bf16.msrb.mxu1 %v5487_v15  ;;  %2994 = vmatpush.bf16.msrb.mxu2 %v5615_v16  ;;  %v5692_v61 = vld [vmem:[#allocation7 + $0x290] sm:$0xf0]  ;;  %v6971_v62 = vor.u32 %v8330_v54, %v6970_v53  ;;  %v5567_v0 = vor.u32 %v7976_v58, %v5564_v59  ;;  %v6954_v1 = vld [vmem:[#allocation7 + $0xc60] sm:$0xf]  ;;  %v8326_v2 = vld [vmem:[#allocation7 + $0xc6c] sm:$0xf0] }
  0xa3   :  { %3007 = vmatpush.bf16.msrb.mxu3 %v5743_v24  ;;  %2950 = vmatmul.bf16.vlgmr.msra.gmra.mxu2 %v9118_v29  ;;  %v7940_v3 = vld [vmem:[#allocation7 + $0x64] sm:$0xf]  ;;  %v5695_v4 = vor.u32 %v8008_v60, %v5692_v61  ;;  %v5420_v5 = vld [vmem:[#allocation7 + $0x70] sm:$0xf0]  ;;  %v6955_v10 = vor.u32 %v8326_v2, %v6954_v1  ;;  %v6938_v13 = vld [vmem:[#allocation7 + $0xc40] sm:$0xf] }
  0xa4   :  { %2963 = vmatmul.bf16.vlgmr.msra.gmra.mxu3 %v9122_v33  ;;  %v7972_v6 = vld [vmem:[#allocation7 + $0x164] sm:$0xf]  ;;  %v5548_v7 = vld [vmem:[#allocation7 + $0x170] sm:$0xf0]  ;;  %v5423_v11 = vor.u32 %v7940_v3, %v5420_v5  ;;  %v8322_v14 = vld [vmem:[#allocation7 + $0xc4c] sm:$0xf0] }
  0xa5   :  { %2969 = vmatpush.bf16.msrb.mxu0 %v7003_v34  ;;  %v8004_v8 = vld [vmem:[#allocation7 + $0x264] sm:$0xf]  ;;  %v5676_v9 = vld [vmem:[#allocation7 + $0x270] sm:$0xf0]  ;;  %v5551_v12 = vor.u32 %v7972_v6, %v5548_v7  ;;  %v6939_v27 = vor.u32 %v8322_v14, %v6938_v13  ;;  %v6922_v32 = vld [vmem:[#allocation7 + $0xc20] sm:$0xf] }
  0xa6   :  { %2982 = vmatpush.bf16.msrb.mxu1 %v5471_v35  ;;  %2995 = vmatpush.bf16.msrb.mxu2 %v5599_v36  ;;  %v7936_v15 = vld [vmem:[#allocation7 + $0x44] sm:$0xf]  ;;  %v5679_v16 = vor.u32 %v8004_v8, %v5676_v9  ;;  %v5404_v17 = vld [vmem:[#allocation7 + $0x50] sm:$0xf0]  ;;  %v8318_v34 = vld [vmem:[#allocation7 + $0xc2c] sm:$0xf0] }
  0xa7   :  { %3008 = vmatpush.bf16.msrb.mxu3 %v5727_v43  ;;  %v7968_v21 = vld [vmem:[#allocation7 + $0x144] sm:$0xf]  ;;  %v5532_v23 = vld [vmem:[#allocation7 + $0x150] sm:$0xf0]  ;;  %v5407_v28 = vor.u32 %v7936_v15, %v5404_v17  ;;  %v6923_v46 = vor.u32 %v8318_v34, %v6922_v32  ;;  %v6906_v47 = vld [vmem:[#allocation7 + $0xc00] sm:$0xf] }
  0xa8   :  { %v8000_v24 = vld [vmem:[#allocation7 + $0x244] sm:$0xf]  ;;  %v5660_v26 = vld [vmem:[#allocation7 + $0x250] sm:$0xf0]  ;;  %v5535_v31 = vor.u32 %v7968_v21, %v5532_v23  ;;  %v8314_v48 = vld [vmem:[#allocation7 + $0xc0c] sm:$0xf0] }
  0xa9   :  { %2970 = vmatpush.bf16.msrb.mxu0 %v6987_v50  ;;  %v7932_v35 = vld [vmem:[#allocation7 + $0x24] sm:$0xf]  ;;  %v5663_v36 = vor.u32 %v8000_v24, %v5660_v26  ;;  %v5388_v37 = vld [vmem:[#allocation7 + $0x30] sm:$0xf0] }
  0xaa   :  { %2983 = vmatpush.bf16.msrb.mxu1 %v5455_v51  ;;  %2996 = vmatpush.bf16.msrb.mxu2 %v5583_v52  ;;  %v7964_v39 = vld [vmem:[#allocation7 + $0x124] sm:$0xf]  ;;  %v5516_v40 = vld [vmem:[#allocation7 + $0x130] sm:$0xf0]  ;;  %v5391_v50 = vor.u32 %v7932_v35, %v5388_v37 }
  0xab   :  { %3009 = vmatpush.bf16.msrb.mxu3 %v5711_v56  ;;  %v7996_v43 = vld [vmem:[#allocation7 + $0x224] sm:$0xf]  ;;  %v5644_v45 = vld [vmem:[#allocation7 + $0x230] sm:$0xf0]  ;;  %v5519_v51 = vor.u32 %v7964_v39, %v5516_v40 }
  0xac   :  { %v7928_v49 = vld [vmem:[#allocation7 + $0x4] sm:$0xf]  ;;  %v5372_v52 = vld [vmem:[#allocation7 + $0x10] sm:$0xf0]  ;;  %v5647_v55 = vor.u32 %v7996_v43, %v5644_v45 }
  0xad   :  { %2971 = vmatpush.bf16.msrb.mxu0 %v6971_v62  ;;  %v7960_v53 = vld [vmem:[#allocation7 + $0x104] sm:$0xf]  ;;  %v259_v54 = vld [vmem:[#allocation3 + $0x30] sm:$0xf]  ;;  %v6907_v62 = vor.u32 %v8314_v48, %v6906_v47  ;;  %v5375_v3 = vor.u32 %v7928_v49, %v5372_v52 }
  0xae   :  { %2984 = vmatpush.bf16.msrb.mxu1 %v5439_v63  ;;  %2997 = vmatpush.bf16.msrb.mxu2 %v5567_v0  ;;  %v5500_v56 = vld [vmem:[#allocation7 + $0x110] sm:$0xf0]  ;;  %v7992_v57 = vld [vmem:[#allocation7 + $0x204] sm:$0xf]  ;;  %v705_v2 = vunpack.c.l.b16 %v259_v54 }
  0xaf   :  { %3010 = vmatpush.bf16.msrb.mxu3 %v5695_v4  ;;  %v5628_v58 = vld [vmem:[#allocation7 + $0x210] sm:$0xf0]  ;;  %v8052_v59 = vld [vmem:[#allocation7 + $0x3e4] sm:$0xf]  ;;  %v5503_v4 = vor.u32 %v7960_v53, %v5500_v56 }
  0xb0   :  { %v5868_v60 = vld [vmem:[#allocation7 + $0x3f0] sm:$0xf0]  ;;  %v8084_v61 = vld [vmem:[#allocation7 + $0x4e4] sm:$0xf]  ;;  %v5631_v7 = vor.u32 %v7992_v57, %v5628_v58  ;;  %v9128_v15 = vpack.c.b16 %v705_v2, %v705_v2 }
  0xb1   :  { %2972 = vmatpush.bf16.msrb.mxu0 %v6955_v10  ;;  %v5996_v63 = vld [vmem:[#allocation7 + $0x4f0] sm:$0xf0]  ;;  %v8116_v0 = vld [vmem:[#allocation7 + $0x5e4] sm:$0xf]  ;;  %v5871_v8 = vor.u32 %v8052_v59, %v5868_v60 }
  0xb2   :  { %2985 = vmatpush.bf16.msrb.mxu1 %v5423_v11  ;;  %2998 = vmatpush.bf16.msrb.mxu2 %v5551_v12  ;;  %v6124_v1 = vld [vmem:[#allocation7 + $0x5f0] sm:$0xf0]  ;;  %v8148_v5 = vld [vmem:[#allocation7 + $0x6e4] sm:$0xf]  ;;  %v5999_v9 = vor.u32 %v8084_v61, %v5996_v63 }
  0xb3   :  { %3011 = vmatpush.bf16.msrb.mxu3 %v5679_v16  ;;  %v6252_v6 = vld [vmem:[#allocation7 + $0x6f0] sm:$0xf0]  ;;  %v6127_v10 = vor.u32 %v8116_v0, %v6124_v1  ;;  %v8048_v11 = vld [vmem:[#allocation7 + $0x3c4] sm:$0xf] }
  0xb4   :  { %v5852_v12 = vld [vmem:[#allocation7 + $0x3d0] sm:$0xf0]  ;;  %v8080_v13 = vld [vmem:[#allocation7 + $0x4c4] sm:$0xf]  ;;  %v6255_v14 = vor.u32 %v8148_v5, %v6252_v6 }
  0xb5   :  { %2973 = vmatpush.bf16.msrb.mxu0 %v6939_v27  ;;  %v5980_v16 = vld [vmem:[#allocation7 + $0x4d0] sm:$0xf0]  ;;  %v8112_v17 = vld [vmem:[#allocation7 + $0x5c4] sm:$0xf]  ;;  %v5855_v26 = vor.u32 %v8048_v11, %v5852_v12 }
  0xb6   :  { %2986 = vmatpush.bf16.msrb.mxu1 %v5407_v28  ;;  %2999 = vmatpush.bf16.msrb.mxu2 %v5535_v31  ;;  %v6108_v21 = vld [vmem:[#allocation7 + $0x5d0] sm:$0xf0]  ;;  %v8144_v23 = vld [vmem:[#allocation7 + $0x6c4] sm:$0xf]  ;;  %v5983_v27 = vor.u32 %v8080_v13, %v5980_v16 }
  0xb7   :  { %3012 = vmatpush.bf16.msrb.mxu3 %v5663_v36  ;;  %v6236_v24 = vld [vmem:[#allocation7 + $0x6d0] sm:$0xf0]  ;;  %v6111_v28 = vor.u32 %v8112_v17, %v6108_v21  ;;  %v8044_v31 = vld [vmem:[#allocation7 + $0x3a4] sm:$0xf] }
  0xb8   :  { %v5836_v32 = vld [vmem:[#allocation7 + $0x3b0] sm:$0xf0]  ;;  %v8076_v34 = vld [vmem:[#allocation7 + $0x4a4] sm:$0xf]  ;;  %v6239_v35 = vor.u32 %v8144_v23, %v6236_v24 }
  0xb9   :  { %2974 = vmatpush.bf16.msrb.mxu0 %v6923_v46  ;;  %v5964_v36 = vld [vmem:[#allocation7 + $0x4b0] sm:$0xf0]  ;;  %v8108_v37 = vld [vmem:[#allocation7 + $0x5a4] sm:$0xf]  ;;  %v5839_v45 = vor.u32 %v8044_v31, %v5836_v32 }
  0xba   :  { %2987 = vmatpush.bf16.msrb.mxu1 %v5391_v50  ;;  %3000 = vmatpush.bf16.msrb.mxu2 %v5519_v51  ;;  %v6092_v39 = vld [vmem:[#allocation7 + $0x5b0] sm:$0xf0]  ;;  %v8140_v40 = vld [vmem:[#allocation7 + $0x6a4] sm:$0xf]  ;;  %v5967_v46 = vor.u32 %v8076_v34, %v5964_v36 }
  0xbb   :  { %3013 = vmatpush.bf16.msrb.mxu3 %v5647_v55  ;;  %v6220_v43 = vld [vmem:[#allocation7 + $0x6b0] sm:$0xf0]  ;;  %v6095_v47 = vor.u32 %v8108_v37, %v6092_v39  ;;  %v8040_v48 = vld [vmem:[#allocation7 + $0x384] sm:$0xf] }
  0xbc   :  { %v5820_v49 = vld [vmem:[#allocation7 + $0x390] sm:$0xf0]  ;;  %v8072_v50 = vld [vmem:[#allocation7 + $0x484] sm:$0xf]  ;;  %v6223_v51 = vor.u32 %v8140_v40, %v6220_v43 }
  0xbd   :  { %2975 = vmatpush.bf16.msrb.mxu0 %v6907_v62  ;;  %v5948_v52 = vld [vmem:[#allocation7 + $0x490] sm:$0xf0]  ;;  %v8104_v53 = vld [vmem:[#allocation7 + $0x584] sm:$0xf]  ;;  %v5823_v57 = vor.u32 %v8040_v48, %v5820_v49 }
  0xbe   :  { %2988 = vmatpush.bf16.msrb.mxu1 %v5375_v3  ;;  %3001 = vmatpush.bf16.msrb.mxu2 %v5503_v4  ;;  %v6076_v54 = vld [vmem:[#allocation7 + $0x590] sm:$0xf0]  ;;  %v8136_v55 = vld [vmem:[#allocation7 + $0x684] sm:$0xf]  ;;  %v5951_v58 = vor.u32 %v8072_v50, %v5948_v52 }
  0xbf   :  { %3014 = vmatpush.bf16.msrb.mxu3 %v5631_v7  ;;  %v6204_v56 = vld [vmem:[#allocation7 + $0x690] sm:$0xf0]  ;;  %v6079_v59 = vor.u32 %v8104_v53, %v6076_v54  ;;  %v8036_v60 = vld [vmem:[#allocation7 + $0x364] sm:$0xf] }
  0xc0   :  { %2976 = vmatmul.bf16.vlgmr.msrb.gmra.mxu0 %v9128_v15  ;;  %v5804_v61 = vld [vmem:[#allocation7 + $0x370] sm:$0xf0]  ;;  %v8068_v62 = vld [vmem:[#allocation7 + $0x464] sm:$0xf]  ;;  %v6207_v63 = vor.u32 %v8136_v55, %v6204_v56 }
  0xc1   :  { %3020 = vmatpush.bf16.msra.mxu0 %v5871_v8  ;;  %3002 = vmatmul.bf16.vlgmr.msrb.gmra.mxu2 %v9098_v22  ;;  %v5932_v0 = vld [vmem:[#allocation7 + $0x470] sm:$0xf0]  ;;  %v8100_v1 = vld [vmem:[#allocation7 + $0x564] sm:$0xf]  ;;  %v5807_v5 = vor.u32 %v8036_v60, %v5804_v61 }
  0xc2   :  { %3033 = vmatpush.bf16.msra.mxu1 %v5999_v9  ;;  %3046 = vmatpush.bf16.msra.mxu2 %v6127_v10  ;;  %v6060_v2 = vld [vmem:[#allocation7 + $0x570] sm:$0xf0]  ;;  %v8132_v3 = vld [vmem:[#allocation7 + $0x664] sm:$0xf]  ;;  %v5935_v6 = vor.u32 %v8068_v62, %v5932_v0 }
  0xc3   :  { %3059 = vmatpush.bf16.msra.mxu3 %v6255_v14  ;;  %2989 = vmatmul.bf16.vlgmr.msrb.gmra.mxu1 %v9094_v19  ;;  %v6188_v4 = vld [vmem:[#allocation7 + $0x670] sm:$0xf0]  ;;  %v6063_v7 = vor.u32 %v8100_v1, %v6060_v2  ;;  %v8032_v8 = vld [vmem:[#allocation7 + $0x344] sm:$0xf] }
  0xc4   :  { %3015 = vmatmul.bf16.vlgmr.msrb.gmra.mxu3 %v9092_v18  ;;  %v5788_v9 = vld [vmem:[#allocation7 + $0x350] sm:$0xf0]  ;;  %v8064_v10 = vld [vmem:[#allocation7 + $0x444] sm:$0xf]  ;;  %v6191_v11 = vor.u32 %v8132_v3, %v6188_v4 }
  0xc5   :  { %3021 = vmatpush.bf16.msra.mxu0 %v5855_v26  ;;  %v5916_v12 = vld [vmem:[#allocation7 + $0x450] sm:$0xf0]  ;;  %v8096_v13 = vld [vmem:[#allocation7 + $0x544] sm:$0xf]  ;;  %v5791_v21 = vor.u32 %v8032_v8, %v5788_v9 }
  0xc6   :  { %3034 = vmatpush.bf16.msra.mxu1 %v5983_v27  ;;  %3047 = vmatpush.bf16.msra.mxu2 %v6111_v28  ;;  %v6044_v14 = vld [vmem:[#allocation7 + $0x550] sm:$0xf0]  ;;  %v8128_v16 = vld [vmem:[#allocation7 + $0x644] sm:$0xf]  ;;  %v5919_v23 = vor.u32 %v8064_v10, %v5916_v12 }
  0xc7   :  { %3060 = vmatpush.bf16.msra.mxu3 %v6239_v35  ;;  %v6172_v17 = vld [vmem:[#allocation7 + $0x650] sm:$0xf0]  ;;  %v6047_v24 = vor.u32 %v8096_v13, %v6044_v14  ;;  %v8028_v26 = vld [vmem:[#allocation7 + $0x324] sm:$0xf] }
  0xc8   :  { %v5772_v27 = vld [vmem:[#allocation7 + $0x330] sm:$0xf0]  ;;  %v8060_v28 = vld [vmem:[#allocation7 + $0x424] sm:$0xf]  ;;  %v6175_v31 = vor.u32 %v8128_v16, %v6172_v17 }
  0xc9   :  { %3022 = vmatpush.bf16.msra.mxu0 %v5839_v45  ;;  %v5900_v32 = vld [vmem:[#allocation7 + $0x430] sm:$0xf0]  ;;  %v8092_v34 = vld [vmem:[#allocation7 + $0x524] sm:$0xf]  ;;  %v5775_v39 = vor.u32 %v8028_v26, %v5772_v27 }
  0xca   :  { %3035 = vmatpush.bf16.msra.mxu1 %v5967_v46  ;;  %3048 = vmatpush.bf16.msra.mxu2 %v6095_v47  ;;  %v6028_v35 = vld [vmem:[#allocation7 + $0x530] sm:$0xf0]  ;;  %v8124_v36 = vld [vmem:[#allocation7 + $0x624] sm:$0xf]  ;;  %v5903_v45 = vor.u32 %v8060_v28, %v5900_v32 }
  0xcb   :  { %3061 = vmatpush.bf16.msra.mxu3 %v6223_v51  ;;  %v6156_v37 = vld [vmem:[#allocation7 + $0x630] sm:$0xf0]  ;;  %v8024_v40 = vld [vmem:[#allocation7 + $0x304] sm:$0xf]  ;;  %v6031_v46 = vor.u32 %v8092_v34, %v6028_v35 }
  0xcc   :  { %v5756_v43 = vld [vmem:[#allocation7 + $0x310] sm:$0xf0]  ;;  %v8056_v47 = vld [vmem:[#allocation7 + $0x404] sm:$0xf]  ;;  %v6159_v50 = vor.u32 %v8124_v36, %v6156_v37 }
  0xcd   :  { %3023 = vmatpush.bf16.msra.mxu0 %v5823_v57  ;;  %v5884_v48 = vld [vmem:[#allocation7 + $0x410] sm:$0xf0]  ;;  %v8088_v49 = vld [vmem:[#allocation7 + $0x504] sm:$0xf]  ;;  %v5759_v57 = vor.u32 %v8024_v40, %v5756_v43 }
  0xce   :  { %3036 = vmatpush.bf16.msra.mxu1 %v5951_v58  ;;  %3049 = vmatpush.bf16.msra.mxu2 %v6079_v59  ;;  %v6012_v51 = vld [vmem:[#allocation7 + $0x510] sm:$0xf0]  ;;  %v8120_v52 = vld [vmem:[#allocation7 + $0x604] sm:$0xf]  ;;  %v5887_v61 = vor.u32 %v8056_v47, %v5884_v48 }
  0xcf   :  { %3062 = vmatpush.bf16.msra.mxu3 %v6207_v63  ;;  %v6140_v53 = vld [vmem:[#allocation7 + $0x610] sm:$0xf0]  ;;  %v8180_v54 = vld [vmem:[#allocation7 + $0x7e4] sm:$0xf]  ;;  %v6015_v62 = vor.u32 %v8088_v49, %v6012_v51 }
  0xd0   :  { %v6380_v55 = vld [vmem:[#allocation7 + $0x7f0] sm:$0xf0]  ;;  %v8212_v56 = vld [vmem:[#allocation7 + $0x8e4] sm:$0xf]  ;;  %v6143_v1 = vor.u32 %v8120_v52, %v6140_v53 }
  0xd1   :  { %3024 = vmatpush.bf16.msra.mxu0 %v5807_v5  ;;  %v6508_v58 = vld [vmem:[#allocation7 + $0x8f0] sm:$0xf0]  ;;  %v8244_v59 = vld [vmem:[#allocation7 + $0x9e4] sm:$0xf]  ;;  %v6383_v2 = vor.u32 %v8180_v54, %v6380_v55 }
  0xd2   :  { %3037 = vmatpush.bf16.msra.mxu1 %v5935_v6  ;;  %3050 = vmatpush.bf16.msra.mxu2 %v6063_v7  ;;  %v6636_v60 = vld [vmem:[#allocation7 + $0x9f0] sm:$0xf0]  ;;  %v8276_v63 = vld [vmem:[#allocation7 + $0xae4] sm:$0xf]  ;;  %v6511_v3 = vor.u32 %v8212_v56, %v6508_v58 }
  0xd3   :  { %3063 = vmatpush.bf16.msra.mxu3 %v6191_v11  ;;  %v6764_v0 = vld [vmem:[#allocation7 + $0xaf0] sm:$0xf0]  ;;  %v6639_v4 = vor.u32 %v8244_v59, %v6636_v60  ;;  %v8176_v5 = vld [vmem:[#allocation7 + $0x7c4] sm:$0xf] }
  0xd4   :  { %v6364_v6 = vld [vmem:[#allocation7 + $0x7d0] sm:$0xf0]  ;;  %v8208_v7 = vld [vmem:[#allocation7 + $0x8c4] sm:$0xf]  ;;  %v6767_v8 = vor.u32 %v8276_v63, %v6764_v0 }
  0xd5   :  { %3025 = vmatpush.bf16.msra.mxu0 %v5791_v21  ;;  %v6492_v9 = vld [vmem:[#allocation7 + $0x8d0] sm:$0xf0]  ;;  %v8240_v10 = vld [vmem:[#allocation7 + $0x9c4] sm:$0xf]  ;;  %v6367_v14 = vor.u32 %v8176_v5, %v6364_v6 }
  0xd6   :  { %3038 = vmatpush.bf16.msra.mxu1 %v5919_v23  ;;  %3051 = vmatpush.bf16.msra.mxu2 %v6047_v24  ;;  %v6620_v11 = vld [vmem:[#allocation7 + $0x9d0] sm:$0xf0]  ;;  %v8272_v12 = vld [vmem:[#allocation7 + $0xac4] sm:$0xf]  ;;  %v6495_v16 = vor.u32 %v8208_v7, %v6492_v9 }
  0xd7   :  { %3064 = vmatpush.bf16.msra.mxu3 %v6175_v31  ;;  %v6748_v13 = vld [vmem:[#allocation7 + $0xad0] sm:$0xf0]  ;;  %v6623_v17 = vor.u32 %v8240_v10, %v6620_v11  ;;  %v8172_v21 = vld [vmem:[#allocation7 + $0x7a4] sm:$0xf] }
  0xd8   :  { %v6348_v23 = vld [vmem:[#allocation7 + $0x7b0] sm:$0xf0]  ;;  %v8204_v24 = vld [vmem:[#allocation7 + $0x8a4] sm:$0xf]  ;;  %v6751_v26 = vor.u32 %v8272_v12, %v6748_v13 }
  0xd9   :  { %3026 = vmatpush.bf16.msra.mxu0 %v5775_v39  ;;  %v6476_v27 = vld [vmem:[#allocation7 + $0x8b0] sm:$0xf0]  ;;  %v8236_v28 = vld [vmem:[#allocation7 + $0x9a4] sm:$0xf]  ;;  %v6351_v35 = vor.u32 %v8172_v21, %v6348_v23 }
  0xda   :  { %3039 = vmatpush.bf16.msra.mxu1 %v5903_v45  ;;  %3052 = vmatpush.bf16.msra.mxu2 %v6031_v46  ;;  %v6604_v31 = vld [vmem:[#allocation7 + $0x9b0] sm:$0xf0]  ;;  %v8268_v32 = vld [vmem:[#allocation7 + $0xaa4] sm:$0xf]  ;;  %v6479_v36 = vor.u32 %v8204_v24, %v6476_v27 }
  0xdb   :  { %3065 = vmatpush.bf16.msra.mxu3 %v6159_v50  ;;  %v6732_v34 = vld [vmem:[#allocation7 + $0xab0] sm:$0xf0]  ;;  %v6607_v37 = vor.u32 %v8236_v28, %v6604_v31  ;;  %v8168_v39 = vld [vmem:[#allocation7 + $0x784] sm:$0xf] }
  0xdc   :  { %v6332_v40 = vld [vmem:[#allocation7 + $0x790] sm:$0xf0]  ;;  %v8200_v43 = vld [vmem:[#allocation7 + $0x884] sm:$0xf]  ;;  %v6735_v45 = vor.u32 %v8268_v32, %v6732_v34  ;;  %v2834_v27 = vpop.f32.mrf.mxu1 }
  0xdd   :  { %3027 = vmatpush.bf16.msra.mxu0 %v5759_v57  ;;  %v6460_v46 = vld [vmem:[#allocation7 + $0x890] sm:$0xf0]  ;;  %v8232_v47 = vld [vmem:[#allocation7 + $0x984] sm:$0xf]  ;;  %v6335_v51 = vor.u32 %v8168_v39, %v6332_v40 }
  0xde   :  { %3040 = vmatpush.bf16.msra.mxu1 %v5887_v61  ;;  %3053 = vmatpush.bf16.msra.mxu2 %v6015_v62  ;;  %v6588_v48 = vld [vmem:[#allocation7 + $0x990] sm:$0xf0]  ;;  %v8264_v49 = vld [vmem:[#allocation7 + $0xa84] sm:$0xf]  ;;  %v6463_v53 = vor.u32 %v8200_v43, %v6460_v46  ;;  %v9138_v61 = vld [vmem:[#allocation8] sm:$0xf] }
  0xdf   :  { %3066 = vmatpush.bf16.msra.mxu3 %v6143_v1  ;;  %v6716_v50 = vld [vmem:[#allocation7 + $0xa90] sm:$0xf0]  ;;  %v8164_v52 = vld [vmem:[#allocation7 + $0x764] sm:$0xf]  ;;  %v6591_v54 = vor.u32 %v8232_v47, %v6588_v48  ;;  %v678_v6 = vperm.slane %v9138_v61, 0 }
  0xe0   :  { %3028 = vmatmul.bf16.vlgmr.msra.gmra.mxu0 %v9096_v20  ;;  %v6316_v55 = vld [vmem:[#allocation7 + $0x770] sm:$0xf0]  ;;  %v8196_v56 = vld [vmem:[#allocation7 + $0x864] sm:$0xf]  ;;  %v6719_v58 = vor.u32 %v8264_v49, %v6716_v50 }
  0xe1   :  { %3072 = vmatpush.bf16.msrb.mxu0 %v6383_v2  ;;  %3054 = vmatmul.bf16.vlgmr.msra.gmra.mxu2 %v9110_v44  ;;  %v6444_v57 = vld [vmem:[#allocation7 + $0x870] sm:$0xf0]  ;;  %v8228_v59 = vld [vmem:[#allocation7 + $0x964] sm:$0xf]  ;;  %v6319_v0 = vor.u32 %v8164_v52, %v6316_v55 }
  0xe2   :  { %3085 = vmatpush.bf16.msrb.mxu1 %v6511_v3  ;;  %3098 = vmatpush.bf16.msrb.mxu2 %v6639_v4  ;;  %v6572_v60 = vld [vmem:[#allocation7 + $0x970] sm:$0xf0]  ;;  %v8260_v62 = vld [vmem:[#allocation7 + $0xa64] sm:$0xf]  ;;  %v6447_v2 = vor.u32 %v8196_v56, %v6444_v57 }
  0xe3   :  { %3111 = vmatpush.bf16.msrb.mxu3 %v6767_v8  ;;  %3041 = vmatmul.bf16.vlgmr.msra.gmra.mxu1 %v9106_v41  ;;  %v6700_v63 = vld [vmem:[#allocation7 + $0xa70] sm:$0xf0]  ;;  %v8160_v1 = vld [vmem:[#allocation7 + $0x744] sm:$0xf]  ;;  %v6575_v3 = vor.u32 %v8228_v59, %v6572_v60 }
  0xe4   :  { %3067 = vmatmul.bf16.vlgmr.msra.gmra.mxu3 %v9104_v38  ;;  %v6300_v4 = vld [vmem:[#allocation7 + $0x750] sm:$0xf0]  ;;  %v8192_v5 = vld [vmem:[#allocation7 + $0x844] sm:$0xf]  ;;  %v6703_v7 = vor.u32 %v8260_v62, %v6700_v63  ;;  %v5490_v63 = vld [vmem:[#allocation7 + $0xe8] sm:$0xf] }
  0xe5   :  { %3073 = vmatpush.bf16.msrb.mxu0 %v6367_v14  ;;  %v6428_v8 = vld [vmem:[#allocation7 + $0x850] sm:$0xf0]  ;;  %v8224_v9 = vld [vmem:[#allocation7 + $0x944] sm:$0xf]  ;;  %v6303_v13 = vor.u32 %v8160_v1, %v6300_v4  ;;  %v2821_v14 = vpop.f32.mrf.mxu0 }
  0xe6   :  { %3086 = vmatpush.bf16.msrb.mxu1 %v6495_v16  ;;  %3099 = vmatpush.bf16.msrb.mxu2 %v6623_v17  ;;  %v6556_v10 = vld [vmem:[#allocation7 + $0x950] sm:$0xf0]  ;;  %v8256_v11 = vld [vmem:[#allocation7 + $0xa44] sm:$0xf]  ;;  %v6431_v16 = vor.u32 %v8192_v5, %v6428_v8  ;;  %v5618_v5 = vld [vmem:[#allocation7 + $0x1e8] sm:$0xf] }
  0xe7   :  { %3112 = vmatpush.bf16.msrb.mxu3 %v6751_v26  ;;  %v6684_v12 = vld [vmem:[#allocation7 + $0xa50] sm:$0xf0]  ;;  %v6559_v17 = vor.u32 %v8224_v9, %v6556_v10  ;;  %v8156_v21 = vld [vmem:[#allocation7 + $0x724] sm:$0xf]  ;;  %v2822_v26 = vadd.f32 %v2821_v14, %v678_v6  ;;  %v7991_v6 = vld [vmem:[#allocation7 + $0x1f4] sm:$0xf0] }
  0xe8   :  { %v6284_v23 = vld [vmem:[#allocation7 + $0x730] sm:$0xf0]  ;;  %v8188_v24 = vld [vmem:[#allocation7 + $0x824] sm:$0xf]  ;;  %v6687_v28 = vor.u32 %v8256_v11, %v6684_v12 }
  0xe9   :  { %3074 = vmatpush.bf16.msrb.mxu0 %v6351_v35  ;;  %v6412_v31 = vld [vmem:[#allocation7 + $0x830] sm:$0xf0]  ;;  %v8220_v32 = vld [vmem:[#allocation7 + $0x924] sm:$0xf]  ;;  %v6287_v39 = vor.u32 %v8156_v21, %v6284_v23  ;;  %v5474_v21 = vld [vmem:[#allocation7 + $0xc8] sm:$0xf] }
  0xea   :  { %3087 = vmatpush.bf16.msrb.mxu1 %v6479_v36  ;;  %3100 = vmatpush.bf16.msrb.mxu2 %v6607_v37  ;;  %v6540_v34 = vld [vmem:[#allocation7 + $0x930] sm:$0xf0]  ;;  %v8252_v35 = vld [vmem:[#allocation7 + $0xa24] sm:$0xf]  ;;  %v2835_v37 = vadd.f32 %v2834_v27, %v2822_v26  ;;  %v7955_v23 = vld [vmem:[#allocation7 + $0xd4] sm:$0xf0] }
  0xeb   :  { %3113 = vmatpush.bf16.msrb.mxu3 %v6735_v45  ;;  %v6668_v36 = vld [vmem:[#allocation7 + $0xa30] sm:$0xf0]  ;;  %v8152_v40 = vld [vmem:[#allocation7 + $0x704] sm:$0xf]  ;;  %v6415_v45 = vor.u32 %v8188_v24, %v6412_v31  ;;  %v6543_v46 = vor.u32 %v8220_v32, %v6540_v34  ;;  %v5602_v24 = vld [vmem:[#allocation7 + $0x1c8] sm:$0xf]  ;;  %v5475_v34 = vor.u32 %v7955_v23, %v5474_v21 }
  0xec   :  { %v6268_v43 = vld [vmem:[#allocation7 + $0x710] sm:$0xf0]  ;;  %v8184_v47 = vld [vmem:[#allocation7 + $0x804] sm:$0xf]  ;;  %v7987_v26 = vld [vmem:[#allocation7 + $0x1d4] sm:$0xf0] }
  0xed   :  { %3075 = vmatpush.bf16.msrb.mxu0 %v6335_v51  ;;  %v6396_v48 = vld [vmem:[#allocation7 + $0x810] sm:$0xf0]  ;;  %v8216_v49 = vld [vmem:[#allocation7 + $0x904] sm:$0xf]  ;;  %v6671_v51 = vor.u32 %v8252_v35, %v6668_v36  ;;  %v6271_v60 = vor.u32 %v8152_v40, %v6268_v43  ;;  %v5458_v43 = vld [vmem:[#allocation7 + $0xa8] sm:$0xf] }
  0xee   :  { %3088 = vmatpush.bf16.msrb.mxu1 %v6463_v53  ;;  %3101 = vmatpush.bf16.msrb.mxu2 %v6591_v54  ;;  %v6524_v52 = vld [vmem:[#allocation7 + $0x910] sm:$0xf0]  ;;  %v8248_v53 = vld [vmem:[#allocation7 + $0xa04] sm:$0xf] }
  0xef   :  { %3114 = vmatpush.bf16.msrb.mxu3 %v6719_v58  ;;  %v6652_v54 = vld [vmem:[#allocation7 + $0xa10] sm:$0xf0]  ;;  %v8308_v57 = vld [vmem:[#allocation7 + $0xbe4] sm:$0xf]  ;;  %v6527_v4 = vor.u32 %v8216_v49, %v6524_v52 }
  0xf0   :  { %v2847_v50 = vpop.f32.mrf.mxu2  ;;  %v2860_v56 = vpop.f32.mrf.mxu3  ;;  %v6892_v58 = vld [vmem:[#allocation7 + $0xbf0] sm:$0xf0]  ;;  %v8340_v59 = vld [vmem:[#allocation7 + $0xce4] sm:$0xf]  ;;  %v6655_v8 = vor.u32 %v8248_v53, %v6652_v54 }
  0xf1   :  { %3076 = vmatpush.bf16.msrb.mxu0 %v6319_v0  ;;  %v2848_v55 = vadd.f32 %v2847_v50, %v2835_v37  ;;  %v7020_v62 = vld [vmem:[#allocation7 + $0xcf0] sm:$0xf0]  ;;  %v7959_v0 = vld [vmem:[#allocation7 + $0xf4] sm:$0xf0]  ;;  %v6895_v9 = vor.u32 %v8308_v57, %v6892_v58  ;;  %v8304_v12 = vld [vmem:[#allocation7 + $0xbc4] sm:$0xf] }
  0xf2   :  { %3089 = vmatpush.bf16.msrb.mxu1 %v6447_v2  ;;  %3102 = vmatpush.bf16.msrb.mxu2 %v6575_v3  ;;  %v2823_v2 = vpop.f32.mrf.mxu0  ;;  %v6399_v3 = vor.u32 %v8184_v47, %v6396_v48  ;;  %v7023_v10 = vor.u32 %v8340_v59, %v7020_v62  ;;  %v5491_v11 = vor.u32 %v7959_v0, %v5490_v63  ;;  %v8336_v14 = vld [vmem:[#allocation7 + $0xcc4] sm:$0xf]  ;;  %v6860_v36 = vld [vmem:[#allocation7 + $0xbb0] sm:$0xf0]  ;;  %v7983_v47 = vld [vmem:[#allocation7 + $0x1b4] sm:$0xf0] }
  0xf3   :  { %3115 = vmatpush.bf16.msrb.mxu3 %v6703_v7  ;;  %v9141_v1 = vadd.f32 %v2860_v56, %v2848_v55  ;;  %v2836_v7 = vpop.f32.mrf.mxu1  ;;  %v8300_v35 = vld [vmem:[#allocation7 + $0xba4] sm:$0xf]  ;;  %v6988_v40 = vld [vmem:[#allocation7 + $0xcb0] sm:$0xf0]  ;;  %v5442_v56 = vld [vmem:[#allocation7 + $0x88] sm:$0xf] }
  0xf4   :  { %v8332_v37 = vld [vmem:[#allocation7 + $0xca4] sm:$0xf]  ;;  %v6863_v48 = vor.u32 %v8300_v35, %v6860_v36  ;;  %v6844_v52 = vld [vmem:[#allocation7 + $0xb90] sm:$0xf0]  ;;  %v7947_v57 = vld [vmem:[#allocation7 + $0x94] sm:$0xf0] }
  0xf5   :  { %3077 = vmatpush.bf16.msrb.mxu0 %v6303_v13  ;;  %v6876_v13 = vld [vmem:[#allocation7 + $0xbd0] sm:$0xf0]  ;;  %v6991_v49 = vor.u32 %v8332_v37, %v6988_v40  ;;  %v8328_v53 = vld [vmem:[#allocation7 + $0xc84] sm:$0xf]  ;;  %v5570_v58 = vld [vmem:[#allocation7 + $0x188] sm:$0xf]  ;;  %v5443_v0 = vor.u32 %v7947_v57, %v5442_v56 }
  0xf6   :  { %3090 = vmatpush.bf16.msrb.mxu1 %v6431_v16  ;;  %3103 = vmatpush.bf16.msrb.mxu2 %v6559_v17  ;;  %v5619_v16 = vor.u32 %v7991_v6, %v5618_v5  ;;  %v7004_v17 = vld [vmem:[#allocation7 + $0xcd0] sm:$0xf0]  ;;  %v7979_v59 = vld [vmem:[#allocation7 + $0x194] sm:$0xf0]  ;;  %v8292_v2 = vld [vmem:[#allocation7 + $0xb64] sm:$0xf] }
  0xf7   :  { %3116 = vmatpush.bf16.msrb.mxu3 %v6687_v28  ;;  %v6879_v28 = vor.u32 %v8304_v12, %v6876_v13  ;;  %v7007_v32 = vor.u32 %v8336_v14, %v7004_v17  ;;  %v6972_v55 = vld [vmem:[#allocation7 + $0xc90] sm:$0xf0]  ;;  %v5571_v7 = vor.u32 %v7979_v59, %v5570_v58  ;;  %v7975_v12 = vld [vmem:[#allocation7 + $0x174] sm:$0xf0]  ;;  %v8288_v21 = vld [vmem:[#allocation7 + $0xb44] sm:$0xf] }
  0xf8   :  { %v2849_v27 = vpop.f32.mrf.mxu2  ;;  %v2862_v31 = vpop.f32.mrf.mxu3  ;;  %v6975_v63 = vor.u32 %v8328_v53, %v6972_v55  ;;  %v6812_v23 = vld [vmem:[#allocation7 + $0xb50] sm:$0xf0]  ;;  %v5538_v35 = vld [vmem:[#allocation7 + $0x148] sm:$0xf]  ;;  %v7971_v36 = vld [vmem:[#allocation7 + $0x154] sm:$0xf0] }
  0xf9   :  { %3078 = vmatpush.bf16.msrb.mxu0 %v6287_v39  ;;  %v5603_v39 = vor.u32 %v7987_v26, %v5602_v24  ;;  %v8320_v24 = vld [vmem:[#allocation7 + $0xc44] sm:$0xf]  ;;  %v6940_v27 = vld [vmem:[#allocation7 + $0xc50] sm:$0xf0]  ;;  %v7939_v31 = vld [vmem:[#allocation7 + $0x54] sm:$0xf0]  ;;  %v6815_v37 = vor.u32 %v8288_v21, %v6812_v23 }
  0xfa   :  { %3091 = vmatpush.bf16.msrb.mxu1 %v6415_v45  ;;  %3104 = vmatpush.bf16.msrb.mxu2 %v6543_v46  ;;  %v7951_v45 = vld [vmem:[#allocation7 + $0xb4] sm:$0xf0]  ;;  %v5586_v46 = vld [vmem:[#allocation7 + $0x1a8] sm:$0xf]  ;;  %v8280_v57 = vld [vmem:[#allocation7 + $0xb04] sm:$0xf] }
  0xfb   :  { %3117 = vmatpush.bf16.msrb.mxu3 %v6671_v51  ;;  %v5459_v50 = vor.u32 %v7951_v45, %v5458_v43  ;;  %v8296_v51 = vld [vmem:[#allocation7 + $0xb84] sm:$0xf]  ;;  %v5587_v54 = vor.u32 %v7983_v47, %v5586_v46  ;;  %v6943_v43 = vor.u32 %v8320_v24, %v6940_v27  ;;  %v6796_v47 = vld [vmem:[#allocation7 + $0xb30] sm:$0xf0]  ;;  %v7935_v53 = vld [vmem:[#allocation7 + $0x34] sm:$0xf0] }
  0xfc   :  { %v2873_v62 = vpop.f32.mrf.mxu0  ;;  %v8284_v46 = vld [vmem:[#allocation7 + $0xb24] sm:$0xf]  ;;  %v7967_v55 = vld [vmem:[#allocation7 + $0x134] sm:$0xf0]  ;;  %v6780_v58 = vld [vmem:[#allocation7 + $0xb10] sm:$0xf0] }
  0xfd   :  { %3079 = vmatpush.bf16.msrb.mxu0 %v6271_v60  ;;  %v6847_v60 = vor.u32 %v8296_v51, %v6844_v52  ;;  %v2874_v5 = vadd.f32 %v2873_v62, %v9141_v1  ;;  %v6924_v51 = vld [vmem:[#allocation7 + $0xc30] sm:$0xf0]  ;;  %v5394_v52 = vld [vmem:[#allocation7 + $0x28] sm:$0xf]  ;;  %v6799_v56 = vor.u32 %v8284_v46, %v6796_v47  ;;  %v8312_v62 = vld [vmem:[#allocation7 + $0xc04] sm:$0xf] }
  0xfe   :  { %3092 = vmatpush.bf16.msrb.mxu1 %v6399_v3  ;;  %3105 = vmatpush.bf16.msrb.mxu2 %v6527_v4  ;;  %v6828_v3 = vld [vmem:[#allocation7 + $0xb70] sm:$0xf0]  ;;  %v8324_v4 = vld [vmem:[#allocation7 + $0xc64] sm:$0xf]  ;;  %v2886_v6 = vpop.f32.mrf.mxu1  ;;  %v6130_v21 = vld [vmem:[#allocation7 + $0x5e8] sm:$0xf] }
  0xff   :  { %3118 = vmatpush.bf16.msrb.mxu3 %v6655_v8  ;;  %v6956_v8 = vld [vmem:[#allocation7 + $0xc70] sm:$0xf0]  ;;  %v2887_v13 = vadd.f32 %v2886_v6, %v2874_v5  ;;  %v6831_v14 = vor.u32 %v8292_v2, %v6828_v3  ;;  %v5506_v5 = vld [vmem:[#allocation7 + $0x108] sm:$0xf]  ;;  %v7963_v6 = vld [vmem:[#allocation7 + $0x114] sm:$0xf0] }
 0x100   :  { %3080 = vmatmul.bf16.vlgmr.msrb.gmra.mxu0 %v9108_v42  ;;  %v8119_v23 = vld [vmem:[#allocation7 + $0x5f4] sm:$0xf0]  ;;  %v5507_v24 = vor.u32 %v7963_v6, %v5506_v5  ;;  %v6082_v6 = vld [vmem:[#allocation7 + $0x588] sm:$0xf] }
 0x101   :  { %3124 = vmatpush.bf16.msra.mxu0 %v6895_v9  ;;  %3106 = vmatmul.bf16.vlgmr.msrb.gmra.mxu2 %v9120_v30  ;;  %v5426_v9 = vld [vmem:[#allocation7 + $0x68] sm:$0xf] }
 0x102   :  { %3137 = vmatpush.bf16.msra.mxu1 %v7023_v10  ;;  %3150 = vmatpush.bf16.msra.mxu2 %v5491_v11  ;;  %v7943_v10 = vld [vmem:[#allocation7 + $0x74] sm:$0xf0]  ;;  %v5554_v11 = vld [vmem:[#allocation7 + $0x168] sm:$0xf] }
 0x103   :  { %3163 = vmatpush.bf16.msra.mxu3 %v5619_v16  ;;  %3093 = vmatmul.bf16.vlgmr.msrb.gmra.mxu1 %v9116_v25  ;;  %v6959_v16 = vor.u32 %v8324_v4, %v6956_v8  ;;  %v5427_v17 = vor.u32 %v7943_v10, %v5426_v9  ;;  %v5555_v1 = vor.u32 %v7975_v12, %v5554_v11  ;;  %v7931_v4 = vld [vmem:[#allocation7 + $0x14] sm:$0xf0]  ;;  %v5746_v8 = vld [vmem:[#allocation7 + $0x2e8] sm:$0xf] }
 0x104   :  { %3119 = vmatmul.bf16.vlgmr.msrb.gmra.mxu3 %v9118_v29  ;;  %v2899_v26 = vpop.f32.mrf.mxu2  ;;  %v2875_v40 = vpop.f32.mrf.mxu0  ;;  %v8023_v9 = vld [vmem:[#allocation7 + $0x2f4] sm:$0xf0]  ;;  %v5874_v10 = vld [vmem:[#allocation7 + $0x3e8] sm:$0xf]  ;;  %v6783_v11 = vor.u32 %v8280_v57, %v6780_v58 }
 0x105   :  { %3125 = vmatpush.bf16.msra.mxu0 %v6879_v28  ;;  %v5410_v28 = vld [vmem:[#allocation7 + $0x48] sm:$0xf]  ;;  %v8055_v12 = vld [vmem:[#allocation7 + $0x3f4] sm:$0xf0] }
 0x106   :  { %3138 = vmatpush.bf16.msra.mxu1 %v7007_v32  ;;  %3151 = vmatpush.bf16.msra.mxu2 %v5475_v34  ;;  %v2900_v32 = vadd.f32 %v2899_v26, %v2887_v13  ;;  %v5411_v45 = vor.u32 %v7939_v31, %v5410_v28  ;;  %v6002_v13 = vld [vmem:[#allocation7 + $0x4e8] sm:$0xf]  ;;  %v5747_v26 = vor.u32 %v8023_v9, %v5746_v8  ;;  %v8019_v31 = vld [vmem:[#allocation7 + $0x2d4] sm:$0xf0] }
 0x107   :  { %3164 = vmatpush.bf16.msra.mxu3 %v5603_v39  ;;  %v2912_v34 = vpop.f32.mrf.mxu3  ;;  %v5730_v28 = vld [vmem:[#allocation7 + $0x2c8] sm:$0xf] }
 0x108   :  { %v9148_v39 = vadd.f32 %v2912_v34, %v2900_v32  ;;  %v5858_v32 = vld [vmem:[#allocation7 + $0x3c8] sm:$0xf]  ;;  %v6131_v34 = vor.u32 %v8119_v23, %v6130_v21  ;;  %v8039_v23 = vld [vmem:[#allocation7 + $0x374] sm:$0xf0] }
 0x109   :  { %3126 = vmatpush.bf16.msra.mxu0 %v6863_v48  ;;  %v8316_v48 = vld [vmem:[#allocation7 + $0xc24] sm:$0xf]  ;;  %v6114_v40 = vld [vmem:[#allocation7 + $0x5c8] sm:$0xf] }
 0x10a   :  { %3139 = vmatpush.bf16.msra.mxu1 %v6991_v49  ;;  %3152 = vmatpush.bf16.msra.mxu2 %v5459_v50  ;;  %v2888_v49 = vpop.f32.mrf.mxu1  ;;  %v5539_v50 = vor.u32 %v7971_v36, %v5538_v35  ;;  %v6927_v59 = vor.u32 %v8316_v48, %v6924_v51  ;;  %v8051_v35 = vld [vmem:[#allocation7 + $0x3d4] sm:$0xf0]  ;;  %v5986_v36 = vld [vmem:[#allocation7 + $0x4c8] sm:$0xf] }
 0x10b   :  { %3165 = vmatpush.bf16.msra.mxu3 %v5587_v54  ;;  %v5522_v54 = vld [vmem:[#allocation7 + $0x128] sm:$0xf]  ;;  %v5859_v46 = vor.u32 %v8051_v35, %v5858_v32  ;;  %v8015_v49 = vld [vmem:[#allocation7 + $0x2b4] sm:$0xf0] }
 0x10c   :  { %v2901_v2 = vpop.f32.mrf.mxu2  ;;  %v5523_v3 = vor.u32 %v7967_v55, %v5522_v54  ;;  %v5714_v48 = vld [vmem:[#allocation7 + $0x2a8] sm:$0xf]  ;;  %v8079_v54 = vld [vmem:[#allocation7 + $0x4b4] sm:$0xf0] }
 0x10d   :  { %3127 = vmatpush.bf16.msra.mxu0 %v6847_v60  ;;  %v5395_v60 = vor.u32 %v7935_v53, %v5394_v52  ;;  %v8047_v52 = vld [vmem:[#allocation7 + $0x3b4] sm:$0xf0]  ;;  %v5970_v53 = vld [vmem:[#allocation7 + $0x4a8] sm:$0xf]  ;;  %v5715_v57 = vor.u32 %v8015_v49, %v5714_v48 }
 0x10e   :  { %3140 = vmatpush.bf16.msra.mxu1 %v6975_v63  ;;  %3153 = vmatpush.bf16.msra.mxu2 %v5443_v0  ;;  %v6908_v63 = vld [vmem:[#allocation7 + $0xc10] sm:$0xf0]  ;;  %v5378_v0 = vld [vmem:[#allocation7 + $0x8] sm:$0xf]  ;;  %v8043_v2 = vld [vmem:[#allocation7 + $0x394] sm:$0xf0] }
 0x10f   :  { %3166 = vmatpush.bf16.msra.mxu3 %v5571_v7  ;;  %v2914_v7 = vpop.f32.mrf.mxu3  ;;  %v6098_v55 = vld [vmem:[#allocation7 + $0x5a8] sm:$0xf]  ;;  %v8099_v49 = vld [vmem:[#allocation7 + $0x554] sm:$0xf0] }
 0x110   :  { %v8107_v7 = vld [vmem:[#allocation7 + $0x594] sm:$0xf0]  ;;  %v5666_v32 = vld [vmem:[#allocation7 + $0x248] sm:$0xf] }
 0x111   :  { %3128 = vmatpush.bf16.msra.mxu0 %v6831_v14  ;;  %v8087_v14 = vld [vmem:[#allocation7 + $0x4f4] sm:$0xf0]  ;;  %v5794_v35 = vld [vmem:[#allocation7 + $0x348] sm:$0xf] }
 0x112   :  { %3141 = vmatpush.bf16.msra.mxu1 %v6959_v16  ;;  %3154 = vmatpush.bf16.msra.mxu2 %v5427_v17  ;;  %v6911_v16 = vor.u32 %v8312_v62, %v6908_v63  ;;  %v5379_v17 = vor.u32 %v7931_v4, %v5378_v0  ;;  %v6003_v27 = vor.u32 %v8087_v14, %v6002_v13  ;;  %v8011_v62 = vld [vmem:[#allocation7 + $0x294] sm:$0xf0]  ;;  %v5826_v63 = vld [vmem:[#allocation7 + $0x388] sm:$0xf] }
 0x113   :  { %3167 = vmatpush.bf16.msra.mxu3 %v5555_v1  ;;  %v5875_v1 = vor.u32 %v8055_v12, %v5874_v10  ;;  %v8075_v4 = vld [vmem:[#allocation7 + $0x494] sm:$0xf0]  ;;  %v5682_v13 = vld [vmem:[#allocation7 + $0x268] sm:$0xf] }
 0x114   :  { %v8007_v14 = vld [vmem:[#allocation7 + $0x274] sm:$0xf0]  ;;  %v6050_v48 = vld [vmem:[#allocation7 + $0x548] sm:$0xf] }
 0x115   :  { %3129 = vmatpush.bf16.msra.mxu0 %v6815_v37  ;;  %v8083_v37 = vld [vmem:[#allocation7 + $0x4d4] sm:$0xf0] }
 0x116   :  { %3142 = vmatpush.bf16.msra.mxu1 %v6943_v43  ;;  %3155 = vmatpush.bf16.msra.mxu2 %v5411_v45  ;;  %v8115_v43 = vld [vmem:[#allocation7 + $0x5d4] sm:$0xf0]  ;;  %v5731_v45 = vor.u32 %v8019_v31, %v5730_v28  ;;  %v5987_v47 = vor.u32 %v8083_v37, %v5986_v36  ;;  %v5683_v28 = vor.u32 %v8007_v14, %v5682_v13  ;;  %v6018_v13 = vld [vmem:[#allocation7 + $0x508] sm:$0xf] }
 0x117   :  { %3168 = vmatpush.bf16.msra.mxu3 %v5539_v50  ;;  %v5842_v50 = vld [vmem:[#allocation7 + $0x3a8] sm:$0xf]  ;;  %v6115_v51 = vor.u32 %v8115_v43, %v6114_v40  ;;  %v8035_v40 = vld [vmem:[#allocation7 + $0x354] sm:$0xf0] }
 0x118   :  { %v5843_v58 = vor.u32 %v8047_v52, %v5842_v50  ;;  %v5922_v43 = vld [vmem:[#allocation7 + $0x448] sm:$0xf]  ;;  %v8091_v14 = vld [vmem:[#allocation7 + $0x514] sm:$0xf0] }
 0x119   :  { %3130 = vmatpush.bf16.msra.mxu0 %v6799_v56  ;;  %v8111_v56 = vld [vmem:[#allocation7 + $0x5b4] sm:$0xf0] }
 0x11a   :  { %3143 = vmatpush.bf16.msra.mxu1 %v6927_v59  ;;  %3156 = vmatpush.bf16.msra.mxu2 %v5395_v60  ;;  %v5971_v59 = vor.u32 %v8079_v54, %v5970_v53  ;;  %v5698_v60 = vld [vmem:[#allocation7 + $0x288] sm:$0xf]  ;;  %v6099_v0 = vor.u32 %v8111_v56, %v6098_v55  ;;  %v5795_v54 = vor.u32 %v8035_v40, %v5794_v35 }
 0x11b   :  { %3169 = vmatpush.bf16.msra.mxu3 %v5523_v3  ;;  %v5954_v3 = vld [vmem:[#allocation7 + $0x488] sm:$0xf]  ;;  %v5699_v9 = vor.u32 %v8011_v62, %v5698_v60  ;;  %v8031_v60 = vld [vmem:[#allocation7 + $0x334] sm:$0xf0]  ;;  %v6019_v35 = vor.u32 %v8091_v14, %v6018_v13 }
 0x11c   :  { %v2925_v5 = vpop.f32.mrf.mxu0  ;;  %v5955_v12 = vor.u32 %v8075_v4, %v5954_v3  ;;  %v5650_v56 = vld [vmem:[#allocation7 + $0x228] sm:$0xf]  ;;  %v8203_v13 = vld [vmem:[#allocation7 + $0x894] sm:$0xf0] }
 0x11d   :  { %3131 = vmatpush.bf16.msra.mxu0 %v6783_v11  ;;  %v2926_v8 = vadd.f32 %v2925_v5, %v9148_v39  ;;  %v5827_v11 = vor.u32 %v8043_v2, %v5826_v63  ;;  %v5906_v62 = vld [vmem:[#allocation7 + $0x428] sm:$0xf]  ;;  %v8063_v63 = vld [vmem:[#allocation7 + $0x434] sm:$0xf0] }
 0x11e   :  { %3144 = vmatpush.bf16.msra.mxu1 %v6911_v16  ;;  %3157 = vmatpush.bf16.msra.mxu2 %v5379_v17  ;;  %v2938_v10 = vpop.f32.mrf.mxu1  ;;  %v5810_v16 = vld [vmem:[#allocation7 + $0x368] sm:$0xf]  ;;  %v6083_v17 = vor.u32 %v8107_v7, %v6082_v6  ;;  %v8095_v2 = vld [vmem:[#allocation7 + $0x534] sm:$0xf0]  ;;  %v5907_v7 = vor.u32 %v8063_v63, %v5906_v62 }
 0x11f   :  { %3170 = vmatpush.bf16.msra.mxu3 %v5507_v24  ;;  %v2939_v21 = vadd.f32 %v2938_v10, %v2926_v8  ;;  %v5938_v24 = vld [vmem:[#allocation7 + $0x468] sm:$0xf]  ;;  %v5811_v39 = vor.u32 %v8039_v23, %v5810_v16  ;;  %v7995_v5 = vld [vmem:[#allocation7 + $0x214] sm:$0xf0] }
 0x120   :  { %3132 = vmatmul.bf16.vlgmr.msra.gmra.mxu0 %v9122_v33  ;;  %v5634_v4 = vld [vmem:[#allocation7 + $0x208] sm:$0xf]  ;;  %v8175_v62 = vld [vmem:[#allocation7 + $0x7b4] sm:$0xf0] }
 0x121   :  { %3176 = vmatpush.bf16.msrb.mxu0 %v5747_v26  ;;  %3145 = vmatmul.bf16.vlgmr.msra.gmra.mxu1 %v9128_v15  ;;  %v8071_v26 = vld [vmem:[#allocation7 + $0x474] sm:$0xf0]  ;;  %v5762_v8 = vld [vmem:[#allocation7 + $0x308] sm:$0xf] }
 0x122   :  { %3189 = vmatpush.bf16.msrb.mxu1 %v5875_v1  ;;  %3202 = vmatpush.bf16.msrb.mxu2 %v6003_v27  ;;  %v6066_v1 = vld [vmem:[#allocation7 + $0x568] sm:$0xf]  ;;  %v8103_v27 = vld [vmem:[#allocation7 + $0x574] sm:$0xf0]  ;;  %v5939_v31 = vor.u32 %v8071_v26, %v5938_v24  ;;  %v5635_v26 = vor.u32 %v7995_v5, %v5634_v4 }
 0x123   :  { %3215 = vmatpush.bf16.msrb.mxu3 %v6131_v34  ;;  %3158 = vmatmul.bf16.vlgmr.msra.gmra.mxu2 %v9094_v19  ;;  %v8003_v34 = vld [vmem:[#allocation7 + $0x254] sm:$0xf0]  ;;  %v6067_v36 = vor.u32 %v8103_v27, %v6066_v1  ;;  %v5890_v10 = vld [vmem:[#allocation7 + $0x408] sm:$0xf] }
 0x124   :  { %3171 = vmatmul.bf16.vlgmr.msra.gmra.mxu3 %v9098_v22  ;;  %v2927_v50 = vpop.f32.mrf.mxu0  ;;  %v6386_v23 = vld [vmem:[#allocation7 + $0x7e8] sm:$0xf]  ;;  %v8183_v1 = vld [vmem:[#allocation7 + $0x7f4] sm:$0xf0] }
 0x125   :  { %3177 = vmatpush.bf16.msrb.mxu0 %v5731_v45  ;;  %v8067_v45 = vld [vmem:[#allocation7 + $0x454] sm:$0xf0]  ;;  %v6514_v27 = vld [vmem:[#allocation7 + $0x8e8] sm:$0xf] }
 0x126   :  { %3190 = vmatpush.bf16.msrb.mxu1 %v5859_v46  ;;  %3203 = vmatpush.bf16.msrb.mxu2 %v5987_v47  ;;  %v2951_v37 = vpop.f32.mrf.mxu2  ;;  %v2940_v52 = vpop.f32.mrf.mxu1  ;;  %v5923_v55 = vor.u32 %v8067_v45, %v5922_v43  ;;  %v6242_v43 = vld [vmem:[#allocation7 + $0x6c8] sm:$0xf]  ;;  %v8147_v45 = vld [vmem:[#allocation7 + $0x6d4] sm:$0xf0] }
 0x127   :  { %3216 = vmatpush.bf16.msrb.mxu3 %v6115_v51  ;;  %v2952_v46 = vadd.f32 %v2951_v37, %v2939_v21  ;;  %v2964_v47 = vpop.f32.mrf.mxu3  ;;  %v5667_v51 = vor.u32 %v8003_v34, %v5666_v32  ;;  %v8151_v21 = vld [vmem:[#allocation7 + $0x6f4] sm:$0xf0]  ;;  %v6642_v32 = vld [vmem:[#allocation7 + $0x9e8] sm:$0xf]  ;;  %v6387_v37 = vor.u32 %v8183_v1, %v6386_v23 }
 0x128   :  { %v8247_v34 = vld [vmem:[#allocation7 + $0x9f4] sm:$0xf0]  ;;  %v6482_v63 = vld [vmem:[#allocation7 + $0x8a8] sm:$0xf] }
 0x129   :  { %3178 = vmatpush.bf16.msrb.mxu0 %v5715_v57  ;;  %v9155_v53 = vadd.f32 %v2964_v47, %v2952_v46  ;;  %v7999_v57 = vld [vmem:[#allocation7 + $0x234] sm:$0xf0]  ;;  %v6370_v46 = vld [vmem:[#allocation7 + $0x7c8] sm:$0xf]  ;;  %v6643_v47 = vor.u32 %v8247_v34, %v6642_v32 }
 0x12a   :  { %3191 = vmatpush.bf16.msrb.mxu1 %v5843_v58  ;;  %3204 = vmatpush.bf16.msrb.mxu2 %v5971_v59  ;;  %v5778_v58 = vld [vmem:[#allocation7 + $0x328] sm:$0xf]  ;;  %v6051_v59 = vor.u32 %v8099_v49, %v6050_v48  ;;  %v5651_v3 = vor.u32 %v7999_v57, %v5650_v56  ;;  %v8179_v48 = vld [vmem:[#allocation7 + $0x7d4] sm:$0xf0] }
 0x12b   :  { %3217 = vmatpush.bf16.msrb.mxu3 %v6099_v0  ;;  %v6034_v0 = vld [vmem:[#allocation7 + $0x528] sm:$0xf]  ;;  %v5779_v6 = vor.u32 %v8031_v60, %v5778_v58  ;;  %v8211_v50 = vld [vmem:[#allocation7 + $0x8d4] sm:$0xf0] }
 0x12c   :  { %v6498_v49 = vld [vmem:[#allocation7 + $0x8c8] sm:$0xf]  ;;  %v8243_v52 = vld [vmem:[#allocation7 + $0x9d4] sm:$0xf0] }
 0x12d   :  { %3179 = vmatpush.bf16.msrb.mxu0 %v5699_v9  ;;  %v8027_v9 = vld [vmem:[#allocation7 + $0x314] sm:$0xf0]  ;;  %v6499_v56 = vor.u32 %v8211_v50, %v6498_v49  ;;  %v6226_v57 = vld [vmem:[#allocation7 + $0x6a8] sm:$0xf] }
 0x12e   :  { %3192 = vmatpush.bf16.msrb.mxu1 %v5827_v11  ;;  %3205 = vmatpush.bf16.msrb.mxu2 %v5955_v12  ;;  %v6035_v11 = vor.u32 %v8095_v2, %v6034_v0  ;;  %v8059_v12 = vld [vmem:[#allocation7 + $0x414] sm:$0xf0]  ;;  %v2953_v16 = vpop.f32.mrf.mxu2  ;;  %v6610_v2 = vld [vmem:[#allocation7 + $0x9a8] sm:$0xf] }
 0x12f   :  { %3218 = vmatpush.bf16.msrb.mxu3 %v6083_v17  ;;  %v6258_v17 = vld [vmem:[#allocation7 + $0x6e8] sm:$0xf]  ;;  %v2966_v24 = vpop.f32.mrf.mxu3  ;;  %v8143_v58 = vld [vmem:[#allocation7 + $0x6b4] sm:$0xf0] }
 0x130   :  { %v8207_v0 = vld [vmem:[#allocation7 + $0x8b4] sm:$0xf0]  ;;  %v6227_v4 = vor.u32 %v8143_v58, %v6226_v57  ;;  %v6594_v16 = vld [vmem:[#allocation7 + $0x988] sm:$0xf] }
 0x131   :  { %3180 = vmatpush.bf16.msrb.mxu0 %v5683_v28  ;;  %v8215_v28 = vld [vmem:[#allocation7 + $0x8f4] sm:$0xf0] }
 0x132   :  { %3193 = vmatpush.bf16.msrb.mxu1 %v5811_v39  ;;  %3206 = vmatpush.bf16.msrb.mxu2 %v5939_v31  ;;  %v5763_v39 = vor.u32 %v8027_v9, %v5762_v8  ;;  %v5891_v31 = vor.u32 %v8059_v12, %v5890_v10  ;;  %v6515_v40 = vor.u32 %v8215_v28, %v6514_v27  ;;  %v8139_v8 = vld [vmem:[#allocation7 + $0x694] sm:$0xf0]  ;;  %v6338_v9 = vld [vmem:[#allocation7 + $0x788] sm:$0xf] }
 0x133   :  { %3219 = vmatpush.bf16.msrb.mxu3 %v6067_v36  ;;  %v6259_v36 = vor.u32 %v8151_v21, %v6258_v17  ;;  %v6466_v12 = vld [vmem:[#allocation7 + $0x888] sm:$0xf]  ;;  %v8235_v17 = vld [vmem:[#allocation7 + $0x994] sm:$0xf0]  ;;  %v679_v21 = vperm.slane %v9138_v61, 1 }
 0x134   :  { %v6467_v1 = vor.u32 %v8203_v13, %v6466_v12  ;;  %v6194_v27 = vld [vmem:[#allocation7 + $0x668] sm:$0xf]  ;;  %v8135_v28 = vld [vmem:[#allocation7 + $0x674] sm:$0xf0]  ;;  %v6595_v32 = vor.u32 %v8235_v17, %v6594_v16 }
 0x135   :  { %3181 = vmatpush.bf16.msrb.mxu0 %v5667_v51  ;;  %v6626_v51 = vld [vmem:[#allocation7 + $0x9c8] sm:$0xf]  ;;  %v8167_v34 = vld [vmem:[#allocation7 + $0x774] sm:$0xf0] }
 0x136   :  { %3194 = vmatpush.bf16.msrb.mxu1 %v5795_v54  ;;  %3207 = vmatpush.bf16.msrb.mxu2 %v5923_v55  ;;  %v6243_v54 = vor.u32 %v8147_v45, %v6242_v43  ;;  %v6371_v55 = vor.u32 %v8179_v48, %v6370_v46  ;;  %v6627_v60 = vor.u32 %v8243_v52, %v6626_v51  ;;  %v8231_v61 = vld [vmem:[#allocation7 + $0x974] sm:$0xf0]  ;;  %v6178_v46 = vld [vmem:[#allocation7 + $0x648] sm:$0xf] }
 0x137   :  { %3220 = vmatpush.bf16.msrb.mxu3 %v6051_v59  ;;  %v6354_v59 = vld [vmem:[#allocation7 + $0x7a8] sm:$0xf]  ;;  %v8163_v50 = vld [vmem:[#allocation7 + $0x754] sm:$0xf0] }
 0x138   :  { %v6355_v5 = vor.u32 %v8175_v62, %v6354_v59  ;;  %v6306_v48 = vld [vmem:[#allocation7 + $0x748] sm:$0xf]  ;;  %v8195_v52 = vld [vmem:[#allocation7 + $0x854] sm:$0xf0] }
 0x139   :  { %3182 = vmatpush.bf16.msrb.mxu0 %v5651_v3  ;;  %v8239_v3 = vld [vmem:[#allocation7 + $0x9b4] sm:$0xf0]  ;;  %v6434_v51 = vld [vmem:[#allocation7 + $0x848] sm:$0xf]  ;;  %v6307_v62 = vor.u32 %v8163_v50, %v6306_v48 }
 0x13a   :  { %3195 = vmatpush.bf16.msrb.mxu1 %v5779_v6  ;;  %3208 = vmatpush.bf16.msrb.mxu2 %v5907_v7  ;;  %v6483_v6 = vor.u32 %v8207_v0, %v6482_v63  ;;  %v6210_v7 = vld [vmem:[#allocation7 + $0x688] sm:$0xf]  ;;  %v6611_v10 = vor.u32 %v8239_v3, %v6610_v2  ;;  %v8227_v57 = vld [vmem:[#allocation7 + $0x954] sm:$0xf0]  ;;  %v6435_v63 = vor.u32 %v8195_v52, %v6434_v51 }
 0x13b   :  { %3221 = vmatpush.bf16.msrb.mxu3 %v6035_v11  ;;  %v8171_v11 = vld [vmem:[#allocation7 + $0x794] sm:$0xf0]  ;;  %v6211_v24 = vor.u32 %v8139_v8, %v6210_v7  ;;  %v6162_v0 = vld [vmem:[#allocation7 + $0x628] sm:$0xf] }
 0x13c   :  { %v8127_v2 = vld [vmem:[#allocation7 + $0x634] sm:$0xf0]  ;;  %v6290_v3 = vld [vmem:[#allocation7 + $0x728] sm:$0xf] }
 0x13d   :  { %3183 = vmatpush.bf16.msrb.mxu0 %v5635_v26  ;;  %v2977_v14 = vpop.f32.mrf.mxu0  ;;  %v6339_v26 = vor.u32 %v8171_v11, %v6338_v9  ;;  %v8159_v7 = vld [vmem:[#allocation7 + $0x734] sm:$0xf0]  ;;  %v6418_v8 = vld [vmem:[#allocation7 + $0x828] sm:$0xf]  ;;  %v6163_v12 = vor.u32 %v8127_v2, %v6162_v0 }
 0x13e   :  { %3196 = vmatpush.bf16.msrb.mxu1 %v5763_v39  ;;  %3209 = vmatpush.bf16.msrb.mxu2 %v5891_v31  ;;  %v9163_v23 = vadd.f32 %v2977_v14, %v9155_v53  ;;  %v6322_v39 = vld [vmem:[#allocation7 + $0x768] sm:$0xf]  ;;  %v6195_v53 = vor.u32 %v8135_v28, %v6194_v27  ;;  %v8191_v9 = vld [vmem:[#allocation7 + $0x834] sm:$0xf0]  ;;  %v6291_v16 = vor.u32 %v8159_v7, %v6290_v3 }
 0x13f   :  { %3222 = vmatpush.bf16.msrb.mxu3 %v6019_v35  ;;  %v6450_v35 = vld [vmem:[#allocation7 + $0x868] sm:$0xf]  ;;  %v6323_v43 = vor.u32 %v8167_v34, %v6322_v39  ;;  %v8223_v11 = vld [vmem:[#allocation7 + $0x934] sm:$0xf0]  ;;  %v6419_v17 = vor.u32 %v8191_v9, %v6418_v8 }
 0x140   :  { %3184 = vmatmul.bf16.vlgmr.msrb.gmra.mxu0 %v9092_v18  ;;  %v2990_v31 = vpop.f32.mrf.mxu1  ;;  %v6146_v13 = vld [vmem:[#allocation7 + $0x608] sm:$0xf]  ;;  %v8123_v14 = vld [vmem:[#allocation7 + $0x614] sm:$0xf0]  ;;  %vm3488_vm0 = vcmp.gt.f32.partialorder %v9163_v23, 0.0 }
 0x141   :  { %3228 = vmatpush.bf16.msra.mxu0 %v6259_v36  ;;  %3210 = vmatmul.bf16.vlgmr.msrb.gmra.mxu2 %v9106_v41  ;;  %v8199_v36 = vld [vmem:[#allocation7 + $0x874] sm:$0xf0]  ;;  %v6530_v28 = vld [vmem:[#allocation7 + $0x908] sm:$0xf] }
 0x142   :  { %3241 = vmatpush.bf16.msra.mxu1 %v6387_v37  ;;  %3254 = vmatpush.bf16.msra.mxu2 %v6515_v40  ;;  %v6578_v37 = vld [vmem:[#allocation7 + $0x968] sm:$0xf]  ;;  %v2991_v40 = vadd.f32 %v2990_v31, %v679_v21  ;;  %v6451_v45 = vor.u32 %v8199_v36, %v6450_v35  ;;  %v8187_v27 = vld [vmem:[#allocation7 + $0x814] sm:$0xf0] }
 0x143   :  { %3267 = vmatpush.bf16.msra.mxu3 %v6643_v47  ;;  %3197 = vmatmul.bf16.vlgmr.msrb.gmra.mxu1 %v9096_v20  ;;  %v8131_v47 = vld [vmem:[#allocation7 + $0x654] sm:$0xf0]  ;;  %v6579_v49 = vor.u32 %v8231_v61, %v6578_v37  ;;  %v6274_v21 = vld [vmem:[#allocation7 + $0x708] sm:$0xf]  ;;  %v6147_v37 = vor.u32 %v8123_v14, %v6146_v13 }
 0x144   :  { %3223 = vmatmul.bf16.vlgmr.msrb.gmra.mxu3 %v9110_v44  ;;  %v8219_v39 = vld [vmem:[#allocation7 + $0x914] sm:$0xf0]  ;;  %v6770_v34 = vld [vmem:[#allocation7 + $0xae8] sm:$0xf] }
 0x145   :  { %3229 = vmatpush.bf16.msra.mxu0 %v6243_v54  ;;  %v3003_v54 = vpop.f32.mrf.mxu2  ;;  %v2979_v59 = vpop.f32.mrf.mxu0  ;;  %v8279_v35 = vld [vmem:[#allocation7 + $0xaf4] sm:$0xf0]  ;;  %v6898_v36 = vld [vmem:[#allocation7 + $0xbe8] sm:$0xf]  ;;  %v6531_v48 = vor.u32 %v8219_v39, %v6530_v28  ;;  %v7945_v39 = vld [vmem:[#allocation7 + $0x8c] sm:$0xf] }
 0x146   :  { %3242 = vmatpush.bf16.msra.mxu1 %v6371_v55  ;;  %3255 = vmatpush.bf16.msra.mxu2 %v6499_v56  ;;  %v6562_v56 = vld [vmem:[#allocation7 + $0x948] sm:$0xf]  ;;  %v3004_v58 = vadd.f32 %v3003_v54, %v2991_v40  ;;  %v8311_v61 = vld [vmem:[#allocation7 + $0xbf4] sm:$0xf0] }
 0x147   :  { %3268 = vmatpush.bf16.msra.mxu3 %v6627_v60  ;;  %v3016_v55 = vpop.f32.mrf.mxu3  ;;  %v6179_v60 = vor.u32 %v8131_v47, %v6178_v46  ;;  %v7026_v40 = vld [vmem:[#allocation7 + $0xce8] sm:$0xf]  ;;  %v7957_v46 = vld [vmem:[#allocation7 + $0xec] sm:$0xf]  ;;  %v5492_v47 = vld [vmem:[#allocation7 + $0xf8] sm:$0xf0]  ;;  %v6899_v50 = vor.u32 %v8311_v61, %v6898_v36 }
 0x148   :  { %v6754_v52 = vld [vmem:[#allocation7 + $0xac8] sm:$0xf]  ;;  %v8275_v54 = vld [vmem:[#allocation7 + $0xad4] sm:$0xf0] }
 0x149   :  { %3230 = vmatpush.bf16.msra.mxu0 %v6227_v4  ;;  %v9165_v4 = vadd.f32 %v3016_v55, %v3004_v58  ;;  %v6882_v55 = vld [vmem:[#allocation7 + $0xbc8] sm:$0xf]  ;;  %v8339_v59 = vld [vmem:[#allocation7 + $0xcd4] sm:$0xf0] }
 0x14a   :  { %3243 = vmatpush.bf16.msra.mxu1 %v6355_v5  ;;  %3256 = vmatpush.bf16.msra.mxu2 %v6483_v6  ;;  %v2992_v5 = vpop.f32.mrf.mxu1  ;;  %v6563_v6 = vor.u32 %v8227_v57, %v6562_v56  ;;  %v5495_v56 = vor.u32 %v7957_v46, %v5492_v47  ;;  %v8307_v57 = vld [vmem:[#allocation7 + $0xbd4] sm:$0xf0]  ;;  %v7010_v58 = vld [vmem:[#allocation7 + $0xcc8] sm:$0xf] }
 0x14b   :  { %3269 = vmatpush.bf16.msra.mxu3 %v6611_v10  ;;  %v6546_v10 = vld [vmem:[#allocation7 + $0x928] sm:$0xf]  ;;  %v6883_v0 = vor.u32 %v8307_v57, %v6882_v55  ;;  %v7011_v2 = vor.u32 %v8339_v59, %v7010_v58  ;;  %v8271_v5 = vld [vmem:[#allocation7 + $0xab4] sm:$0xf0] }
 0x14c   :  { %v6738_v3 = vld [vmem:[#allocation7 + $0xaa8] sm:$0xf]  ;;  %v8303_v8 = vld [vmem:[#allocation7 + $0xbb4] sm:$0xf0] }
 0x14d   :  { %3231 = vmatpush.bf16.msra.mxu0 %v6211_v24  ;;  %v8155_v24 = vld [vmem:[#allocation7 + $0x714] sm:$0xf0]  ;;  %v3005_v31 = vpop.f32.mrf.mxu2  ;;  %v6994_v9 = vld [vmem:[#allocation7 + $0xca8] sm:$0xf]  ;;  %v6739_v13 = vor.u32 %v8271_v5, %v6738_v3  ;;  %v7937_v3 = vld [vmem:[#allocation7 + $0x4c] sm:$0xf] }
 0x14e   :  { %3244 = vmatpush.bf16.msra.mxu1 %v6339_v26  ;;  %3257 = vmatpush.bf16.msra.mxu2 %v6467_v1  ;;  %v6402_v26 = vld [vmem:[#allocation7 + $0x808] sm:$0xf]  ;;  %v6547_v1 = vor.u32 %v8223_v11, %v6546_v10  ;;  %v8335_v10 = vld [vmem:[#allocation7 + $0xcb4] sm:$0xf0]  ;;  %v7949_v11 = vld [vmem:[#allocation7 + $0xac] sm:$0xf] }
 0x14f   :  { %3270 = vmatpush.bf16.msra.mxu3 %v6595_v32  ;;  %v3018_v32 = vpop.f32.mrf.mxu3  ;;  %v8331_v28 = vld [vmem:[#allocation7 + $0xc94] sm:$0xf0]  ;;  %v5444_v31 = vld [vmem:[#allocation7 + $0x98] sm:$0xf0]  ;;  %v6962_v47 = vld [vmem:[#allocation7 + $0xc68] sm:$0xf] }
 0x150   :  { %v8263_v61 = vld [vmem:[#allocation7 + $0xa74] sm:$0xf0]  ;;  %v6818_v58 = vld [vmem:[#allocation7 + $0xb48] sm:$0xf]  ;;  %v5412_v5 = vld [vmem:[#allocation7 + $0x58] sm:$0xf0] }
 0x151   :  { %3232 = vmatpush.bf16.msra.mxu0 %v6195_v53  ;;  %v8343_v53 = vld [vmem:[#allocation7 + $0xcf4] sm:$0xf0] }
 0x152   :  { %3245 = vmatpush.bf16.msra.mxu1 %v6323_v43  ;;  %3258 = vmatpush.bf16.msra.mxu2 %v6451_v45  ;;  %v6275_v43 = vor.u32 %v8155_v24, %v6274_v21  ;;  %v6403_v45 = vor.u32 %v8187_v27, %v6402_v26  ;;  %v7027_v51 = vor.u32 %v8343_v53, %v7026_v40  ;;  %v8267_v21 = vld [vmem:[#allocation7 + $0xa94] sm:$0xf0]  ;;  %v6850_v24 = vld [vmem:[#allocation7 + $0xb88] sm:$0xf] }
 0x153   :  { %3271 = vmatpush.bf16.msra.mxu3 %v6579_v49  ;;  %v6771_v49 = vor.u32 %v8279_v35, %v6770_v34  ;;  %v6978_v27 = vld [vmem:[#allocation7 + $0xc88] sm:$0xf]  ;;  %v8295_v46 = vld [vmem:[#allocation7 + $0xb74] sm:$0xf0] }
 0x154   :  { %v6979_v36 = vor.u32 %v8331_v28, %v6978_v27  ;;  %v6834_v40 = vld [vmem:[#allocation7 + $0xb68] sm:$0xf]  ;;  %v8259_v57 = vld [vmem:[#allocation7 + $0xa54] sm:$0xf0] }
 0x155   :  { %3233 = vmatpush.bf16.msra.mxu0 %v6179_v60  ;;  %v7953_v60 = vld [vmem:[#allocation7 + $0xcc] sm:$0xf]  ;;  %v6658_v28 = vld [vmem:[#allocation7 + $0xa08] sm:$0xf] }
 0x156   :  { %3246 = vmatpush.bf16.msra.mxu1 %v6307_v62  ;;  %3259 = vmatpush.bf16.msra.mxu2 %v6435_v63  ;;  %v5476_v62 = vld [vmem:[#allocation7 + $0xd8] sm:$0xf0]  ;;  %v6755_v63 = vor.u32 %v8275_v54, %v6754_v52  ;;  %v6835_v54 = vor.u32 %v8295_v46, %v6834_v40  ;;  %v8315_v40 = vld [vmem:[#allocation7 + $0xc14] sm:$0xf0]  ;;  %v7989_v46 = vld [vmem:[#allocation7 + $0x1ec] sm:$0xf] }
 0x157   :  { %3272 = vmatpush.bf16.msra.mxu3 %v6563_v6  ;;  %v6866_v6 = vld [vmem:[#allocation7 + $0xba8] sm:$0xf]  ;;  %v5479_v7 = vor.u32 %v7953_v60, %v5476_v62  ;;  %v8291_v60 = vld [vmem:[#allocation7 + $0xb54] sm:$0xf0] }
 0x158   :  { %v6867_v14 = vor.u32 %v8303_v8, %v6866_v6  ;;  %v6946_v62 = vld [vmem:[#allocation7 + $0xc48] sm:$0xf] }
 0x159   :  { %3234 = vmatpush.bf16.msra.mxu0 %v6163_v12  ;;  %v5460_v12 = vld [vmem:[#allocation7 + $0xb8] sm:$0xf0] }
 0x15a   :  { %3247 = vmatpush.bf16.msra.mxu1 %v6291_v16  ;;  %3260 = vmatpush.bf16.msra.mxu2 %v6419_v17  ;;  %v6995_v16 = vor.u32 %v8335_v10, %v6994_v9  ;;  %v6722_v17 = vld [vmem:[#allocation7 + $0xa88] sm:$0xf]  ;;  %v5463_v26 = vor.u32 %v7949_v11, %v5460_v12  ;;  %v6819_v9 = vor.u32 %v8291_v60, %v6818_v58  ;;  %v8255_v12 = vld [vmem:[#allocation7 + $0xa34] sm:$0xf0] }
 0x15b   :  { %3273 = vmatpush.bf16.msra.mxu3 %v6547_v1  ;;  %v8299_v1 = vld [vmem:[#allocation7 + $0xb94] sm:$0xf0]  ;;  %v6723_v32 = vor.u32 %v8267_v21, %v6722_v17  ;;  %v6674_v11 = vld [vmem:[#allocation7 + $0xa28] sm:$0xf] }
 0x15c   :  { %v6851_v35 = vor.u32 %v8299_v1, %v6850_v24  ;;  %v8287_v17 = vld [vmem:[#allocation7 + $0xb34] sm:$0xf0]  ;;  %v6930_v21 = vld [vmem:[#allocation7 + $0xc28] sm:$0xf]  ;;  %v5396_v1 = vld [vmem:[#allocation7 + $0x38] sm:$0xf0]  ;;  %v6675_v27 = vor.u32 %v8255_v12, %v6674_v11 }
 0x15d   :  { %3235 = vmatpush.bf16.msra.mxu0 %v6147_v37  ;;  %v3029_v34 = vpop.f32.mrf.mxu0  ;;  %v6706_v37 = vld [vmem:[#allocation7 + $0xa68] sm:$0xf]  ;;  %v8319_v24 = vld [vmem:[#allocation7 + $0xc34] sm:$0xf0] }
 0x15e   :  { %3248 = vmatpush.bf16.msra.mxu1 %v6275_v43  ;;  %3261 = vmatpush.bf16.msra.mxu2 %v6403_v45  ;;  %v3030_v53 = vadd.f32 %v3029_v34, %v9165_v4  ;;  %v5447_v45 = vor.u32 %v7945_v39, %v5444_v31  ;;  %v6707_v52 = vor.u32 %v8263_v61, %v6706_v37  ;;  %v8251_v39 = vld [vmem:[#allocation7 + $0xa14] sm:$0xf0]  ;;  %v6786_v34 = vld [vmem:[#allocation7 + $0xb08] sm:$0xf] }
 0x15f   :  { %3274 = vmatpush.bf16.msra.mxu3 %v6531_v48  ;;  %v8327_v48 = vld [vmem:[#allocation7 + $0xc74] sm:$0xf0] }
 0x160   :  { %3236 = vmatmul.bf16.vlgmr.msra.gmra.mxu0 %v9104_v38  ;;  %v3042_v43 = vpop.f32.mrf.mxu1  ;;  %v6963_v55 = vor.u32 %v8327_v48, %v6962_v47  ;;  %v5620_v47 = vld [vmem:[#allocation7 + $0x1f8] sm:$0xf0]  ;;  %v8021_v48 = vld [vmem:[#allocation7 + $0x2ec] sm:$0xf] }
 0x161   :  { %3280 = vmatpush.bf16.msrb.mxu0 %v6771_v49  ;;  %3262 = vmatmul.bf16.vlgmr.msra.gmra.mxu2 %v9116_v25  ;;  %v7941_v49 = vld [vmem:[#allocation7 + $0x6c] sm:$0xf] }
 0x162   :  { %3293 = vmatpush.bf16.msrb.mxu1 %v6899_v50  ;;  %3306 = vmatpush.bf16.msrb.mxu2 %v7027_v51  ;;  %v5428_v50 = vld [vmem:[#allocation7 + $0x78] sm:$0xf0]  ;;  %v3043_v51 = vadd.f32 %v3042_v43, %v3030_v53  ;;  %v7929_v53 = vld [vmem:[#allocation7 + $0xc] sm:$0xf] }
 0x163   :  { %3319 = vmatpush.bf16.msrb.mxu3 %v5495_v56  ;;  %3249 = vmatmul.bf16.vlgmr.msra.gmra.mxu1 %v9108_v42  ;;  %v6690_v56 = vld [vmem:[#allocation7 + $0xa48] sm:$0xf]  ;;  %v5431_v4 = vor.u32 %v7941_v49, %v5428_v50  ;;  %v5380_v43 = vld [vmem:[#allocation7 + $0x18] sm:$0xf0]  ;;  %v6659_v49 = vor.u32 %v8251_v39, %v6658_v28 }
 0x164   :  { %3275 = vmatmul.bf16.vlgmr.msra.gmra.mxu3 %v9120_v30  ;;  %v3055_v59 = vpop.f32.mrf.mxu2  ;;  %v6691_v6 = vor.u32 %v8259_v57, %v6690_v56  ;;  %v5748_v50 = vld [vmem:[#allocation7 + $0x2f8] sm:$0xf0]  ;;  %v8085_v56 = vld [vmem:[#allocation7 + $0x4ec] sm:$0xf]  ;;  %v5383_v58 = vor.u32 %v7929_v53, %v5380_v43 }
 0x165   :  { %3281 = vmatpush.bf16.msrb.mxu0 %v6755_v63  ;;  %v8323_v63 = vld [vmem:[#allocation7 + $0xc54] sm:$0xf0]  ;;  %v3031_v8 = vpop.f32.mrf.mxu0  ;;  %v6004_v57 = vld [vmem:[#allocation7 + $0x4f8] sm:$0xf0]  ;;  %v8073_v43 = vld [vmem:[#allocation7 + $0x48c] sm:$0xf] }
 0x166   :  { %3294 = vmatpush.bf16.msrb.mxu1 %v6883_v0  ;;  %3307 = vmatpush.bf16.msrb.mxu2 %v7011_v2  ;;  %v3056_v0 = vadd.f32 %v3055_v59, %v3043_v51  ;;  %v6947_v10 = vor.u32 %v8323_v63, %v6946_v62  ;;  %v8053_v51 = vld [vmem:[#allocation7 + $0x3ec] sm:$0xf]  ;;  %v5623_v59 = vor.u32 %v7989_v46, %v5620_v47  ;;  %v5604_v63 = vld [vmem:[#allocation7 + $0x1d8] sm:$0xf0] }
 0x167   :  { %3320 = vmatpush.bf16.msrb.mxu3 %v5479_v7  ;;  %v3068_v2 = vpop.f32.mrf.mxu3  ;;  %v7985_v62 = vld [vmem:[#allocation7 + $0x1cc] sm:$0xf] }
 0x168   :  { %v9172_v7 = vadd.f32 %v3068_v2, %v3056_v0  ;;  %v8017_v0 = vld [vmem:[#allocation7 + $0x2cc] sm:$0xf]  ;;  %v6007_v2 = vor.u32 %v8085_v56, %v6004_v57  ;;  %v5684_v56 = vld [vmem:[#allocation7 + $0x278] sm:$0xf0] }
 0x169   :  { %3282 = vmatpush.bf16.msrb.mxu0 %v6739_v13  ;;  %v6802_v13 = vld [vmem:[#allocation7 + $0xb28] sm:$0xf]  ;;  %v8081_v8 = vld [vmem:[#allocation7 + $0x4cc] sm:$0xf] }
 0x16a   :  { %3295 = vmatpush.bf16.msrb.mxu1 %v6867_v14  ;;  %3308 = vmatpush.bf16.msrb.mxu2 %v6995_v16  ;;  %v3044_v14 = vpop.f32.mrf.mxu1  ;;  %v5415_v16 = vor.u32 %v7937_v3, %v5412_v5  ;;  %v6803_v31 = vor.u32 %v8287_v17, %v6802_v13  ;;  %v5732_v3 = vld [vmem:[#allocation7 + $0x2d8] sm:$0xf0]  ;;  %v8049_v5 = vld [vmem:[#allocation7 + $0x3cc] sm:$0xf] }
 0x16b   :  { %3321 = vmatpush.bf16.msrb.mxu3 %v5463_v26  ;;  %v7933_v26 = vld [vmem:[#allocation7 + $0x2c] sm:$0xf]  ;;  %v5735_v11 = vor.u32 %v8017_v0, %v5732_v3  ;;  %v5588_v14 = vld [vmem:[#allocation7 + $0x1b8] sm:$0xf0] }
 0x16c   :  { %v3057_v37 = vpop.f32.mrf.mxu2  ;;  %v5399_v61 = vor.u32 %v7933_v26, %v5396_v1  ;;  %v7981_v13 = vld [vmem:[#allocation7 + $0x1ac] sm:$0xf]  ;;  %v5844_v26 = vld [vmem:[#allocation7 + $0x3b8] sm:$0xf0] }
 0x16d   :  { %3283 = vmatpush.bf16.msrb.mxu0 %v6723_v32  ;;  %v6931_v32 = vor.u32 %v8319_v24, %v6930_v21  ;;  %v5716_v21 = vld [vmem:[#allocation7 + $0x2b8] sm:$0xf0]  ;;  %v8045_v24 = vld [vmem:[#allocation7 + $0x3ac] sm:$0xf]  ;;  %v5591_v28 = vor.u32 %v7981_v13, %v5588_v14 }
 0x16e   :  { %3296 = vmatpush.bf16.msrb.mxu1 %v6851_v35  ;;  %3309 = vmatpush.bf16.msrb.mxu2 %v6979_v36  ;;  %v8283_v35 = vld [vmem:[#allocation7 + $0xb14] sm:$0xf0]  ;;  %v6914_v36 = vld [vmem:[#allocation7 + $0xc08] sm:$0xf]  ;;  %v8077_v1 = vld [vmem:[#allocation7 + $0x4ac] sm:$0xf] }
 0x16f   :  { %3322 = vmatpush.bf16.msrb.mxu3 %v5447_v45  ;;  %v3070_v45 = vpop.f32.mrf.mxu3  ;;  %v5700_v37 = vld [vmem:[#allocation7 + $0x298] sm:$0xf0]  ;;  %v8037_v57 = vld [vmem:[#allocation7 + $0x36c] sm:$0xf] }
 0x170   :  { %v5956_v45 = vld [vmem:[#allocation7 + $0x498] sm:$0xf0] }
 0x171   :  { %3284 = vmatpush.bf16.msrb.mxu0 %v6707_v52  ;;  %v5876_v52 = vld [vmem:[#allocation7 + $0x3f8] sm:$0xf0] }
 0x172   :  { %3297 = vmatpush.bf16.msrb.mxu1 %v6835_v54  ;;  %3310 = vmatpush.bf16.msrb.mxu2 %v6963_v55  ;;  %v6787_v54 = vor.u32 %v8283_v35, %v6786_v34  ;;  %v6915_v55 = vor.u32 %v8315_v40, %v6914_v36  ;;  %v5879_v60 = vor.u32 %v8053_v51, %v5876_v52  ;;  %v5572_v34 = vld [vmem:[#allocation7 + $0x198] sm:$0xf0]  ;;  %v8009_v35 = vld [vmem:[#allocation7 + $0x28c] sm:$0xf] }
 0x173   :  { %3323 = vmatpush.bf16.msrb.mxu3 %v5431_v4  ;;  %v5751_v4 = vor.u32 %v8021_v48, %v5748_v50  ;;  %v5828_v40 = vld [vmem:[#allocation7 + $0x398] sm:$0xf0]  ;;  %v5703_v48 = vor.u32 %v8009_v35, %v5700_v37  ;;  %v7973_v50 = vld [vmem:[#allocation7 + $0x16c] sm:$0xf] }
 0x174   :  { %v5556_v51 = vld [vmem:[#allocation7 + $0x178] sm:$0xf0]  ;;  %v8005_v52 = vld [vmem:[#allocation7 + $0x26c] sm:$0xf] }
 0x175   :  { %3285 = vmatpush.bf16.msrb.mxu0 %v6691_v6  ;;  %v5860_v6 = vld [vmem:[#allocation7 + $0x3d8] sm:$0xf0]  ;;  %v8061_v35 = vld [vmem:[#allocation7 + $0x42c] sm:$0xf] }
 0x176   :  { %3298 = vmatpush.bf16.msrb.mxu1 %v6819_v9  ;;  %3311 = vmatpush.bf16.msrb.mxu2 %v6947_v10  ;;  %v5988_v9 = vld [vmem:[#allocation7 + $0x4d8] sm:$0xf0]  ;;  %v5607_v10 = vor.u32 %v7985_v62, %v5604_v63  ;;  %v5863_v12 = vor.u32 %v8049_v5, %v5860_v6  ;;  %v7969_v63 = vld [vmem:[#allocation7 + $0x14c] sm:$0xf] }
 0x177   :  { %3324 = vmatpush.bf16.msrb.mxu3 %v5415_v16  ;;  %v8013_v16 = vld [vmem:[#allocation7 + $0x2ac] sm:$0xf]  ;;  %v5991_v17 = vor.u32 %v8081_v8, %v5988_v9  ;;  %v5540_v0 = vld [vmem:[#allocation7 + $0x158] sm:$0xf0] }
 0x178   :  { %v5719_v39 = vor.u32 %v8013_v16, %v5716_v21  ;;  %v5668_v6 = vld [vmem:[#allocation7 + $0x258] sm:$0xf0]  ;;  %v8033_v8 = vld [vmem:[#allocation7 + $0x34c] sm:$0xf]  ;;  %v5543_v16 = vor.u32 %v7969_v63, %v5540_v0 }
 0x179   :  { %3286 = vmatpush.bf16.msrb.mxu0 %v6675_v27  ;;  %v5972_v27 = vld [vmem:[#allocation7 + $0x4b8] sm:$0xf0] }
 0x17a   :  { %3299 = vmatpush.bf16.msrb.mxu1 %v6803_v31  ;;  %3312 = vmatpush.bf16.msrb.mxu2 %v6931_v32  ;;  %v5847_v31 = vor.u32 %v8045_v24, %v5844_v26  ;;  %v7977_v32 = vld [vmem:[#allocation7 + $0x18c] sm:$0xf]  ;;  %v5975_v36 = vor.u32 %v8077_v1, %v5972_v27  ;;  %v5796_v9 = vld [vmem:[#allocation7 + $0x358] sm:$0xf0] }
 0x17b   :  { %3325 = vmatpush.bf16.msrb.mxu3 %v5399_v61  ;;  %v8041_v61 = vld [vmem:[#allocation7 + $0x38c] sm:$0xf]  ;;  %v5575_v47 = vor.u32 %v7977_v32, %v5572_v34  ;;  %v5924_v13 = vld [vmem:[#allocation7 + $0x458] sm:$0xf0]  ;;  %v5799_v26 = vor.u32 %v8033_v8, %v5796_v9 }
 0x17c   :  { %v7965_v1 = vld [vmem:[#allocation7 + $0x12c] sm:$0xf]  ;;  %v5524_v27 = vld [vmem:[#allocation7 + $0x138] sm:$0xf0] }
 0x17d   :  { %3287 = vmatpush.bf16.msrb.mxu0 %v6659_v49  ;;  %v3081_v53 = vpop.f32.mrf.mxu0  ;;  %v5831_v49 = vor.u32 %v8041_v61, %v5828_v40  ;;  %v8029_v32 = vld [vmem:[#allocation7 + $0x32c] sm:$0xf]  ;;  %v5780_v34 = vld [vmem:[#allocation7 + $0x338] sm:$0xf0]  ;;  %v5527_v37 = vor.u32 %v7965_v1, %v5524_v27 }
 0x17e   :  { %3300 = vmatpush.bf16.msrb.mxu1 %v6787_v54  ;;  %3313 = vmatpush.bf16.msrb.mxu2 %v6915_v55  ;;  %v3082_v46 = vadd.f32 %v3081_v53, %v9172_v7  ;;  %v5959_v54 = vor.u32 %v8073_v43, %v5956_v45  ;;  %v5687_v7 = vor.u32 %v8005_v52, %v5684_v56  ;;  %v7961_v61 = vld [vmem:[#allocation7 + $0x10c] sm:$0xf]  ;;  %v5508_v40 = vld [vmem:[#allocation7 + $0x118] sm:$0xf0] }
 0x17f   :  { %3326 = vmatpush.bf16.msrb.mxu3 %v5383_v58  ;;  %v5812_v58 = vld [vmem:[#allocation7 + $0x378] sm:$0xf0]  ;;  %v5783_v43 = vor.u32 %v8029_v32, %v5780_v34  ;;  %v7993_v45 = vld [vmem:[#allocation7 + $0x20c] sm:$0xf] }
 0x180   :  { %3288 = vmatmul.bf16.vlgmr.msrb.gmra.mxu0 %v9118_v29  ;;  %v5815_v62 = vor.u32 %v8037_v57, %v5812_v58  ;;  %v8117_v52 = vld [vmem:[#allocation7 + $0x5ec] sm:$0xf]  ;;  %v5511_v57 = vor.u32 %v7961_v61, %v5508_v40  ;;  %v6260_v58 = vld [vmem:[#allocation7 + $0x6f8] sm:$0xf0] }
 0x181   :  { %3332 = vmatpush.bf16.msra.mxu0 %v5623_v59  ;;  %3314 = vmatmul.bf16.vlgmr.msrb.gmra.mxu2 %v9128_v15  ;;  %v8069_v59 = vld [vmem:[#allocation7 + $0x46c] sm:$0xf]  ;;  %v6516_v63 = vld [vmem:[#allocation7 + $0x8f8] sm:$0xf0] }
 0x182   :  { %3345 = vmatpush.bf16.msra.mxu1 %v5751_v4  ;;  %3358 = vmatpush.bf16.msra.mxu2 %v5879_v60  ;;  %v5940_v4 = vld [vmem:[#allocation7 + $0x478] sm:$0xf0]  ;;  %v5559_v60 = vor.u32 %v7973_v50, %v5556_v51  ;;  %v8145_v9 = vld [vmem:[#allocation7 + $0x6cc] sm:$0xf] }
 0x183   :  { %3371 = vmatpush.bf16.msra.mxu3 %v6007_v2  ;;  %3301 = vmatmul.bf16.vlgmr.msrb.gmra.mxu1 %v9122_v33  ;;  %v8001_v2 = vld [vmem:[#allocation7 + $0x24c] sm:$0xf]  ;;  %v5943_v3 = vor.u32 %v8069_v59, %v5940_v4  ;;  %v5892_v50 = vld [vmem:[#allocation7 + $0x418] sm:$0xf0] }
 0x184   :  { %3327 = vmatmul.bf16.vlgmr.msrb.gmra.mxu3 %v9094_v19  ;;  %v3094_v19 = vpop.f32.mrf.mxu1  ;;  %v3107_v5 = vpop.f32.mrf.mxu2  ;;  %v5671_v24 = vor.u32 %v8001_v2, %v5668_v6  ;;  %v8181_v59 = vld [vmem:[#allocation7 + $0x7ec] sm:$0xf]  ;;  %v6388_v4 = vld [vmem:[#allocation7 + $0x7f8] sm:$0xf0] }
 0x185   :  { %3333 = vmatpush.bf16.msra.mxu0 %v5607_v10  ;;  %v3095_v55 = vadd.f32 %v3094_v19, %v3082_v46  ;;  %v3083_v14 = vpop.f32.mrf.mxu0  ;;  %v5636_v46 = vld [vmem:[#allocation7 + $0x218] sm:$0xf0]  ;;  %v8113_v6 = vld [vmem:[#allocation7 + $0x5cc] sm:$0xf] }
 0x186   :  { %3346 = vmatpush.bf16.msra.mxu1 %v5735_v11  ;;  %3359 = vmatpush.bf16.msra.mxu2 %v5863_v12  ;;  %v8065_v12 = vld [vmem:[#allocation7 + $0x44c] sm:$0xf]  ;;  %v6116_v8 = vld [vmem:[#allocation7 + $0x5d8] sm:$0xf0] }
 0x187   :  { %3372 = vmatpush.bf16.msra.mxu3 %v5991_v17  ;;  %v3108_v10 = vadd.f32 %v3107_v5, %v3095_v55  ;;  %v3120_v11 = vpop.f32.mrf.mxu3  ;;  %v8149_v55 = vld [vmem:[#allocation7 + $0x6ec] sm:$0xf]  ;;  %v6391_v5 = vor.u32 %v8181_v59, %v6388_v4  ;;  %v6100_v27 = vld [vmem:[#allocation7 + $0x5b8] sm:$0xf0] }
 0x188   :  { %v8209_v14 = vld [vmem:[#allocation7 + $0x8cc] sm:$0xf]  ;;  %v6356_v34 = vld [vmem:[#allocation7 + $0x7b8] sm:$0xf0] }
 0x189   :  { %3334 = vmatpush.bf16.msra.mxu0 %v5591_v28  ;;  %v9179_v21 = vadd.f32 %v3120_v11, %v3108_v10  ;;  %v7997_v28 = vld [vmem:[#allocation7 + $0x22c] sm:$0xf]  ;;  %v6244_v11 = vld [vmem:[#allocation7 + $0x6d8] sm:$0xf0] }
 0x18a   :  { %3347 = vmatpush.bf16.msra.mxu1 %v5719_v39  ;;  %3360 = vmatpush.bf16.msra.mxu2 %v5847_v31  ;;  %v5927_v39 = vor.u32 %v8065_v12, %v5924_v13  ;;  %v5652_v31 = vld [vmem:[#allocation7 + $0x238] sm:$0xf0]  ;;  %v8177_v12 = vld [vmem:[#allocation7 + $0x7cc] sm:$0xf] }
 0x18b   :  { %3373 = vmatpush.bf16.msra.mxu3 %v5975_v36  ;;  %v5908_v36 = vld [vmem:[#allocation7 + $0x438] sm:$0xf0]  ;;  %v5655_v53 = vor.u32 %v7997_v28, %v5652_v31  ;;  %v8109_v1 = vld [vmem:[#allocation7 + $0x5ac] sm:$0xf] }
 0x18c   :  { %v3096_v17 = vpop.f32.mrf.mxu1  ;;  %v5911_v19 = vor.u32 %v8061_v35, %v5908_v36  ;;  %v3109_v51 = vpop.f32.mrf.mxu2  ;;  %v6372_v13 = vld [vmem:[#allocation7 + $0x7d8] sm:$0xf0]  ;;  %v8141_v28 = vld [vmem:[#allocation7 + $0x6ac] sm:$0xf] }
 0x18d   :  { %3335 = vmatpush.bf16.msra.mxu0 %v5575_v47  ;;  %v8025_v47 = vld [vmem:[#allocation7 + $0x30c] sm:$0xf]  ;;  %v6119_v17 = vor.u32 %v8113_v6, %v6116_v8  ;;  %v6228_v31 = vld [vmem:[#allocation7 + $0x6b8] sm:$0xf0] }
 0x18e   :  { %3348 = vmatpush.bf16.msra.mxu1 %v5703_v48  ;;  %3361 = vmatpush.bf16.msra.mxu2 %v5831_v49  ;;  %v5764_v48 = vld [vmem:[#allocation7 + $0x318] sm:$0xf0]  ;;  %v8057_v49 = vld [vmem:[#allocation7 + $0x40c] sm:$0xf]  ;;  %v6231_v61 = vor.u32 %v8141_v28, %v6228_v31 }
 0x18f   :  { %3374 = vmatpush.bf16.msra.mxu3 %v5959_v54  ;;  %v6132_v54 = vld [vmem:[#allocation7 + $0x5f8] sm:$0xf0]  ;;  %v3122_v56 = vpop.f32.mrf.mxu3  ;;  %v5895_v0 = vor.u32 %v8057_v49, %v5892_v50  ;;  %v8173_v32 = vld [vmem:[#allocation7 + $0x7ac] sm:$0xf] }
 0x190   :  { %v6135_v2 = vor.u32 %v8117_v52, %v6132_v54  ;;  %v8205_v35 = vld [vmem:[#allocation7 + $0x8ac] sm:$0xf]  ;;  %v6484_v36 = vld [vmem:[#allocation7 + $0x8b8] sm:$0xf0]  ;;  %v6359_v40 = vor.u32 %v8173_v32, %v6356_v34 }
 0x191   :  { %3336 = vmatpush.bf16.msra.mxu0 %v5559_v60  ;;  %v5639_v60 = vor.u32 %v7993_v45, %v5636_v46  ;;  %v6487_v45 = vor.u32 %v8205_v35, %v6484_v36  ;;  %v6212_v46 = vld [vmem:[#allocation7 + $0x698] sm:$0xf0]  ;;  %v8101_v54 = vld [vmem:[#allocation7 + $0x56c] sm:$0xf] }
 0x192   :  { %3349 = vmatpush.bf16.msra.mxu1 %v5687_v7  ;;  %3362 = vmatpush.bf16.msra.mxu2 %v5815_v62  ;;  %v5767_v7 = vor.u32 %v8025_v47, %v5764_v48  ;;  %v8213_v62 = vld [vmem:[#allocation7 + $0x8ec] sm:$0xf]  ;;  %v6468_v49 = vld [vmem:[#allocation7 + $0x898] sm:$0xf0] }
 0x193   :  { %3375 = vmatpush.bf16.msra.mxu3 %v5943_v3  ;;  %v6263_v3 = vor.u32 %v8149_v55, %v6260_v58  ;;  %v6519_v10 = vor.u32 %v8213_v62, %v6516_v63  ;;  %v8169_v47 = vld [vmem:[#allocation7 + $0x78c] sm:$0xf]  ;;  %v6068_v55 = vld [vmem:[#allocation7 + $0x578] sm:$0xf0]  ;;  %v8590_v63 = vld [vmem:[#allocation8] sm:$0xf] }
 0x194   :  { %v8133_v56 = vld [vmem:[#allocation7 + $0x66c] sm:$0xf]  ;;  %v6196_v59 = vld [vmem:[#allocation7 + $0x678] sm:$0xf0] }
 0x195   :  { %3337 = vmatpush.bf16.msra.mxu0 %v5543_v16  ;;  %v6500_v16 = vld [vmem:[#allocation7 + $0x8d8] sm:$0xf0]  ;;  %v8165_v4 = vld [vmem:[#allocation7 + $0x76c] sm:$0xf] }
 0x196   :  { %3350 = vmatpush.bf16.msra.mxu1 %v5671_v24  ;;  %3363 = vmatpush.bf16.msra.mxu2 %v5799_v26  ;;  %v6247_v24 = vor.u32 %v8145_v9, %v6244_v11  ;;  %v6375_v26 = vor.u32 %v8177_v12, %v6372_v13  ;;  %v6452_v62 = vld [vmem:[#allocation7 + $0x878] sm:$0xf0]  ;;  %v8129_v8 = vld [vmem:[#allocation7 + $0x64c] sm:$0xf] }
 0x197   :  { %3376 = vmatpush.bf16.msra.mxu3 %v5927_v39  ;;  %v6503_v39 = vor.u32 %v8209_v14, %v6500_v16  ;;  %v6052_v6 = vld [vmem:[#allocation7 + $0x558] sm:$0xf0]  ;;  %v8161_v11 = vld [vmem:[#allocation7 + $0x74c] sm:$0xf] }
 0x198   :  { %v6308_v12 = vld [vmem:[#allocation7 + $0x758] sm:$0xf0]  ;;  %v8193_v14 = vld [vmem:[#allocation7 + $0x84c] sm:$0xf] }
 0x199   :  { %3338 = vmatpush.bf16.msra.mxu0 %v5527_v37  ;;  %v6103_v37 = vor.u32 %v8109_v1, %v6100_v27  ;;  %v6436_v16 = vld [vmem:[#allocation7 + $0x858] sm:$0xf0]  ;;  %v8093_v31 = vld [vmem:[#allocation7 + $0x52c] sm:$0xf] }
 0x19a   :  { %3351 = vmatpush.bf16.msra.mxu1 %v5655_v53  ;;  %3364 = vmatpush.bf16.msra.mxu2 %v5783_v43  ;;  %v8105_v53 = vld [vmem:[#allocation7 + $0x58c] sm:$0xf]  ;;  %v6084_v43 = vld [vmem:[#allocation7 + $0x598] sm:$0xf0]  ;;  %v6439_v36 = vor.u32 %v8193_v14, %v6436_v16 }
 0x19b   :  { %3377 = vmatpush.bf16.msra.mxu3 %v5911_v19  ;;  %v6340_v19 = vld [vmem:[#allocation7 + $0x798] sm:$0xf0]  ;;  %v6087_v50 = vor.u32 %v8105_v53, %v6084_v43  ;;  %v8125_v34 = vld [vmem:[#allocation7 + $0x62c] sm:$0xf] }
 0x19c   :  { %v6343_v52 = vor.u32 %v8169_v47, %v6340_v19  ;;  %v6036_v32 = vld [vmem:[#allocation7 + $0x538] sm:$0xf0]  ;;  %v8189_v53 = vld [vmem:[#allocation7 + $0x82c] sm:$0xf] }
 0x19d   :  { %3339 = vmatpush.bf16.msra.mxu0 %v5511_v57  ;;  %v3133_v48 = vpop.f32.mrf.mxu0  ;;  %v6420_v43 = vld [vmem:[#allocation7 + $0x838] sm:$0xf0]  ;;  %v8337_v16 = vld [vmem:[#allocation7 + $0xccc] sm:$0xf] }
 0x19e   :  { %3352 = vmatpush.bf16.msra.mxu1 %v5639_v60  ;;  %3365 = vmatpush.bf16.msra.mxu2 %v5767_v7  ;;  %v6324_v60 = vld [vmem:[#allocation7 + $0x778] sm:$0xf0]  ;;  %v8197_v7 = vld [vmem:[#allocation7 + $0x86c] sm:$0xf] }
 0x19f   :  { %3378 = vmatpush.bf16.msra.mxu3 %v5895_v0  ;;  %v6071_v0 = vor.u32 %v8101_v54, %v6068_v55  ;;  %v6455_v9 = vor.u32 %v8197_v7, %v6452_v62  ;;  %v8245_v54 = vld [vmem:[#allocation7 + $0x9ec] sm:$0xf]  ;;  %v6644_v55 = vld [vmem:[#allocation7 + $0x9f8] sm:$0xf0] }
 0x1a0   :  { %3340 = vmatmul.bf16.vlgmr.msra.gmra.mxu0 %v9098_v22  ;;  %v8201_v22 = vld [vmem:[#allocation7 + $0x88c] sm:$0xf]  ;;  %v6900_v7 = vld [vmem:[#allocation7 + $0xbf8] sm:$0xf0] }
 0x1a1   :  { %3384 = vmatpush.bf16.msrb.mxu0 %v6135_v2  ;;  %3366 = vmatmul.bf16.vlgmr.msra.gmra.mxu2 %v9096_v20  ;;  %v8137_v20 = vld [vmem:[#allocation7 + $0x68c] sm:$0xf]  ;;  %v6471_v57 = vor.u32 %v8201_v22, %v6468_v49  ;;  %v6199_v2 = vor.u32 %v8133_v56, %v6196_v59  ;;  %v6148_v22 = vld [vmem:[#allocation7 + $0x618] sm:$0xf0] }
 0x1a2   :  { %3397 = vmatpush.bf16.msrb.mxu1 %v6263_v3  ;;  %3410 = vmatpush.bf16.msrb.mxu2 %v6391_v5  ;;  %v6215_v51 = vor.u32 %v8137_v20, %v6212_v46  ;;  %v6327_v3 = vor.u32 %v8165_v4, %v6324_v60  ;;  %v8097_v5 = vld [vmem:[#allocation7 + $0x54c] sm:$0xf]  ;;  %v6039_v20 = vor.u32 %v8093_v31, %v6036_v32  ;;  %v6020_v46 = vld [vmem:[#allocation7 + $0x518] sm:$0xf0] }
 0x1a3   :  { %3423 = vmatpush.bf16.msrb.mxu3 %v6519_v10  ;;  %3353 = vmatmul.bf16.vlgmr.msra.gmra.mxu1 %v9092_v18  ;;  %v3146_v18 = vpop.f32.mrf.mxu1  ;;  %v6180_v10 = vld [vmem:[#allocation7 + $0x658] sm:$0xf0]  ;;  %v6055_v1 = vor.u32 %v8097_v5, %v6052_v6  ;;  %v8153_v49 = vld [vmem:[#allocation7 + $0x70c] sm:$0xf] }
 0x1a4   :  { %3379 = vmatmul.bf16.vlgmr.msra.gmra.mxu3 %v9106_v41  ;;  %v3134_v41 = vadd.f32 %v3133_v48, %v9179_v21  ;;  %v680_v21 = vperm.slane %v8590_v63, 2  ;;  %v6183_v28 = vor.u32 %v8129_v8, %v6180_v10  ;;  %v8121_v48 = vld [vmem:[#allocation7 + $0x60c] sm:$0xf]  ;;  %v6772_v4 = vld [vmem:[#allocation7 + $0xaf8] sm:$0xf0] }
 0x1a5   :  { %3385 = vmatpush.bf16.msrb.mxu0 %v6119_v17  ;;  %v8277_v56 = vld [vmem:[#allocation7 + $0xaec] sm:$0xf]  ;;  %v6151_v62 = vor.u32 %v8121_v48, %v6148_v22  ;;  %v6884_v14 = vld [vmem:[#allocation7 + $0xbd8] sm:$0xf0] }
 0x1a6   :  { %3398 = vmatpush.bf16.msrb.mxu1 %v6247_v24  ;;  %3411 = vmatpush.bf16.msrb.mxu2 %v6375_v26  ;;  %v9186_v58 = vadd.f32 %v3146_v18, %v3134_v41  ;;  %v3159_v13 = vpop.f32.mrf.mxu2  ;;  %v3135_v26 = vpop.f32.mrf.mxu0  ;;  %v6423_v41 = vor.u32 %v8189_v53, %v6420_v43  ;;  %v8185_v18 = vld [vmem:[#allocation7 + $0x80c] sm:$0xf]  ;;  %v6775_v5 = vor.u32 %v8277_v56, %v6772_v4  ;;  %v6740_v32 = vld [vmem:[#allocation7 + $0xab8] sm:$0xf0] }
 0x1a7   :  { %3424 = vmatpush.bf16.msrb.mxu3 %v6503_v39  ;;  %v3160_v17 = vadd.f32 %v3159_v13, %v680_v21  ;;  %v3172_v24 = vpop.f32.mrf.mxu3  ;;  %v6311_v39 = vor.u32 %v8161_v11, %v6308_v12  ;;  %v8309_v60 = vld [vmem:[#allocation7 + $0xbec] sm:$0xf]  ;;  %v6756_v12 = vld [vmem:[#allocation7 + $0xad8] sm:$0xf0] }
 0x1a8   :  { %v8341_v21 = vld [vmem:[#allocation7 + $0xcec] sm:$0xf]  ;;  %v6903_v6 = vor.u32 %v8309_v60, %v6900_v7  ;;  %v6964_v4 = vld [vmem:[#allocation7 + $0xc78] sm:$0xf0]  ;;  %vm3489_vm1 = vcmp.gt.f32.partialorder %v9186_v58, 0.0 }
 0x1a9   :  { %3386 = vmatpush.bf16.msrb.mxu0 %v6103_v37  ;;  %v9188_v35 = vadd.f32 %v3172_v24, %v3160_v17  ;;  %v6164_v37 = vld [vmem:[#allocation7 + $0x638] sm:$0xf0]  ;;  %v8241_v8 = vld [vmem:[#allocation7 + $0x9cc] sm:$0xf] }
 0x1aa   :  { %3399 = vmatpush.bf16.msrb.mxu1 %v6231_v61  ;;  %3412 = vmatpush.bf16.msrb.mxu2 %v6359_v40  ;;  %v8157_v61 = vld [vmem:[#allocation7 + $0x72c] sm:$0xf]  ;;  %v6292_v40 = vld [vmem:[#allocation7 + $0x738] sm:$0xf0]  ;;  %v6167_v47 = vor.u32 %v8125_v34, %v6164_v37 }
 0x1ab   :  { %3425 = vmatpush.bf16.msrb.mxu3 %v6487_v45  ;;  %v3148_v27 = vpop.f32.mrf.mxu1  ;;  %v8089_v45 = vld [vmem:[#allocation7 + $0x50c] sm:$0xf]  ;;  %v6295_v19 = vor.u32 %v8157_v61, %v6292_v40  ;;  %v7012_v17 = vld [vmem:[#allocation7 + $0xcd8] sm:$0xf0] }
 0x1ac   :  { %v6023_v59 = vor.u32 %v8089_v45, %v6020_v46  ;;  %v8273_v10 = vld [vmem:[#allocation7 + $0xacc] sm:$0xf]  ;;  %v7015_v31 = vor.u32 %v8337_v16, %v7012_v17  ;;  %v6996_v61 = vld [vmem:[#allocation7 + $0xcb8] sm:$0xf0] }
 0x1ad   :  { %3387 = vmatpush.bf16.msrb.mxu0 %v6087_v50  ;;  %v6276_v50 = vld [vmem:[#allocation7 + $0x718] sm:$0xf0]  ;;  %v8305_v13 = vld [vmem:[#allocation7 + $0xbcc] sm:$0xf]  ;;  %v6759_v26 = vor.u32 %v8273_v10, %v6756_v12 }
 0x1ae   :  { %3400 = vmatpush.bf16.msrb.mxu1 %v6215_v51  ;;  %3413 = vmatpush.bf16.msrb.mxu2 %v6343_v52  ;;  %v6404_v51 = vld [vmem:[#allocation7 + $0x818] sm:$0xf0]  ;;  %v3161_v52 = vpop.f32.mrf.mxu2  ;;  %v6279_v63 = vor.u32 %v8153_v49, %v6276_v50  ;;  %v8237_v27 = vld [vmem:[#allocation7 + $0x9ac] sm:$0xf] }
 0x1af   :  { %3426 = vmatpush.bf16.msrb.mxu3 %v6471_v57  ;;  %v3174_v57 = vpop.f32.mrf.mxu3  ;;  %v8301_v34 = vld [vmem:[#allocation7 + $0xbac] sm:$0xf] }
 0x1b0   :  { %v8333_v37 = vld [vmem:[#allocation7 + $0xcac] sm:$0xf]  ;;  %v6836_v57 = vld [vmem:[#allocation7 + $0xb78] sm:$0xf0] }
 0x1b1   :  { %3388 = vmatpush.bf16.msrb.mxu0 %v6071_v0  ;;  %v7028_v0 = vld [vmem:[#allocation7 + $0xcf8] sm:$0xf0]  ;;  %v8265_v45 = vld [vmem:[#allocation7 + $0xa8c] sm:$0xf]  ;;  %v6999_v46 = vor.u32 %v8333_v37, %v6996_v61 }
 0x1b2   :  { %3401 = vmatpush.bf16.msrb.mxu1 %v6199_v2  ;;  %3414 = vmatpush.bf16.msrb.mxu2 %v6327_v3  ;;  %v6407_v2 = vor.u32 %v8185_v18, %v6404_v51  ;;  %v6647_v3 = vor.u32 %v8245_v54, %v6644_v55  ;;  %v7031_v11 = vor.u32 %v8341_v21, %v7028_v0  ;;  %v8329_v48 = vld [vmem:[#allocation7 + $0xc8c] sm:$0xf]  ;;  %v6580_v18 = vld [vmem:[#allocation7 + $0x978] sm:$0xf0] }
 0x1b3   :  { %3427 = vmatpush.bf16.msrb.mxu3 %v6455_v9  ;;  %v6628_v9 = vld [vmem:[#allocation7 + $0x9d8] sm:$0xf0]  ;;  %v8229_v50 = vld [vmem:[#allocation7 + $0x96c] sm:$0xf] }
 0x1b4   :  { %v6631_v24 = vor.u32 %v8241_v8, %v6628_v9  ;;  %v8261_v51 = vld [vmem:[#allocation7 + $0xa6c] sm:$0xf]  ;;  %v6708_v55 = vld [vmem:[#allocation7 + $0xa78] sm:$0xf0]  ;;  %v6583_v60 = vor.u32 %v8229_v50, %v6580_v18 }
 0x1b5   :  { %3389 = vmatpush.bf16.msrb.mxu0 %v6055_v1  ;;  %v6887_v1 = vor.u32 %v8305_v13, %v6884_v14  ;;  %v8293_v56 = vld [vmem:[#allocation7 + $0xb6c] sm:$0xf]  ;;  %v6711_v7 = vor.u32 %v8261_v51, %v6708_v55  ;;  %v6564_v21 = vld [vmem:[#allocation7 + $0x958] sm:$0xf0] }
 0x1b6   :  { %3402 = vmatpush.bf16.msrb.mxu1 %v6183_v28  ;;  %3415 = vmatpush.bf16.msrb.mxu2 %v6311_v39  ;;  %v6612_v28 = vld [vmem:[#allocation7 + $0x9b8] sm:$0xf0]  ;;  %v8269_v39 = vld [vmem:[#allocation7 + $0xaac] sm:$0xf] }
 0x1b7   :  { %3428 = vmatpush.bf16.msrb.mxu3 %v6439_v36  ;;  %v6868_v36 = vld [vmem:[#allocation7 + $0xbb8] sm:$0xf0]  ;;  %v6615_v40 = vor.u32 %v8237_v27, %v6612_v28  ;;  %v6743_v53 = vor.u32 %v8269_v39, %v6740_v32  ;;  %v8257_v0 = vld [vmem:[#allocation7 + $0xa4c] sm:$0xf] }
 0x1b8   :  { %v6871_v43 = vor.u32 %v8301_v34, %v6868_v36  ;;  %v6820_v8 = vld [vmem:[#allocation7 + $0xb58] sm:$0xf0]  ;;  %v8321_v10 = vld [vmem:[#allocation7 + $0xc4c] sm:$0xf] }
 0x1b9   :  { %3390 = vmatpush.bf16.msrb.mxu0 %v6039_v20  ;;  %v8233_v20 = vld [vmem:[#allocation7 + $0x98c] sm:$0xf]  ;;  %v6676_v28 = vld [vmem:[#allocation7 + $0xa38] sm:$0xf0] }
 0x1ba   :  { %3403 = vmatpush.bf16.msrb.mxu1 %v6167_v47  ;;  %3416 = vmatpush.bf16.msrb.mxu2 %v6295_v19  ;;  %v6724_v47 = vld [vmem:[#allocation7 + $0xa98] sm:$0xf0]  ;;  %v8297_v19 = vld [vmem:[#allocation7 + $0xb8c] sm:$0xf] }
 0x1bb   :  { %3429 = vmatpush.bf16.msrb.mxu3 %v6423_v41  ;;  %v8221_v17 = vld [vmem:[#allocation7 + $0x92c] sm:$0xf]  ;;  %v6932_v34 = vld [vmem:[#allocation7 + $0xc38] sm:$0xf0] }
 0x1bc   :  { %v8285_v39 = vld [vmem:[#allocation7 + $0xb2c] sm:$0xf]  ;;  %v8375_v50 = vld [vmem:[#allocation10 + $0xf4] sm:$0xf0] }
 0x1bd   :  { %3391 = vmatpush.bf16.msrb.mxu0 %v6023_v59  ;;  %v9194_v49 = vpop.f32.mrf.mxu0  ;;  %v8325_v59 = vld [vmem:[#allocation7 + $0xc6c] sm:$0xf] }
 0x1be   :  { %3404 = vmatpush.bf16.msrb.mxu1 %v6151_v62  ;;  %3417 = vmatpush.bf16.msrb.mxu2 %v6279_v63  ;;  %v6839_v62 = vor.u32 %v8293_v56, %v6836_v57  ;;  %v8225_v63 = vld [vmem:[#allocation7 + $0x94c] sm:$0xf]  ;;  %v7218_v56 = vld [vmem:[#allocation10 + $0x170] sm:$0xf]  ;;  %v8391_v57 = vld [vmem:[#allocation10 + $0x174] sm:$0xf0] }
 0x1bf   :  { %3430 = vmatpush.bf16.msrb.mxu3 %v6407_v2  ;;  %v6567_v12 = vor.u32 %v8225_v63, %v6564_v21  ;;  %v8317_v32 = vld [vmem:[#allocation7 + $0xc2c] sm:$0xf]  ;;  %v7219_v63 = vor.u32 %v8391_v57, %v7218_v56  ;;  %v8363_v56 = vld [vmem:[#allocation10 + $0x94] sm:$0xf0] }
 0x1c0   :  { %3392 = vmatmul.bf16.vlgmr.msrb.gmra.mxu0 %v9110_v44  ;;  %v6596_v44 = vld [vmem:[#allocation7 + $0x998] sm:$0xf0]  ;;  %v9196_v52 = vpop.f32.mrf.mxu1  ;;  %v8217_v37 = vld [vmem:[#allocation7 + $0x90c] sm:$0xf] }
 0x1c1   :  { %3436 = vmatpush.bf16.msra.mxu0 %v6647_v3  ;;  %3418 = vmatmul.bf16.vlgmr.msrb.gmra.mxu2 %v9108_v42  ;;  %v6852_v42 = vld [vmem:[#allocation7 + $0xb98] sm:$0xf0]  ;;  %v6599_v22 = vor.u32 %v8233_v20, %v6596_v44  ;;  %v6967_v3 = vor.u32 %v8325_v59, %v6964_v4  ;;  %v7082_v4 = vld [vmem:[#allocation10 + $0x60] sm:$0xf] }
 0x1c2   :  { %3449 = vmatpush.bf16.msra.mxu1 %v6775_v5  ;;  %3462 = vmatpush.bf16.msra.mxu2 %v6903_v6  ;;  %v6855_v41 = vor.u32 %v8297_v19, %v6852_v42  ;;  %v6692_v5 = vld [vmem:[#allocation7 + $0xa58] sm:$0xf0]  ;;  %v8289_v6 = vld [vmem:[#allocation7 + $0xb4c] sm:$0xf] }
 0x1c3   :  { %3475 = vmatpush.bf16.msra.mxu3 %v7031_v11  ;;  %3405 = vmatmul.bf16.vlgmr.msrb.gmra.mxu1 %v9104_v38  ;;  %v6980_v38 = vld [vmem:[#allocation7 + $0xc98] sm:$0xf0]  ;;  %v6695_v14 = vor.u32 %v8257_v0, %v6692_v5  ;;  %v6823_v16 = vor.u32 %v8289_v6, %v6820_v8  ;;  %v8313_v19 = vld [vmem:[#allocation7 + $0xc0c] sm:$0xf]  ;;  %v7210_v0 = vld [vmem:[#allocation10 + $0x160] sm:$0xf] }
 0x1c4   :  { %3431 = vmatmul.bf16.vlgmr.msrb.gmra.mxu3 %v9116_v25  ;;  %v6727_v25 = vor.u32 %v8265_v45, %v6724_v47  ;;  %v6983_v54 = vor.u32 %v8329_v48, %v6980_v38  ;;  %v9198_v2 = vpop.f32.mrf.mxu2  ;;  %v6948_v11 = vld [vmem:[#allocation7 + $0xc58] sm:$0xf0]  ;;  %v6935_v45 = vor.u32 %v8317_v32, %v6932_v34  ;;  %v7090_v38 = vld [vmem:[#allocation10 + $0x70] sm:$0xf] }
 0x1c5   :  { %3437 = vmatpush.bf16.msra.mxu0 %v6631_v24  ;;  %v3187_v13 = vpop.f32.mrf.mxu0  ;;  %v6548_v24 = vld [vmem:[#allocation7 + $0x938] sm:$0xf0]  ;;  %v6951_v27 = vor.u32 %v8321_v10, %v6948_v11  ;;  %v7074_v6 = vld [vmem:[#allocation10 + $0x50] sm:$0xf] }
 0x1c6   :  { %3450 = vmatpush.bf16.msra.mxu1 %v6759_v26  ;;  %3463 = vmatpush.bf16.msra.mxu2 %v6887_v1  ;;  %v8253_v26 = vld [vmem:[#allocation7 + $0xa2c] sm:$0xf]  ;;  %v6551_v36 = vor.u32 %v8221_v17, %v6548_v24  ;;  %v6660_v20 = vld [vmem:[#allocation7 + $0xa18] sm:$0xf0]  ;;  %v7138_v10 = vld [vmem:[#allocation10 + $0xd0] sm:$0xf] }
 0x1c7   :  { %3476 = vmatpush.bf16.msra.mxu3 %v7015_v31  ;;  %v9200_v9 = vpop.f32.mrf.mxu3  ;;  %v6804_v31 = vld [vmem:[#allocation7 + $0xb38] sm:$0xf0]  ;;  %v6679_v61 = vor.u32 %v8253_v26, %v6676_v28  ;;  %v8353_v24 = vld [vmem:[#allocation10 + $0x44] sm:$0xf0]  ;;  %v7130_v26 = vld [vmem:[#allocation10 + $0xc0] sm:$0xf] }
 0x1c8   :  { %v3200_v1 = vpop.f32.mrf.mxu1  ;;  %v6788_v47 = vld [vmem:[#allocation7 + $0xb18] sm:$0xf0]  ;;  %v7058_v32 = vld [vmem:[#allocation10 + $0x30] sm:$0xf] }
 0x1c9   :  { %3438 = vmatpush.bf16.msra.mxu0 %v6615_v40  ;;  %v6807_v40 = vor.u32 %v8285_v39, %v6804_v31  ;;  %v6916_v48 = vld [vmem:[#allocation7 + $0xc18] sm:$0xf0]  ;;  %v8369_v1 = vld [vmem:[#allocation10 + $0xc4] sm:$0xf0] }
 0x1ca   :  { %3451 = vmatpush.bf16.msra.mxu1 %v6743_v53  ;;  %3464 = vmatpush.bf16.msra.mxu2 %v6871_v43  ;;  %v6532_v53 = vld [vmem:[#allocation7 + $0x918] sm:$0xf0]  ;;  %v8249_v43 = vld [vmem:[#allocation7 + $0xa0c] sm:$0xf]  ;;  %v7131_v31 = vor.u32 %v8369_v1, %v7130_v26  ;;  %v8390_v1 = vld [vmem:[#allocation10 + $0x174] sm:$0xf] }
 0x1cb   :  { %3477 = vmatpush.bf16.msra.mxu3 %v6999_v46  ;;  %v8281_v46 = vld [vmem:[#allocation7 + $0xb0c] sm:$0xf]  ;;  %v6663_v18 = vor.u32 %v8249_v43, %v6660_v20  ;;  %v8355_v8 = vld [vmem:[#allocation10 + $0x54] sm:$0xf0]  ;;  %v3186_v20 = vadd.f32 %v9194_v49, %v9188_v35 }
 0x1cc   :  { %v3213_v44 = vpop.f32.mrf.mxu2  ;;  %v6791_v51 = vor.u32 %v8281_v46, %v6788_v47  ;;  %v8371_v11 = vld [vmem:[#allocation10 + $0xd4] sm:$0xf0]  ;;  %v7075_v13 = vor.u32 %v8355_v8, %v7074_v6  ;;  %v8385_v39 = vld [vmem:[#allocation10 + $0x144] sm:$0xf0]  ;;  %v7092_v6 = vld [vmem:[#allocation10 + $0x78] sm:$0xf0] }
 0x1cd   :  { %3439 = vmatpush.bf16.msra.mxu0 %v6599_v22  ;;  %v8359_v22 = vld [vmem:[#allocation10 + $0x74] sm:$0xf0]  ;;  %v7139_v17 = vor.u32 %v8371_v11, %v7138_v10  ;;  %v8349_v46 = vld [vmem:[#allocation10 + $0x24] sm:$0xf0]  ;;  %v3199_v35 = vadd.f32 %v9196_v52, %v3186_v20  ;;  %v3493_v10 = vmul.f32 0.01, %v9186_v58 }
 0x1ce   :  { %3452 = vmatpush.bf16.msra.mxu1 %v6727_v25  ;;  %3465 = vmatpush.bf16.msra.mxu2 %v6855_v41  ;;  %v6535_v25 = vor.u32 %v8217_v37, %v6532_v53  ;;  %v7154_v41 = vld [vmem:[#allocation10 + $0xf0] sm:$0xf]  ;;  %v7091_v55 = vor.u32 %v8359_v22, %v7090_v38  ;;  %v8351_v34 = vld [vmem:[#allocation10 + $0x34] sm:$0xf0]  ;;  %v8374_v11 = vld [vmem:[#allocation10 + $0xf4] sm:$0xf] }
 0x1cf   :  { %3478 = vmatpush.bf16.msra.mxu3 %v6983_v54  ;;  %v3226_v42 = vpop.f32.mrf.mxu3  ;;  %v6919_v54 = vor.u32 %v8313_v19, %v6916_v48  ;;  %v7155_v59 = vor.u32 %v8375_v50, %v7154_v41  ;;  %v8367_v37 = vld [vmem:[#allocation10 + $0xb4] sm:$0xf0]  ;;  %v7186_v53 = vld [vmem:[#allocation10 + $0x130] sm:$0xf]  ;;  %v7114_v19 = vld [vmem:[#allocation10 + $0xa0] sm:$0xf] }
 0x1d0   :  { %v8383_v43 = vld [vmem:[#allocation10 + $0x134] sm:$0xf0]  ;;  %v8365_v42 = vld [vmem:[#allocation10 + $0xa4] sm:$0xf0]  ;;  %v7178_v41 = vld [vmem:[#allocation10 + $0x120] sm:$0xf] }
 0x1d1   :  { %3440 = vmatpush.bf16.msra.mxu0 %v6583_v60  ;;  %v8357_v60 = vld [vmem:[#allocation10 + $0x64] sm:$0xf0]  ;;  %v7187_v38 = vor.u32 %v8383_v43, %v7186_v53  ;;  %v7115_v49 = vor.u32 %v8365_v42, %v7114_v19  ;;  %v8388_v43 = vld [vmem:[#allocation10 + $0x164] sm:$0xf]  ;;  %v7140_v19 = vld [vmem:[#allocation10 + $0xd8] sm:$0xf0] }
 0x1d2   :  { %3453 = vmatpush.bf16.msra.mxu1 %v6711_v7  ;;  %3466 = vmatpush.bf16.msra.mxu2 %v6839_v62  ;;  %v7146_v7 = vld [vmem:[#allocation10 + $0xe0] sm:$0xf]  ;;  %v8373_v62 = vld [vmem:[#allocation10 + $0xe4] sm:$0xf0]  ;;  %v7083_v21 = vor.u32 %v8357_v60, %v7082_v4  ;;  %v7170_v60 = vld [vmem:[#allocation10 + $0x110] sm:$0xf] }
 0x1d3   :  { %3479 = vmatpush.bf16.msra.mxu3 %v6967_v3  ;;  %v8389_v3 = vld [vmem:[#allocation10 + $0x164] sm:$0xf0]  ;;  %v7147_v5 = vor.u32 %v8373_v62, %v7146_v7  ;;  %v8379_v7 = vld [vmem:[#allocation10 + $0x114] sm:$0xf0]  ;;  %v3212_v62 = vadd.f32 %v9198_v2, %v3199_v35  ;;  %v7068_v35 = vld [vmem:[#allocation10 + $0x48] sm:$0xf0] }
 0x1d4   :  { %v8381_v50 = vld [vmem:[#allocation10 + $0x124] sm:$0xf0] }
 0x1d5   :  { %3441 = vmatpush.bf16.msra.mxu0 %v6567_v12  ;;  %v7211_v12 = vor.u32 %v8389_v3, %v7210_v0  ;;  %v7179_v57 = vor.u32 %v8381_v50, %v7178_v41  ;;  %v7098_v0 = vld [vmem:[#allocation10 + $0x80] sm:$0xf]  ;;  %v8361_v3 = vld [vmem:[#allocation10 + $0x84] sm:$0xf0]  ;;  %v7204_v41 = vld [vmem:[#allocation10 + $0x158] sm:$0xf0] }
 0x1d6   :  { %3454 = vmatpush.bf16.msra.mxu1 %v6695_v14  ;;  %3467 = vmatpush.bf16.msra.mxu2 %v6823_v16  ;;  %v7202_v14 = vld [vmem:[#allocation10 + $0x150] sm:$0xf]  ;;  %v8387_v16 = vld [vmem:[#allocation10 + $0x154] sm:$0xf0] }
 0x1d7   :  { %3480 = vmatpush.bf16.msra.mxu3 %v6951_v27 }
 0x1d9   :  { %3442 = vmatpush.bf16.msra.mxu0 %v6551_v36  ;;  %v7122_v36 = vld [vmem:[#allocation10 + $0xb0] sm:$0xf] }
 0x1da   :  { %3455 = vmatpush.bf16.msra.mxu1 %v6679_v61  ;;  %3468 = vmatpush.bf16.msra.mxu2 %v6807_v40  ;;  %v7059_v40 = vor.u32 %v8351_v34, %v7058_v32  ;;  %v7123_v44 = vor.u32 %v8367_v37, %v7122_v36  ;;  %v3497_v32 = vsel %vm3489_vm1, %v9186_v58, %v3493_v10  ;;  %v8372_v36 = vld [vmem:[#allocation10 + $0xe4] sm:$0xf]  ;;  %v7148_v37 = vld [vmem:[#allocation10 + $0xe8] sm:$0xf0]  ;;  %v8354_v58 = vld [vmem:[#allocation10 + $0x54] sm:$0xf] }
 0x1db   :  { %3481 = vmatpush.bf16.msra.mxu3 %v6935_v45  ;;  %v7050_v45 = vld [vmem:[#allocation10 + $0x20] sm:$0xf]  ;;  %v9230_v20 = vpack.c.bf16 %v3497_v32, %v3497_v32  ;;  %v7108_v32 = vld [vmem:[#allocation10 + $0x98] sm:$0xf0] }
 0x1dd   :  { %3443 = vmatpush.bf16.msra.mxu0 %v6535_v25  ;;  %v9206_v27 = vpop.f32.mrf.mxu0  ;;  %v7051_v25 = vor.u32 %v8349_v46, %v7050_v45  ;;  %v7076_v45 = vld [vmem:[#allocation10 + $0x58] sm:$0xf0]  ;;  %v8370_v46 = vld [vmem:[#allocation10 + $0xd4] sm:$0xf] }
 0x1de   :  { %3456 = vmatpush.bf16.msra.mxu1 %v6663_v18  ;;  %3469 = vmatpush.bf16.msra.mxu2 %v6791_v51  ;;  %v7042_v51 = vld [vmem:[#allocation10 + $0x10] sm:$0xf]  ;;  %v7143_v50 = vor.u32 %v8370_v46, %v7140_v19 }
 0x1df   :  { %3482 = vmatpush.bf16.msra.mxu3 %v6919_v54  ;;  %v8347_v54 = vld [vmem:[#allocation10 + $0x14] sm:$0xf0]  ;;  %v8438_v46 = vld [vmem:[#allocation13 + $0xec] sm:$0xf0] }
 0x1e0   :  { %3444 = vmatmul.bf16.vlgmr.msra.gmra.mxu0 %v9120_v30  ;;  %v7066_v30 = vld [vmem:[#allocation10 + $0x40] sm:$0xf]  ;;  %v9208_v28 = vpop.f32.mrf.mxu1  ;;  %v7043_v4 = vor.u32 %v8347_v54, %v7042_v51  ;;  %v7282_v19 = vld [vmem:[#allocation10 + $0x1f0] sm:$0xf] }
 0x1e1   :  { %3894 = vmatpush.bf16.msrb.mxu0 %v7091_v55  ;;  %3457 = vmatmul.bf16.vlgmr.msra.gmra.mxu1 %v9118_v29  ;;  %v7203_v29 = vor.u32 %v8387_v16, %v7202_v14  ;;  %v7106_v55 = vld [vmem:[#allocation10 + $0x90] sm:$0xf]  ;;  %v7162_v16 = vld [vmem:[#allocation10 + $0x100] sm:$0xf] }
 0x1e2   :  { %3907 = vmatpush.bf16.msrb.mxu1 %v7155_v59  ;;  %3470 = vmatmul.bf16.vlgmr.msra.gmra.mxu2 %v9122_v33  ;;  %v7067_v33 = vor.u32 %v8353_v24, %v7066_v30  ;;  %v3492_v59 = vmul.f32 0.01, %v9163_v23  ;;  %v7107_v52 = vor.u32 %v8363_v56, %v7106_v55  ;;  %v3225_v30 = vadd.f32 %v9200_v9, %v3212_v62 }
 0x1e3   :  { %3483 = vmatmul.bf16.vlgmr.msra.gmra.mxu3 %v9128_v15  ;;  %3920 = vmatpush.bf16.msrb.mxu2 %v7219_v63  ;;  %v7194_v15 = vld [vmem:[#allocation10 + $0x140] sm:$0xf]  ;;  %v7099_v24 = vor.u32 %v8361_v3, %v7098_v0  ;;  %v8382_v3 = vld [vmem:[#allocation10 + $0x134] sm:$0xf] }
 0x1e4   :  { %v7195_v61 = vor.u32 %v8385_v39, %v7194_v15  ;;  %v9212_v47 = vpop.f32.mrf.mxu2  ;;  %v7034_v63 = vld [vmem:[#allocation10] sm:$0xf]  ;;  %v8356_v39 = vld [vmem:[#allocation10 + $0x64] sm:$0xf]  ;;  %v3238_v34 = vadd.f32 %v9206_v27, %v3225_v30  ;;  %v7044_v30 = vld [vmem:[#allocation10 + $0x18] sm:$0xf0] }
 0x1e5   :  { %3895 = vmatpush.bf16.msrb.mxu0 %v7083_v21  ;;  %v3239_v22 = vpop.f32.mrf.mxu0  ;;  %v8345_v21 = vld [vmem:[#allocation10 + $0x4] sm:$0xf0] }
 0x1e6   :  { %3908 = vmatpush.bf16.msrb.mxu1 %v7147_v5  ;;  %v8358_v5 = vld [vmem:[#allocation10 + $0x74] sm:$0xf]  ;;  %v7035_v2 = vor.u32 %v8345_v21, %v7034_v63  ;;  %v3251_v27 = vadd.f32 %v9208_v28, %v3238_v34  ;;  %v7079_v22 = vor.u32 %v8354_v58, %v7076_v45  ;;  %v8368_v28 = vld [vmem:[#allocation10 + $0xc4] sm:$0xf]  ;;  %v7124_v63 = vld [vmem:[#allocation10 + $0xb8] sm:$0xf0] }
 0x1e7   :  { %3921 = vmatpush.bf16.msrb.mxu2 %v7211_v12  ;;  %v9214_v48 = vpop.f32.mrf.mxu3  ;;  %v7156_v12 = vld [vmem:[#allocation10 + $0xf8] sm:$0xf0]  ;;  %v7095_v26 = vor.u32 %v8358_v5, %v7092_v6  ;;  %v8348_v6 = vld [vmem:[#allocation10 + $0x24] sm:$0xf]  ;;  %v8378_v45 = vld [vmem:[#allocation10 + $0x114] sm:$0xf] }
 0x1e8   :  { %v3252_v18 = vpop.f32.mrf.mxu1  ;;  %v7159_v15 = vor.u32 %v8374_v11, %v7156_v12  ;;  %v7188_v5 = vld [vmem:[#allocation10 + $0x138] sm:$0xf0]  ;;  %v8364_v11 = vld [vmem:[#allocation10 + $0xa4] sm:$0xf]  ;;  %v7116_v12 = vld [vmem:[#allocation10 + $0xa8] sm:$0xf0] }
 0x1e9   :  { %3896 = vmatpush.bf16.msrb.mxu0 %v7075_v13  ;;  %v7171_v13 = vor.u32 %v8379_v7, %v7170_v60  ;;  %v8352_v18 = vld [vmem:[#allocation10 + $0x44] sm:$0xf]  ;;  %v8350_v60 = vld [vmem:[#allocation10 + $0x34] sm:$0xf]  ;;  %v7060_v7 = vld [vmem:[#allocation10 + $0x38] sm:$0xf0] }
 0x1ea   :  { %3909 = vmatpush.bf16.msrb.mxu1 %v7139_v17  ;;  %v8377_v17 = vld [vmem:[#allocation10 + $0x104] sm:$0xf0]  ;;  %v7071_v56 = vor.u32 %v8352_v18, %v7068_v35  ;;  %v7063_v0 = vor.u32 %v8350_v60, %v7060_v7  ;;  %v8344_v34 = vld [vmem:[#allocation10 + $0x4] sm:$0xf]  ;;  %v8466_v60 = vld [vmem:[#allocation13 + $0x1cc] sm:$0xf0] }
 0x1eb   :  { %3922 = vmatpush.bf16.msrb.mxu2 %v7203_v29  ;;  %v7220_v29 = vld [vmem:[#allocation10 + $0x178] sm:$0xf0]  ;;  %v7163_v9 = vor.u32 %v8377_v17, %v7162_v16  ;;  %v8346_v17 = vld [vmem:[#allocation10 + $0x14] sm:$0xf]  ;;  %v7402_v58 = vld [vmem:[#allocation13 + $0xe0] sm:$0xf] }
 0x1ec   :  { %v3265_v8 = vpop.f32.mrf.mxu2 }
 0x1ed   :  { %3897 = vmatpush.bf16.msrb.mxu0 %v7067_v33  ;;  %v3496_v33 = vsel %vm3488_vm0, %v9163_v23, %v3492_v59  ;;  %v7212_v23 = vld [vmem:[#allocation10 + $0x168] sm:$0xf0] }
 0x1ee   :  { %3910 = vmatpush.bf16.msrb.mxu1 %v7131_v31  ;;  %v7084_v31 = vld [vmem:[#allocation10 + $0x68] sm:$0xf0]  ;;  %v7215_v42 = vor.u32 %v8388_v43, %v7212_v23 }
 0x1ef   :  { %3923 = vmatpush.bf16.msrb.mxu2 %v7195_v61  ;;  %v3278_v14 = vpop.f32.mrf.mxu3  ;;  %v7223_v61 = vor.u32 %v8390_v1, %v7220_v29  ;;  %v7087_v53 = vor.u32 %v8356_v39, %v7084_v31  ;;  %v7196_v59 = vld [vmem:[#allocation10 + $0x148] sm:$0xf0]  ;;  %v7119_v1 = vor.u32 %v8364_v11, %v7116_v12  ;;  %v8362_v29 = vld [vmem:[#allocation10 + $0x94] sm:$0xf]  ;;  %v7354_v11 = vld [vmem:[#allocation13 + $0x80] sm:$0xf] }
 0x1f0   :  { %v7052_v8 = vld [vmem:[#allocation10 + $0x28] sm:$0xf0]  ;;  %v7191_v14 = vor.u32 %v8382_v3, %v7188_v5  ;;  %v7266_v3 = vld [vmem:[#allocation10 + $0x1d0] sm:$0xf]  ;;  %v8403_v5 = vld [vmem:[#allocation10 + $0x1d4] sm:$0xf0] }
 0x1f1   :  { %3898 = vmatpush.bf16.msrb.mxu0 %v7059_v40  ;;  %v9228_v40 = vpack.c.bf16 %v3496_v33, %v3496_v33  ;;  %v7055_v16 = vor.u32 %v8348_v6, %v7052_v8  ;;  %v8380_v33 = vld [vmem:[#allocation10 + $0x124] sm:$0xf]  ;;  %v8462_v6 = vld [vmem:[#allocation13 + $0x1ac] sm:$0xf0]  ;;  %v7267_v8 = vor.u32 %v8403_v5, %v7266_v3 }
 0x1f2   :  { %3911 = vmatpush.bf16.msrb.mxu1 %v7123_v44  ;;  %v7151_v44 = vor.u32 %v8372_v36, %v7148_v37  ;;  %v7047_v37 = vor.u32 %v8346_v17, %v7044_v30  ;;  %v8458_v17 = vld [vmem:[#allocation13 + $0x18c] sm:$0xf0] }
 0x1f3   :  { %3924 = vmatpush.bf16.msrb.mxu2 %v7187_v38  ;;  %v3264_v38 = vadd.f32 %v9212_v47, %v3251_v27  ;;  %v7172_v27 = vld [vmem:[#allocation10 + $0x118] sm:$0xf0] }
 0x1f4   :  { %v7175_v18 = vor.u32 %v8378_v45, %v7172_v27 }
 0x1f5   :  { %3899 = vmatpush.bf16.msrb.mxu0 %v7051_v25  ;;  %v8386_v25 = vld [vmem:[#allocation10 + $0x154] sm:$0xf]  ;;  %v3277_v54 = vadd.f32 %v9214_v48, %v3264_v38  ;;  %v7530_v38 = vld [vmem:[#allocation13 + $0x1e0] sm:$0xf] }
 0x1f6   :  { %3912 = vmatpush.bf16.msrb.mxu1 %v7115_v49  ;;  %v7132_v49 = vld [vmem:[#allocation10 + $0xc8] sm:$0xf0]  ;;  %v7207_v51 = vor.u32 %v8386_v25, %v7204_v41 }
 0x1f7   :  { %3925 = vmatpush.bf16.msrb.mxu2 %v7179_v57  ;;  %v8384_v57 = vld [vmem:[#allocation10 + $0x144] sm:$0xf]  ;;  %v7135_v47 = vor.u32 %v8368_v28, %v7132_v49  ;;  %v7403_v49 = vor.u32 %v8438_v46, %v7402_v58  ;;  %v8450_v58 = vld [vmem:[#allocation13 + $0x14c] sm:$0xf0] }
 0x1f8   :  { %v7199_v21 = vor.u32 %v8384_v57, %v7196_v59  ;;  %v8434_v57 = vld [vmem:[#allocation13 + $0xcc] sm:$0xf0]  ;;  %v7274_v59 = vld [vmem:[#allocation10 + $0x1e0] sm:$0xf] }
 0x1f9   :  { %3900 = vmatpush.bf16.msrb.mxu0 %v7043_v4  ;;  %v7306_v46 = vld [vmem:[#allocation13 + $0x20] sm:$0xf] }
 0x1fa   :  { %3913 = vmatpush.bf16.msrb.mxu1 %v7107_v52  ;;  %v8366_v52 = vld [vmem:[#allocation10 + $0xb4] sm:$0xf] }
 0x1fb   :  { %3926 = vmatpush.bf16.msrb.mxu2 %v7171_v13  ;;  %v7127_v48 = vor.u32 %v8366_v52, %v7124_v63  ;;  %v7370_v63 = vld [vmem:[#allocation13 + $0xa0] sm:$0xf] }
 0x1fd   :  { %3901 = vmatpush.bf16.msrb.mxu0 %v7035_v2  ;;  %v3289_v55 = vpop.f32.mrf.mxu0 }
 0x1fe   :  { %3914 = vmatpush.bf16.msrb.mxu1 %v7099_v24  ;;  %v3290_v62 = vadd.f32 %v3289_v55, %v3277_v54  ;;  %v8376_v54 = vld [vmem:[#allocation10 + $0x104] sm:$0xf]  ;;  %v7164_v55 = vld [vmem:[#allocation10 + $0x108] sm:$0xf0] }
 0x1ff   :  { %3927 = vmatpush.bf16.msrb.mxu2 %v7163_v9  ;;  %v7036_v9 = vld [vmem:[#allocation10 + $0x8] sm:$0xf0] }
 0x200   :  { %3902 = vmatmul.bf16.vlgmr.msrb.gmra.mxu0 %v9228_v40  ;;  %v3302_v4 = vpop.f32.mrf.mxu1 }
 0x201   :  { %3946 = vmatpush.bf16.msra.mxu0 %v7095_v26  ;;  %3915 = vmatmul.bf16.vlgmr.msrb.gmra.mxu1 %v9230_v20  ;;  %v3303_v10 = vadd.f32 %v3302_v4, %v3290_v62  ;;  %v7514_v4 = vld [vmem:[#allocation13 + $0x1c0] sm:$0xf]  ;;  %v7167_v62 = vor.u32 %v8376_v54, %v7164_v55  ;;  %v7410_v55 = vld [vmem:[#allocation13 + $0xe8] sm:$0xf] }
 0x202   :  { %3959 = vmatpush.bf16.msra.mxu1 %v7159_v15  ;;  %v7180_v15 = vld [vmem:[#allocation10 + $0x128] sm:$0xf0] }
 0x203   :  { %3972 = vmatpush.bf16.msra.mxu2 %v7223_v61  ;;  %v8360_v61 = vld [vmem:[#allocation10 + $0x84] sm:$0xf]  ;;  %v7183_v43 = vor.u32 %v8380_v33, %v7180_v15  ;;  %v8399_v33 = vld [vmem:[#allocation10 + $0x1b4] sm:$0xf0] }
 0x204   :  { %v3315_v13 = vpop.f32.mrf.mxu2  ;;  %v7466_v15 = vld [vmem:[#allocation13 + $0x160] sm:$0xf] }
 0x205   :  { %3947 = vmatpush.bf16.msra.mxu0 %v7087_v53  ;;  %v3316_v2 = vadd.f32 %v3315_v13, %v3303_v10  ;;  %v3291_v26 = vpop.f32.mrf.mxu0  ;;  %v7100_v53 = vld [vmem:[#allocation10 + $0x88] sm:$0xf0]  ;;  %v8426_v13 = vld [vmem:[#allocation13 + $0x8c] sm:$0xf0] }
 0x206   :  { %3960 = vmatpush.bf16.msra.mxu1 %v7151_v44  ;;  %v7111_v44 = vor.u32 %v8362_v29, %v7108_v32  ;;  %v7103_v28 = vor.u32 %v8360_v61, %v7100_v53  ;;  %v7338_v26 = vld [vmem:[#allocation13 + $0x60] sm:$0xf]  ;;  %v8422_v29 = vld [vmem:[#allocation13 + $0x6c] sm:$0xf0] }
 0x207   :  { %3973 = vmatpush.bf16.msra.mxu2 %v7215_v42  ;;  %v9237_v24 = vpop.f32.mrf.mxu3  ;;  %vm3490_vm2 = vcmp.gt.f32.partialorder %v3316_v2, 0.0  ;;  %v3494_v31 = vmul.f32 0.01, %v3316_v2  ;;  %v8407_v42 = vld [vmem:[#allocation10 + $0x1f4] sm:$0xf0] }
 0x208   :  { %v3304_v39 = vpop.f32.mrf.mxu1  ;;  %v7283_v41 = vor.u32 %v8407_v42, %v7282_v19  ;;  %v8418_v61 = vld [vmem:[#allocation13 + $0x4c] sm:$0xf0]  ;;  %v7242_v53 = vld [vmem:[#allocation10 + $0x1a0] sm:$0xf] }
 0x209   :  { %3948 = vmatpush.bf16.msra.mxu0 %v7079_v22  ;;  %v3498_v36 = vsel %vm3490_vm2, %v3316_v2, %v3494_v31  ;;  %v8470_v22 = vld [vmem:[#allocation13 + $0x1ec] sm:$0xf0]  ;;  %v8401_v2 = vld [vmem:[#allocation10 + $0x1c4] sm:$0xf0] }
 0x20a   :  { %3961 = vmatpush.bf16.msra.mxu1 %v7143_v50  ;;  %v9239_v23 = vpack.c.bf16 %v3498_v36, %v3498_v36  ;;  %v7039_v50 = vor.u32 %v8344_v34, %v7036_v9  ;;  %3933 = vmatpush.bf16.msrb.mxu3 %v7283_v41  ;;  %v8454_v39 = vld [vmem:[#allocation13 + $0x16c] sm:$0xf0]  ;;  %v7339_v36 = vor.u32 %v8422_v29, %v7338_v26  ;;  %v7434_v41 = vld [vmem:[#allocation13 + $0x120] sm:$0xf] }
 0x20b   :  { %3974 = vmatpush.bf16.msra.mxu2 %v7207_v51  ;;  %v7386_v51 = vld [vmem:[#allocation13 + $0xc0] sm:$0xf]  ;;  %v7467_v9 = vor.u32 %v8454_v39, %v7466_v15  ;;  %v7268_v15 = vld [vmem:[#allocation10 + $0x1d8] sm:$0xf0] }
 0x20c   :  { %3928 = vmatmul.bf16.vlgmr.msrb.gmra.mxu2 %v9239_v23  ;;  %v3317_v25 = vpop.f32.mrf.mxu2  ;;  %v7387_v52 = vor.u32 %v8434_v57, %v7386_v51  ;;  %v4004_v57 = vld [vmem:[#allocation5] sm:$0xff] }
 0x20d   :  { %3949 = vmatpush.bf16.msra.mxu0 %v7071_v56  ;;  %v7531_v56 = vor.u32 %v8470_v22, %v7530_v38  ;;  %v8414_v38 = vld [vmem:[#allocation13 + $0x2c] sm:$0xf0]  ;;  %v8395_v25 = vld [vmem:[#allocation10 + $0x194] sm:$0xf0]  ;;  %v4080_v5 = vunpack.c.l.b16 %v4004_v57 }
 0x20e   :  { %3962 = vmatpush.bf16.msra.mxu1 %v7135_v47  ;;  %v8405_v47 = vld [vmem:[#allocation10 + $0x1e4] sm:$0xf0]  ;;  %v7234_v22 = vld [vmem:[#allocation10 + $0x190] sm:$0xf]  ;;  %v7307_v54 = vor.u32 %v8414_v38, %v7306_v46  ;;  %v8459_v38 = vld [vmem:[#allocation13 + $0x194] sm:$0xf0] }
 0x20f   :  { %3975 = vmatpush.bf16.msra.mxu2 %v7199_v21  ;;  %v3330_v35 = vpop.f32.mrf.mxu3  ;;  %v7275_v7 = vor.u32 %v8405_v47, %v7274_v59  ;;  %v7515_v21 = vor.u32 %v8466_v60, %v7514_v4  ;;  %v7418_v47 = vld [vmem:[#allocation13 + $0x100] sm:$0xf]  ;;  %v8393_v60 = vld [vmem:[#allocation10 + $0x184] sm:$0xf0]  ;;  %v9253_v26 = vpack.c.b16 %v4080_v5, %v4080_v5  ;;  %v8451_v5 = vld [vmem:[#allocation13 + $0x154] sm:$0xf0] }
 0x210   :  { %v7235_v35 = vor.u32 %v8395_v25, %v7234_v22  ;;  %v7226_v4 = vld [vmem:[#allocation10 + $0x180] sm:$0xf]  ;;  %v8591_v22 = vld [vmem:[#allocation8] sm:$0xf] }
 0x211   :  { %3950 = vmatpush.bf16.msra.mxu0 %v7063_v0  ;;  %v8430_v0 = vld [vmem:[#allocation13 + $0xac] sm:$0xf0]  ;;  %3934 = vmatpush.bf16.msrb.mxu3 %v7275_v7  ;;  %v681_v25 = vperm.slane %v8591_v22, 3 }
 0x212   :  { %3963 = vmatpush.bf16.msra.mxu1 %v7127_v48  ;;  %v7498_v48 = vld [vmem:[#allocation13 + $0x1a0] sm:$0xf]  ;;  %v7371_v10 = vor.u32 %v8430_v0, %v7370_v63  ;;  %v8442_v7 = vld [vmem:[#allocation13 + $0x10c] sm:$0xf0]  ;;  %v7284_v63 = vld [vmem:[#allocation10 + $0x1f8] sm:$0xf0] }
 0x213   :  { %3976 = vmatpush.bf16.msra.mxu2 %v7191_v14  ;;  %v7499_v12 = vor.u32 %v8462_v6, %v7498_v48  ;;  %v7258_v14 = vld [vmem:[#allocation10 + $0x1c0] sm:$0xf]  ;;  %v8471_v0 = vld [vmem:[#allocation13 + $0x1f4] sm:$0xf0] }
 0x214   :  { %v7259_v30 = vor.u32 %v8401_v2, %v7258_v14  ;;  %v8435_v2 = vld [vmem:[#allocation13 + $0xd4] sm:$0xf0] }
 0x215   :  { %3951 = vmatpush.bf16.msra.mxu0 %v7055_v16  ;;  %3935 = vmatpush.bf16.msrb.mxu3 %v7267_v8  ;;  %v7482_v16 = vld [vmem:[#allocation13 + $0x180] sm:$0xf] }
 0x216   :  { %3964 = vmatpush.bf16.msra.mxu1 %v7119_v1  ;;  %v7483_v1 = vor.u32 %v8458_v17, %v7482_v16  ;;  %v8404_v16 = vld [vmem:[#allocation10 + $0x1e4] sm:$0xf]  ;;  %v7276_v17 = vld [vmem:[#allocation10 + $0x1e8] sm:$0xf0] }
 0x217   :  { %3977 = vmatpush.bf16.msra.mxu2 %v7183_v43  ;;  %v8397_v43 = vld [vmem:[#allocation10 + $0x1a4] sm:$0xf0] }
 0x218   :  { %v7243_v45 = vor.u32 %v8397_v43, %v7242_v53  ;;  %v8400_v53 = vld [vmem:[#allocation10 + $0x1c4] sm:$0xf]  ;;  %v7260_v43 = vld [vmem:[#allocation10 + $0x1c8] sm:$0xf0] }
 0x219   :  { %3952 = vmatpush.bf16.msra.mxu0 %v7047_v37  ;;  %3936 = vmatpush.bf16.msrb.mxu3 %v7259_v30  ;;  %v7322_v37 = vld [vmem:[#allocation13 + $0x40] sm:$0xf]  ;;  %v7522_v30 = vld [vmem:[#allocation13 + $0x1c8] sm:$0xf]  ;;  %v7263_v46 = vor.u32 %v8400_v53, %v7260_v43 }
 0x21a   :  { %3965 = vmatpush.bf16.msra.mxu1 %v7111_v44  ;;  %v7450_v44 = vld [vmem:[#allocation13 + $0x140] sm:$0xf]  ;;  %v7323_v27 = vor.u32 %v8418_v61, %v7322_v37  ;;  %v7506_v37 = vld [vmem:[#allocation13 + $0x1a8] sm:$0xf]  ;;  %v8463_v61 = vld [vmem:[#allocation13 + $0x1b4] sm:$0xf0] }
 0x21b   :  { %3978 = vmatpush.bf16.msra.mxu2 %v7175_v18  ;;  %v7451_v42 = vor.u32 %v8450_v58, %v7450_v44  ;;  %v7507_v58 = vor.u32 %v8463_v61, %v7506_v37  ;;  %v7372_v37 = vld [vmem:[#allocation13 + $0xb0] sm:$0xf0]  ;;  %v8411_v61 = vld [vmem:[#allocation13 + $0x14] sm:$0xf0]  ;;  %v8392_v43 = vld [vmem:[#allocation10 + $0x184] sm:$0xf] }
 0x21d   :  { %3953 = vmatpush.bf16.msra.mxu0 %v7039_v50  ;;  %v9245_v31 = vpop.f32.mrf.mxu0  ;;  %v8446_v50 = vld [vmem:[#allocation13 + $0x12c] sm:$0xf0] }
 0x21e   :  { %3966 = vmatpush.bf16.msra.mxu1 %v7103_v28  ;;  %v7290_v28 = vld [vmem:[#allocation13] sm:$0xf]  ;;  %v7435_v59 = vor.u32 %v8446_v50, %v7434_v41  ;;  %v7346_v50 = vld [vmem:[#allocation13 + $0x68] sm:$0xf] }
 0x21f   :  { %3979 = vmatpush.bf16.msra.mxu2 %v7167_v62  ;;  %v7227_v62 = vor.u32 %v8393_v60, %v7226_v4  ;;  %v7330_v4 = vld [vmem:[#allocation13 + $0x48] sm:$0xf]  ;;  %v8436_v60 = vld [vmem:[#allocation13 + $0xe4] sm:$0xf] }
 0x220   :  { %3954 = vmatmul.bf16.vlgmr.msra.gmra.mxu0 %v9228_v40  ;;  %v7355_v40 = vor.u32 %v8426_v13, %v7354_v11  ;;  %v9247_v34 = vpop.f32.mrf.mxu1  ;;  %v7394_v13 = vld [vmem:[#allocation13 + $0xc8] sm:$0xf] }
 0x221   :  { %4406 = vmatpush.bf16.msrb.mxu0 %v7403_v49  ;;  %3967 = vmatmul.bf16.vlgmr.msra.gmra.mxu1 %v9230_v20  ;;  %v7250_v20 = vld [vmem:[#allocation10 + $0x1b0] sm:$0xf] }
 0x222   :  { %4419 = vmatpush.bf16.msrb.mxu1 %v7531_v56  ;;  %3980 = vmatmul.bf16.vlgmr.msra.gmra.mxu2 %v9239_v23  ;;  %v7251_v32 = vor.u32 %v8399_v33, %v7250_v20  ;;  %v8410_v49 = vld [vmem:[#allocation13 + $0xc] sm:$0xf0]  ;;  %v8439_v56 = vld [vmem:[#allocation13 + $0xf4] sm:$0xf0]  ;;  %v7395_v20 = vor.u32 %v8435_v2, %v7394_v13 }
 0x223   :  { %v7291_v6 = vor.u32 %v8410_v49, %v7290_v28  ;;  %v7411_v11 = vor.u32 %v8439_v56, %v7410_v55  ;;  %v8402_v33 = vld [vmem:[#allocation10 + $0x1d4] sm:$0xf]  ;;  %v7252_v49 = vld [vmem:[#allocation10 + $0x1b8] sm:$0xf0] }
 0x224   :  { %3937 = vmatpush.bf16.msrb.mxu3 %v7251_v32  ;;  %v9249_v23 = vpop.f32.mrf.mxu2  ;;  %v7378_v32 = vld [vmem:[#allocation13 + $0xa8] sm:$0xf]  ;;  %v8398_v28 = vld [vmem:[#allocation10 + $0x1b4] sm:$0xf]  ;;  %v8455_v55 = vld [vmem:[#allocation13 + $0x174] sm:$0xf0] }
 0x225   :  { %4407 = vmatpush.bf16.msrb.mxu0 %v7387_v52  ;;  %v3343_v18 = vpop.f32.mrf.mxu0  ;;  %v8406_v52 = vld [vmem:[#allocation10 + $0x1f4] sm:$0xf]  ;;  %v7255_v56 = vor.u32 %v8398_v28, %v7252_v49 }
 0x226   :  { %4420 = vmatpush.bf16.msrb.mxu1 %v7515_v21  ;;  %v7538_v21 = vld [vmem:[#allocation13 + $0x1e8] sm:$0xf]  ;;  %v7287_v48 = vor.u32 %v8406_v52, %v7284_v63  ;;  %v8419_v52 = vld [vmem:[#allocation13 + $0x54] sm:$0xf0]  ;;  %v7340_v28 = vld [vmem:[#allocation13 + $0x70] sm:$0xf0] }
 0x227   :  { %v9251_v19 = vpop.f32.mrf.mxu3  ;;  %v7539_v14 = vor.u32 %v8471_v0, %v7538_v21  ;;  %v8396_v21 = vld [vmem:[#allocation10 + $0x1a4] sm:$0xf]  ;;  %v7244_v0 = vld [vmem:[#allocation10 + $0x1a8] sm:$0xf0] }
 0x228   :  { %3938 = vmatpush.bf16.msrb.mxu3 %v7243_v45  ;;  %v3356_v51 = vpop.f32.mrf.mxu1  ;;  %v7362_v45 = vld [vmem:[#allocation13 + $0x88] sm:$0xf] }
 0x229   :  { %4408 = vmatpush.bf16.msrb.mxu0 %v7371_v10  ;;  %v4081_v10 = vunpack.c.h.b16 %v4004_v57  ;;  %v3329_v57 = vadd.f32 %v9237_v24, %v681_v25  ;;  %v7331_v24 = vor.u32 %v8419_v52, %v7330_v4  ;;  %v7308_v4 = vld [vmem:[#allocation13 + $0x30] sm:$0xf0]  ;;  %v8408_v52 = vld [vmem:[#allocation13 + $0x4] sm:$0xf] }
 0x22a   :  { %4421 = vmatpush.bf16.msrb.mxu1 %v7499_v12  ;;  %v7419_v12 = vor.u32 %v8442_v7, %v7418_v47  ;;  %v7404_v7 = vld [vmem:[#allocation13 + $0xf0] sm:$0xf0] }
 0x22b   :  { %v9255_v29 = vpack.c.b16 %v4081_v10, %v4081_v10  ;;  %v7407_v63 = vor.u32 %v8436_v60, %v7404_v7  ;;  %v8432_v10 = vld [vmem:[#allocation13 + $0xc4] sm:$0xf] }
 0x22c   :  { %3939 = vmatpush.bf16.msrb.mxu3 %v7235_v35  ;;  %v3369_v3 = vpop.f32.mrf.mxu2  ;;  %v8423_v35 = vld [vmem:[#allocation13 + $0x74] sm:$0xf0] }
 0x22d   :  { %4409 = vmatpush.bf16.msrb.mxu0 %v7355_v40  ;;  %v8467_v40 = vld [vmem:[#allocation13 + $0x1d4] sm:$0xf0]  ;;  %v7347_v47 = vor.u32 %v8423_v35, %v7346_v50  ;;  %v7458_v3 = vld [vmem:[#allocation13 + $0x148] sm:$0xf]  ;;  %4432 = vmatpush.bf16.msrb.mxu2 %v7407_v63  ;;  %v8420_v35 = vld [vmem:[#allocation13 + $0x64] sm:$0xf] }
 0x22e   :  { %4422 = vmatpush.bf16.msrb.mxu1 %v7483_v1  ;;  %v7279_v1 = vor.u32 %v8404_v16, %v7276_v17  ;;  %v7523_v39 = vor.u32 %v8467_v40, %v7522_v30  ;;  %v7459_v13 = vor.u32 %v8451_v5, %v7458_v3  ;;  %v8394_v16 = vld [vmem:[#allocation10 + $0x194] sm:$0xf]  ;;  %v7236_v17 = vld [vmem:[#allocation10 + $0x198] sm:$0xf0]  ;;  %v8437_v3 = vld [vmem:[#allocation13 + $0xec] sm:$0xf] }
 0x22f   :  { %v3382_v8 = vpop.f32.mrf.mxu3  ;;  %v7292_v63 = vld [vmem:[#allocation13 + $0x10] sm:$0xf0]  ;;  %v7412_v5 = vld [vmem:[#allocation13 + $0xf8] sm:$0xf0] }
 0x230   :  { %3940 = vmatpush.bf16.msrb.mxu3 %v7227_v62  ;;  %v7314_v8 = vld [vmem:[#allocation13 + $0x28] sm:$0xf] }
 0x231   :  { %4410 = vmatpush.bf16.msrb.mxu0 %v7339_v36  ;;  %v8431_v36 = vld [vmem:[#allocation13 + $0xb4] sm:$0xf0] }
 0x232   :  { %4423 = vmatpush.bf16.msrb.mxu1 %v7467_v9  ;;  %v7271_v9 = vor.u32 %v8402_v33, %v7268_v15  ;;  %v7379_v44 = vor.u32 %v8431_v36, %v7378_v32  ;;  %v7239_v33 = vor.u32 %v8394_v16, %v7236_v17  ;;  %v7298_v32 = vld [vmem:[#allocation13 + $0x8] sm:$0xf]  ;;  %v8428_v36 = vld [vmem:[#allocation13 + $0xa4] sm:$0xf]  ;;  %v8429_v16 = vld [vmem:[#allocation13 + $0xac] sm:$0xf] }
 0x233   :  { %v7375_v53 = vor.u32 %v8428_v36, %v7372_v37  ;;  %v7380_v17 = vld [vmem:[#allocation13 + $0xb8] sm:$0xf0]  ;;  %v8464_v37 = vld [vmem:[#allocation13 + $0x1c4] sm:$0xf] }
 0x234   :  { %3985 = vmatpush.bf16.msra.mxu3 %v7287_v48  ;;  %v7247_v48 = vor.u32 %v8396_v21, %v7244_v0  ;;  %v7295_v0 = vor.u32 %v8408_v52, %v7292_v63 }
 0x235   :  { %4411 = vmatpush.bf16.msrb.mxu0 %v7323_v27  ;;  %v8427_v27 = vld [vmem:[#allocation13 + $0x94] sm:$0xf0] }
 0x236   :  { %4424 = vmatpush.bf16.msrb.mxu1 %v7451_v42  ;;  %v7490_v42 = vld [vmem:[#allocation13 + $0x188] sm:$0xf]  ;;  %v7363_v41 = vor.u32 %v8427_v27, %v7362_v45  ;;  %v8443_v45 = vld [vmem:[#allocation13 + $0x114] sm:$0xf0] }
 0x237   :  { %v7491_v18 = vor.u32 %v8459_v38, %v7490_v42  ;;  %v8424_v42 = vld [vmem:[#allocation13 + $0x84] sm:$0xf]  ;;  %v7356_v38 = vld [vmem:[#allocation13 + $0x90] sm:$0xf0] }
 0x238   :  { %3986 = vmatpush.bf16.msra.mxu3 %v7279_v1  ;;  %v7442_v1 = vld [vmem:[#allocation13 + $0x128] sm:$0xf] }
 0x239   :  { %4412 = vmatpush.bf16.msrb.mxu0 %v7307_v54  ;;  %v7474_v54 = vld [vmem:[#allocation13 + $0x168] sm:$0xf] }
 0x23a   :  { %4425 = vmatpush.bf16.msrb.mxu1 %v7435_v59  ;;  %v7475_v62 = vor.u32 %v8455_v55, %v7474_v54  ;;  %v8416_v54 = vld [vmem:[#allocation13 + $0x44] sm:$0xf]  ;;  %v7324_v55 = vld [vmem:[#allocation13 + $0x50] sm:$0xf0] }
 0x23c   :  { %3987 = vmatpush.bf16.msra.mxu3 %v7271_v9 }
 0x23d   :  { %4413 = vmatpush.bf16.msrb.mxu0 %v7291_v6  ;;  %v9259_v51 = vpop.f32.mrf.mxu0  ;;  %v3342_v6 = vadd.f32 %v9245_v31, %v3329_v57  ;;  %v7327_v57 = vor.u32 %v8416_v54, %v7324_v55  ;;  %v7468_v54 = vld [vmem:[#allocation13 + $0x170] sm:$0xf0] }
 0x23e   :  { %4426 = vmatpush.bf16.msrb.mxu1 %v7419_v12 }
 0x23f   :  { %v3355_v31 = vadd.f32 %v9247_v34, %v3342_v6  ;;  %v7299_v34 = vor.u32 %v8411_v61, %v7298_v32  ;;  %v8433_v6 = vld [vmem:[#allocation13 + $0xcc] sm:$0xf] }
 0x240   :  { %4414 = vmatmul.bf16.vlgmr.msrb.gmra.mxu0 %v9253_v26  ;;  %3988 = vmatpush.bf16.msra.mxu3 %v7263_v46  ;;  %v9262_v59 = vpop.f32.mrf.mxu1 }
 0x241   :  { %4458 = vmatpush.bf16.msra.mxu0 %v7411_v11  ;;  %4427 = vmatmul.bf16.vlgmr.msrb.gmra.mxu1 %v9255_v29  ;;  %v7388_v11 = vld [vmem:[#allocation13 + $0xd0] sm:$0xf0]  ;;  %v3368_v46 = vadd.f32 %v9249_v23, %v3355_v31  ;;  %v7343_v23 = vor.u32 %v8420_v35, %v7340_v28  ;;  %v8413_v35 = vld [vmem:[#allocation13 + $0x2c] sm:$0xf]  ;;  %v7316_v28 = vld [vmem:[#allocation13 + $0x38] sm:$0xf0] }
 0x242   :  { %4471 = vmatpush.bf16.msra.mxu1 %v7539_v14  ;;  %v8415_v14 = vld [vmem:[#allocation13 + $0x34] sm:$0xf0]  ;;  %v7391_v2 = vor.u32 %v8432_v10, %v7388_v11  ;;  %v7319_v55 = vor.u32 %v8413_v35, %v7316_v28 }
 0x244   :  { %3989 = vmatpush.bf16.msra.mxu3 %v7255_v56  ;;  %v3419_v12 = vpop.f32.mrf.mxu2  ;;  %4433 = vmatpush.bf16.msrb.mxu2 %v7391_v2 }
 0x245   :  { %4459 = vmatpush.bf16.msra.mxu0 %v7395_v20  ;;  %v3395_v40 = vpop.f32.mrf.mxu0  ;;  %v8447_v20 = vld [vmem:[#allocation13 + $0x134] sm:$0xf0] }
 0x246   :  { %4472 = vmatpush.bf16.msra.mxu1 %v7523_v39  ;;  %v7315_v39 = vor.u32 %v8415_v14, %v7314_v8  ;;  %v7443_v9 = vor.u32 %v8447_v20, %v7442_v1  ;;  %v7532_v40 = vld [vmem:[#allocation13 + $0x1f0] sm:$0xf0]  ;;  %v7383_v1 = vor.u32 %v8429_v16, %v7380_v17 }
 0x247   :  { %v3432_v30 = vpop.f32.mrf.mxu3 }
 0x248   :  { %3990 = vmatpush.bf16.msra.mxu3 %v7247_v48  ;;  %v3408_v15 = vpop.f32.mrf.mxu1  ;;  %4434 = vmatpush.bf16.msrb.mxu2 %v7375_v53  ;;  %v7415_v48 = vor.u32 %v8437_v3, %v7412_v5  ;;  %v7730_v3 = vld [vmem:[#allocation16 + $0x170] sm:$0xf]  ;;  %v8519_v5 = vld [vmem:[#allocation16 + $0x174] sm:$0xf0] }
 0x249   :  { %4460 = vmatpush.bf16.msra.mxu0 %v7379_v44  ;;  %v7228_v44 = vld [vmem:[#allocation10 + $0x188] sm:$0xf0] }
 0x24a   :  { %4473 = vmatpush.bf16.msra.mxu1 %v7507_v58  ;;  %v7426_v58 = vld [vmem:[#allocation13 + $0x108] sm:$0xf]  ;;  %v7231_v27 = vor.u32 %v8392_v43, %v7228_v44  ;;  %v8425_v15 = vld [vmem:[#allocation13 + $0x8c] sm:$0xf] }
 0x24b   :  { %v7427_v25 = vor.u32 %v8443_v45, %v7426_v58  ;;  %v8421_v44 = vld [vmem:[#allocation13 + $0x6c] sm:$0xf]  ;;  %v7348_v58 = vld [vmem:[#allocation13 + $0x78] sm:$0xf0]  ;;  %v8460_v45 = vld [vmem:[#allocation13 + $0x1a4] sm:$0xf] }
 0x24c   :  { %3991 = vmatpush.bf16.msra.mxu3 %v7239_v33  ;;  %v3421_v22 = vpop.f32.mrf.mxu2 }
 0x24d   :  { %4461 = vmatpush.bf16.msra.mxu0 %v7363_v41  ;;  %v7359_v41 = vor.u32 %v8424_v42, %v7356_v38  ;;  %v8417_v42 = vld [vmem:[#allocation13 + $0x4c] sm:$0xf]  ;;  %v7332_v38 = vld [vmem:[#allocation13 + $0x58] sm:$0xf0]  ;;  %v8456_v22 = vld [vmem:[#allocation13 + $0x184] sm:$0xf] }
 0x24e   :  { %4474 = vmatpush.bf16.msra.mxu1 %v7491_v18  ;;  %v3381_v18 = vadd.f32 %v9251_v19, %v3368_v46  ;;  %v8412_v19 = vld [vmem:[#allocation13 + $0x24] sm:$0xf]  ;;  %v7351_v46 = vor.u32 %v8421_v44, %v7348_v58 }
 0x24f   :  { %v3434_v50 = vpop.f32.mrf.mxu3  ;;  %4435 = vmatpush.bf16.msrb.mxu2 %v7359_v41  ;;  %v7311_v60 = vor.u32 %v8412_v19, %v7308_v4  ;;  %v7335_v41 = vor.u32 %v8417_v42, %v7332_v38  ;;  %v7300_v19 = vld [vmem:[#allocation13 + $0x18] sm:$0xf0]  ;;  %v7690_v58 = vld [vmem:[#allocation16 + $0x120] sm:$0xf] }
 0x250   :  { %3992 = vmatpush.bf16.msra.mxu3 %v7231_v27  ;;  %v3394_v49 = vadd.f32 %v9259_v51, %v3381_v18  ;;  %v7500_v27 = vld [vmem:[#allocation13 + $0x1b0] sm:$0xf0]  ;;  %v9273_v50 = vld [vmem:[#allocation11] sm:$0x3] }
 0x251   :  { %4462 = vmatpush.bf16.msra.mxu0 %v7347_v47  ;;  %v7476_v42 = vld [vmem:[#allocation13 + $0x178] sm:$0xf0] }
 0x252   :  { %4475 = vmatpush.bf16.msra.mxu1 %v7475_v62  ;;  %v3407_v56 = vadd.f32 %v9262_v59, %v3394_v49  ;;  %v3570_v49 = vperm.slane %v9273_v50, 0 }
 0x253   :  { %4436 = vmatpush.bf16.msrb.mxu2 %v7343_v23  ;;  %v8452_v23 = vld [vmem:[#allocation13 + $0x164] sm:$0xf] }
 0x254   :  { %v3420_v47 = vadd.f32 %v3419_v12, %v3407_v56 }
 0x255   :  { %4463 = vmatpush.bf16.msra.mxu0 %v7331_v24  ;;  %v7396_v24 = vld [vmem:[#allocation13 + $0xd8] sm:$0xf0] }
 0x256   :  { %4476 = vmatpush.bf16.msra.mxu1 %v7459_v13  ;;  %v3433_v7 = vadd.f32 %v3432_v30, %v3420_v47  ;;  %v7399_v10 = vor.u32 %v8433_v6, %v7396_v24  ;;  %v8468_v30 = vld [vmem:[#allocation13 + $0x1e4] sm:$0xf]  ;;  %v8409_v47 = vld [vmem:[#allocation13 + $0xc] sm:$0xf]  ;;  %v7731_v6 = vor.u32 %v8519_v5, %v7730_v3 }
 0x257   :  { %4437 = vmatpush.bf16.msrb.mxu2 %v7327_v57  ;;  %v7535_v31 = vor.u32 %v8468_v30, %v7532_v40  ;;  %v7471_v57 = vor.u32 %v8452_v23, %v7468_v54  ;;  %v8465_v30 = vld [vmem:[#allocation13 + $0x1cc] sm:$0xf]  ;;  %v7714_v40 = vld [vmem:[#allocation16 + $0x150] sm:$0xf] }
 0x258   :  { %v8449_v54 = vld [vmem:[#allocation13 + $0x14c] sm:$0xf] }
 0x259   :  { %4464 = vmatpush.bf16.msra.mxu0 %v7315_v39  ;;  %v7364_v39 = vld [vmem:[#allocation13 + $0x98] sm:$0xf0] }
 0x25a   :  { %4477 = vmatpush.bf16.msra.mxu1 %v7443_v9  ;;  %v7516_v9 = vld [vmem:[#allocation13 + $0x1d0] sm:$0xf0]  ;;  %v7367_v61 = vor.u32 %v8425_v15, %v7364_v39  ;;  %v8461_v39 = vld [vmem:[#allocation13 + $0x1ac] sm:$0xf] }
 0x25b   :  { %4438 = vmatpush.bf16.msrb.mxu2 %v7311_v60  ;;  %v7519_v43 = vor.u32 %v8464_v37, %v7516_v9  ;;  %v7698_v37 = vld [vmem:[#allocation16 + $0x130] sm:$0xf]  ;;  %v8511_v9 = vld [vmem:[#allocation16 + $0x134] sm:$0xf0] }
 0x25c   :  { %v7699_v44 = vor.u32 %v8511_v9, %v7698_v37  ;;  %v8504_v9 = vld [vmem:[#allocation16 + $0x104] sm:$0xf] }
 0x25d   :  { %4465 = vmatpush.bf16.msra.mxu0 %v7299_v34  ;;  %v3445_v62 = vpop.f32.mrf.mxu0  ;;  %v7503_v34 = vor.u32 %v8460_v45, %v7500_v27  ;;  %v8509_v45 = vld [vmem:[#allocation16 + $0x124] sm:$0xf0] }
 0x25e   :  { %4478 = vmatpush.bf16.msra.mxu1 %v7427_v25  ;;  %v3458_v51 = vpop.f32.mrf.mxu1  ;;  %v3446_v21 = vadd.f32 %v3445_v62, %v3433_v7  ;;  %v7484_v25 = vld [vmem:[#allocation13 + $0x190] sm:$0xf0]  ;;  %v8448_v7 = vld [vmem:[#allocation13 + $0x144] sm:$0xf]  ;;  %v7691_v38 = vor.u32 %v8509_v45, %v7690_v58 }
 0x25f   :  { %4439 = vmatpush.bf16.msrb.mxu2 %v7295_v0  ;;  %v7487_v18 = vor.u32 %v8456_v22, %v7484_v25  ;;  %v7452_v62 = vld [vmem:[#allocation13 + $0x150] sm:$0xf0]  ;;  %v7594_v45 = vld [vmem:[#allocation16 + $0x60] sm:$0xf] }
 0x260   :  { %4466 = vmatmul.bf16.vlgmr.msra.gmra.mxu0 %v9253_v26  ;;  %v3459_v59 = vadd.f32 %v3458_v51, %v3446_v21  ;;  %v7303_v51 = vor.u32 %v8409_v47, %v7300_v19  ;;  %v7455_v63 = vor.u32 %v8448_v7, %v7452_v62  ;;  %v8444_v21 = vld [vmem:[#allocation13 + $0x124] sm:$0xf]  ;;  %v7436_v0 = vld [vmem:[#allocation13 + $0x130] sm:$0xf0]  ;;  %v8518_v19 = vld [vmem:[#allocation16 + $0x174] sm:$0xf] }
 0x261   :  { %4479 = vmatmul.bf16.vlgmr.msra.gmra.mxu1 %v9255_v29  ;;  %v7682_v25 = vld [vmem:[#allocation16 + $0x110] sm:$0xf]  ;;  %v8445_v7 = vld [vmem:[#allocation13 + $0x12c] sm:$0xf]  ;;  %v7444_v62 = vld [vmem:[#allocation13 + $0x138] sm:$0xf0] }
 0x262   :  { %4440 = vmatmul.bf16.vlgmr.msrb.gmra.mxu2 %v9253_v26  ;;  %v7447_v5 = vor.u32 %v8445_v7, %v7444_v62  ;;  %v8477_v7 = vld [vmem:[#allocation16 + $0x24] sm:$0xf0]  ;;  %v7658_v62 = vld [vmem:[#allocation16 + $0xe0] sm:$0xf] }
 0x263   :  { %4484 = vmatpush.bf16.msra.mxu2 %v7415_v48 }
 0x265   :  { %v3471_v8 = vpop.f32.mrf.mxu2  ;;  %v3447_v13 = vpop.f32.mrf.mxu0 }
 0x266   :  { %v3472_v11 = vadd.f32 %v3471_v8, %v3459_v59  ;;  %v3484_v12 = vpop.f32.mrf.mxu3  ;;  %v3460_v14 = vpop.f32.mrf.mxu1  ;;  %v7439_v59 = vor.u32 %v8444_v21, %v7436_v0  ;;  %v8440_v8 = vld [vmem:[#allocation13 + $0x104] sm:$0xf]  ;;  %v8516_v21 = vld [vmem:[#allocation16 + $0x164] sm:$0xf]  ;;  %v7724_v0 = vld [vmem:[#allocation16 + $0x168] sm:$0xf0] }
 0x267   :  { %4485 = vmatpush.bf16.msra.mxu2 %v7399_v10  ;;  %v7420_v10 = vld [vmem:[#allocation13 + $0x110] sm:$0xf0]  ;;  %v7722_v13 = vld [vmem:[#allocation16 + $0x160] sm:$0xf]  ;;  %v8517_v14 = vld [vmem:[#allocation16 + $0x164] sm:$0xf0] }
 0x268   :  { %v3485_v2 = vadd.f32 %v3484_v12, %v3472_v11  ;;  %v8469_v11 = vld [vmem:[#allocation13 + $0x1ec] sm:$0xf]  ;;  %v7540_v12 = vld [vmem:[#allocation13 + $0x1f8] sm:$0xf0]  ;;  %v7423_v16 = vor.u32 %v8440_v8, %v7420_v10  ;;  %v8514_v8 = vld [vmem:[#allocation16 + $0x154] sm:$0xf] }
 0x269   :  { %v7543_v17 = vor.u32 %v8469_v11, %v7540_v12  ;;  %v7716_v10 = vld [vmem:[#allocation16 + $0x158] sm:$0xf0] }
 0x26a   :  { %vm3491_vm3 = vcmp.gt.f32.partialorder %v3485_v2, 0.0  ;;  %v3495_v20 = vmul.f32 0.01, %v3485_v2 }
 0x26b   :  { %4486 = vmatpush.bf16.msra.mxu2 %v7383_v1  ;;  %v8515_v1 = vld [vmem:[#allocation16 + $0x154] sm:$0xf0] }
 0x26c   :  { %v3499_v33 = vsel %vm3491_vm3, %v3485_v2, %v3495_v20  ;;  %v7723_v2 = vor.u32 %v8517_v14, %v7722_v13  ;;  %v7715_v20 = vor.u32 %v8515_v1, %v7714_v40  ;;  %v7719_v13 = vor.u32 %v8514_v8, %v7716_v10  ;;  %v8499_v8 = vld [vmem:[#allocation16 + $0xd4] sm:$0xf0] }
 0x26d   :  { %v3503_v32 = vpack.c.bf16 %v3499_v33, %v3499_v33  ;;  %v3473_v36 = vpop.f32.mrf.mxu2  ;;  %v7706_v33 = vld [vmem:[#allocation16 + $0x140] sm:$0xf] }
 0x26e   :  { %v3486_v53 = vpop.f32.mrf.mxu3 }
 0x26f   :  { %3941 = vmatmul.bf16.vlgmr.msrb.gmra.mxu3 %v3503_v32  ;;  %4487 = vmatpush.bf16.msra.mxu2 %v7367_v61  ;;  %v8457_v53 = vld [vmem:[#allocation13 + $0x18c] sm:$0xf] }
 0x270   :  { %4445 = vmatpush.bf16.msrb.mxu3 %v7535_v31  ;;  %v8513_v31 = vld [vmem:[#allocation16 + $0x144] sm:$0xf0] }
 0x271   :  { %v7707_v36 = vor.u32 %v8513_v31, %v7706_v33  ;;  %v7692_v33 = vld [vmem:[#allocation16 + $0x128] sm:$0xf0] }
 0x273   :  { %4488 = vmatpush.bf16.msra.mxu2 %v7351_v46  ;;  %v3571_v46 = vperm.slane %v9273_v50, 1  ;;  %v8505_v50 = vld [vmem:[#allocation16 + $0x104] sm:$0xf0] }
 0x274   :  { %4446 = vmatpush.bf16.msrb.mxu3 %v7519_v43  ;;  %v7492_v43 = vld [vmem:[#allocation13 + $0x198] sm:$0xf0] }
 0x275   :  { %v7495_v27 = vor.u32 %v8457_v53, %v7492_v43  ;;  %v7602_v53 = vld [vmem:[#allocation16 + $0x70] sm:$0xf] }
 0x277   :  { %4489 = vmatpush.bf16.msra.mxu2 %v7335_v41  ;;  %v8507_v41 = vld [vmem:[#allocation16 + $0x114] sm:$0xf0] }
 0x278   :  { %4447 = vmatpush.bf16.msrb.mxu3 %v7503_v34  ;;  %v8453_v34 = vld [vmem:[#allocation13 + $0x16c] sm:$0xf] }
 0x279   :  { %v7479_v28 = vor.u32 %v8453_v34, %v7476_v42  ;;  %v7586_v42 = vld [vmem:[#allocation16 + $0x50] sm:$0xf] }
 0x27b   :  { %4490 = vmatpush.bf16.msra.mxu2 %v7319_v55  ;;  %v7460_v55 = vld [vmem:[#allocation13 + $0x158] sm:$0xf0] }
 0x27c   :  { %4448 = vmatpush.bf16.msrb.mxu3 %v7487_v18 }
 0x27d   :  { %v3903_v56 = vpop.f32.mrf.mxu0 }
 0x27e   :  { %v3904_v4 = vadd.f32 %v3903_v56, %v3570_v49  ;;  %v3916_v60 = vpop.f32.mrf.mxu1  ;;  %v7683_v56 = vor.u32 %v8507_v41, %v7682_v25  ;;  %v9284_v25 = vld [vmem:[#allocation14] sm:$0xf]  ;;  %v7578_v41 = vld [vmem:[#allocation16 + $0x40] sm:$0xf] }
 0x27f   :  { %3993 = vmatmul.bf16.vlgmr.msra.gmra.mxu3 %v3503_v32  ;;  %4491 = vmatpush.bf16.msra.mxu2 %v7303_v51  ;;  %v7508_v32 = vld [vmem:[#allocation13 + $0x1b8] sm:$0xf0] }
 0x280   :  { %v3917_v52 = vadd.f32 %v3916_v60, %v3904_v4  ;;  %4449 = vmatpush.bf16.msrb.mxu3 %v7471_v57  ;;  %v7511_v61 = vor.u32 %v8461_v39, %v7508_v32  ;;  %v7674_v57 = vld [vmem:[#allocation16 + $0x100] sm:$0xf]  ;;  %v7732_v4 = vld [vmem:[#allocation16 + $0x178] sm:$0xf0]  ;;  %v7463_v60 = vor.u32 %v8449_v54, %v7460_v55  ;;  %v8506_v32 = vld [vmem:[#allocation16 + $0x114] sm:$0xf] }
 0x281   :  { %v7675_v51 = vor.u32 %v8505_v50, %v7674_v57  ;;  %v7570_v54 = vld [vmem:[#allocation16 + $0x30] sm:$0xf]  ;;  %v8479_v55 = vld [vmem:[#allocation16 + $0x34] sm:$0xf0] }
 0x282   :  { %4492 = vmatmul.bf16.vlgmr.msra.gmra.mxu2 %v9253_v26  ;;  %v7524_v26 = vld [vmem:[#allocation13 + $0x1d8] sm:$0xf0]  ;;  %v7571_v57 = vor.u32 %v8479_v55, %v7570_v54  ;;  %v7778_v55 = vld [vmem:[#allocation16 + $0x1d0] sm:$0xf] }
 0x283   :  { %4942 = vmatpush.bf16.msrb.mxu2 %v7731_v6  ;;  %v7527_v15 = vor.u32 %v8465_v30, %v7524_v26  ;;  %v7428_v6 = vld [vmem:[#allocation13 + $0x118] sm:$0xf0]  ;;  %v8510_v30 = vld [vmem:[#allocation16 + $0x134] sm:$0xf]  ;;  %v7700_v26 = vld [vmem:[#allocation16 + $0x138] sm:$0xf0] }
 0x284   :  { %4450 = vmatpush.bf16.msrb.mxu3 %v7455_v63  ;;  %v7735_v63 = vor.u32 %v8518_v19, %v7732_v4  ;;  %v7703_v1 = vor.u32 %v8510_v30, %v7700_v26  ;;  %v8503_v50 = vld [vmem:[#allocation16 + $0xf4] sm:$0xf0]  ;;  %v4073_v4 = vperm.slane %v9284_v25, 2  ;;  %v8497_v30 = vld [vmem:[#allocation16 + $0xc4] sm:$0xf0] }
 0x285   :  { %v3905_v48 = vpop.f32.mrf.mxu0 }
 0x286   :  { %v3918_v24 = vpop.f32.mrf.mxu1 }
 0x287   :  { %4943 = vmatpush.bf16.msrb.mxu2 %v7723_v2  ;;  %v7727_v24 = vor.u32 %v8516_v21, %v7724_v0  ;;  %v8512_v2 = vld [vmem:[#allocation16 + $0x144] sm:$0xf] }
 0x288   :  { %4451 = vmatpush.bf16.msrb.mxu3 %v7439_v59  ;;  %v8441_v59 = vld [vmem:[#allocation13 + $0x10c] sm:$0xf] }
 0x289   :  { %v7431_v11 = vor.u32 %v8441_v59, %v7428_v6  ;;  %v8475_v59 = vld [vmem:[#allocation16 + $0x14] sm:$0xf0]  ;;  %v7650_v6 = vld [vmem:[#allocation16 + $0xd0] sm:$0xf] }
 0x28b   :  { %4944 = vmatpush.bf16.msrb.mxu2 %v7715_v20  ;;  %v8508_v20 = vld [vmem:[#allocation16 + $0x124] sm:$0xf] }
 0x28c   :  { %4452 = vmatpush.bf16.msrb.mxu3 %v7423_v16  ;;  %v7708_v16 = vld [vmem:[#allocation16 + $0x148] sm:$0xf0]  ;;  %v7695_v31 = vor.u32 %v8508_v20, %v7692_v33  ;;  %v8486_v33 = vld [vmem:[#allocation16 + $0x74] sm:$0xf] }
 0x28f   :  { %4453 = vmatmul.bf16.vlgmr.msrb.gmra.mxu3 %v9255_v29  ;;  %4945 = vmatpush.bf16.msrb.mxu2 %v7707_v36  ;;  %v3929_v22 = vpop.f32.mrf.mxu2  ;;  %v7684_v36 = vld [vmem:[#allocation16 + $0x118] sm:$0xf0] }
 0x290   :  { %4497 = vmatpush.bf16.msra.mxu3 %v7543_v17  ;;  %v9279_v18 = vadd.f32 %v3929_v22, %v3917_v52  ;;  %v7711_v17 = vor.u32 %v8512_v2, %v7708_v16  ;;  %v7687_v37 = vor.u32 %v8506_v32, %v7684_v36  ;;  %v7546_v2 = vld [vmem:[#allocation16] sm:$0xf]  ;;  %v8473_v16 = vld [vmem:[#allocation16 + $0x4] sm:$0xf0]  ;;  %v7794_v36 = vld [vmem:[#allocation16 + $0x1f0] sm:$0xf] }
 0x293   :  { %4946 = vmatpush.bf16.msrb.mxu2 %v7699_v44 }
 0x294   :  { %4498 = vmatpush.bf16.msra.mxu3 %v7527_v15 }
 0x297   :  { %4947 = vmatpush.bf16.msrb.mxu2 %v7691_v38  ;;  %v3931_v52 = vpop.f32.mrf.mxu2  ;;  %v8483_v38 = vld [vmem:[#allocation16 + $0x54] sm:$0xf0] }
 0x298   :  { %4499 = vmatpush.bf16.msra.mxu3 %v7511_v61  ;;  %v7676_v61 = vld [vmem:[#allocation16 + $0x108] sm:$0xf0]  ;;  %v7587_v22 = vor.u32 %v8483_v38, %v7586_v42  ;;  %v8501_v52 = vld [vmem:[#allocation16 + $0xe4] sm:$0xf0] }
 0x299   :  { %v7679_v43 = vor.u32 %v8504_v9, %v7676_v61  ;;  %v8533_v42 = vld [vmem:[#allocation16 + $0x1e4] sm:$0xf0] }
 0x29b   :  { %4948 = vmatpush.bf16.msrb.mxu2 %v7683_v56  ;;  %v7666_v56 = vld [vmem:[#allocation16 + $0xf0] sm:$0xf] }
 0x29c   :  { %4500 = vmatpush.bf16.msra.mxu3 %v7495_v27  ;;  %v8485_v27 = vld [vmem:[#allocation16 + $0x64] sm:$0xf0] }
 0x29d   :  { %v3955_v35 = vpop.f32.mrf.mxu0  ;;  %v7595_v34 = vor.u32 %v8485_v27, %v7594_v45  ;;  %v7596_v45 = vld [vmem:[#allocation16 + $0x68] sm:$0xf0]  ;;  %v7786_v27 = vld [vmem:[#allocation16 + $0x1e0] sm:$0xf] }
 0x29e   :  { %v3956_v49 = vadd.f32 %v3955_v35, %v3571_v46  ;;  %v3968_v23 = vpop.f32.mrf.mxu1  ;;  %v8481_v35 = vld [vmem:[#allocation16 + $0x44] sm:$0xf0]  ;;  %v7787_v38 = vor.u32 %v8533_v42, %v7786_v27  ;;  %v8523_v27 = vld [vmem:[#allocation16 + $0x194] sm:$0xf0] }
 0x29f   :  { %4949 = vmatpush.bf16.msrb.mxu2 %v7675_v51  ;;  %v8536_v42 = vld [vmem:[#allocation19] sm:$0xff] }
 0x2a0   :  { %v3969_v47 = vadd.f32 %v3968_v23, %v3956_v49  ;;  %4501 = vmatpush.bf16.msra.mxu3 %v7479_v28  ;;  %v4071_v28 = vperm.slane %v9284_v25, 0  ;;  %v7579_v49 = vor.u32 %v8481_v35, %v7578_v41  ;;  %v8493_v41 = vld [vmem:[#allocation16 + $0xa4] sm:$0xf0] }
 0x2a3   :  { %4994 = vmatpush.bf16.msra.mxu2 %v7735_v63  ;;  %v7659_v63 = vor.u32 %v8501_v52, %v7658_v62  ;;  %v8529_v52 = vld [vmem:[#allocation16 + $0x1c4] sm:$0xf0] }
 0x2a4   :  { %4502 = vmatpush.bf16.msra.mxu3 %v7463_v60  ;;  %v7562_v60 = vld [vmem:[#allocation16 + $0x20] sm:$0xf] }
 0x2a5   :  { %v3957_v3 = vpop.f32.mrf.mxu0  ;;  %v3981_v12 = vpop.f32.mrf.mxu2  ;;  %v7563_v51 = vor.u32 %v8477_v7, %v7562_v60  ;;  %v7580_v60 = vld [vmem:[#allocation16 + $0x48] sm:$0xf0]  ;;  %v8540_v7 = vld [vmem:[#allocation19 + $0x20] sm:$0xff] }
 0x2a6   :  { %v3970_v48 = vpop.f32.mrf.mxu1  ;;  %v9281_v14 = vadd.f32 %v3981_v12, %v3969_v47  ;;  %v7667_v47 = vor.u32 %v8503_v50, %v7666_v56  ;;  %v8531_v56 = vld [vmem:[#allocation16 + $0x1d4] sm:$0xf0]  ;;  %v7618_v50 = vld [vmem:[#allocation16 + $0x90] sm:$0xf] }
 0x2a7   :  { %4995 = vmatpush.bf16.msra.mxu2 %v7727_v24  ;;  %v7554_v48 = vld [vmem:[#allocation16 + $0x10] sm:$0xf] }
 0x2a8   :  { %4503 = vmatpush.bf16.msra.mxu3 %v7447_v5  ;;  %4929 = vmatpush.bf16.msrb.mxu1 %v7667_v47  ;;  %v7555_v24 = vor.u32 %v8475_v59, %v7554_v48  ;;  %v8491_v47 = vld [vmem:[#allocation16 + $0x94] sm:$0xf0]  ;;  %v8478_v48 = vld [vmem:[#allocation16 + $0x34] sm:$0xf]  ;;  %v7572_v59 = vld [vmem:[#allocation16 + $0x38] sm:$0xf0] }
 0x2ab   :  { %4996 = vmatpush.bf16.msra.mxu2 %v7719_v13 }
 0x2ac   :  { %4504 = vmatpush.bf16.msra.mxu3 %v7431_v11  ;;  %4930 = vmatpush.bf16.msrb.mxu1 %v7659_v63  ;;  %v7651_v11 = vor.u32 %v8499_v8, %v7650_v6  ;;  %v8539_v63 = vld [vmem:[#allocation19 + $0x18] sm:$0xff]  ;;  %v8502_v6 = vld [vmem:[#allocation16 + $0xf4] sm:$0xf] }
 0x2ad   :  { %v3983_v40 = vpop.f32.mrf.mxu2  ;;  %v7668_v8 = vld [vmem:[#allocation16 + $0xf8] sm:$0xf0] }
 0x2ae   :  { %v8543_v40 = vld [vmem:[#allocation19 + $0x38] sm:$0xff] }
 0x2af   :  { %4505 = vmatmul.bf16.vlgmr.msra.gmra.mxu3 %v9255_v29  ;;  %4997 = vmatpush.bf16.msra.mxu2 %v7711_v17  ;;  %v8487_v29 = vld [vmem:[#allocation16 + $0x74] sm:$0xf0]  ;;  %v7642_v17 = vld [vmem:[#allocation16 + $0xc0] sm:$0xf] }
 0x2b0   :  { %v7603_v44 = vor.u32 %v8487_v29, %v7602_v53  ;;  %4931 = vmatpush.bf16.msrb.mxu1 %v7651_v11  ;;  %v7643_v20 = vor.u32 %v8497_v30, %v7642_v17  ;;  %v7634_v53 = vld [vmem:[#allocation16 + $0xb0] sm:$0xf]  ;;  %v8495_v29 = vld [vmem:[#allocation16 + $0xb4] sm:$0xf0]  ;;  %v7564_v17 = vld [vmem:[#allocation16 + $0x28] sm:$0xf0] }
 0x2b1   :  { %v8527_v11 = vld [vmem:[#allocation16 + $0x1b4] sm:$0xf0]  ;;  %v8500_v30 = vld [vmem:[#allocation16 + $0xe4] sm:$0xf] }
 0x2b2   :  { %4916 = vmatpush.bf16.msrb.mxu0 %v7603_v44  ;;  %v7635_v44 = vor.u32 %v8495_v29, %v7634_v53  ;;  %v8537_v53 = vld [vmem:[#allocation19 + $0x8] sm:$0xff] }
 0x2b3   :  { %4998 = vmatpush.bf16.msra.mxu2 %v7703_v1  ;;  %v7547_v1 = vor.u32 %v8473_v16, %v7546_v2  ;;  %v8476_v16 = vld [vmem:[#allocation16 + $0x24] sm:$0xf] }
 0x2b4   :  { %4932 = vmatpush.bf16.msrb.mxu1 %v7643_v20  ;;  %v8525_v20 = vld [vmem:[#allocation16 + $0x1a4] sm:$0xf0] }
 0x2b6   :  { %4917 = vmatpush.bf16.msrb.mxu0 %v7595_v34 }
 0x2b7   :  { %4999 = vmatpush.bf16.msra.mxu2 %v7695_v31  ;;  %v7604_v31 = vld [vmem:[#allocation16 + $0x78] sm:$0xf0] }
 0x2b8   :  { %v7607_v32 = vor.u32 %v8486_v33, %v7604_v31  ;;  %4933 = vmatpush.bf16.msrb.mxu1 %v7635_v44  ;;  %v8538_v33 = vld [vmem:[#allocation19 + $0x10] sm:$0xff] }
 0x2ba   :  { %4918 = vmatpush.bf16.msrb.mxu0 %v7587_v22  ;;  %v7626_v22 = vld [vmem:[#allocation16 + $0xa0] sm:$0xf] }
 0x2bb   :  { %5000 = vmatpush.bf16.msra.mxu2 %v7687_v37  ;;  %v8535_v37 = vld [vmem:[#allocation16 + $0x1f4] sm:$0xf0]  ;;  %v7627_v35 = vor.u32 %v8493_v41, %v7626_v22  ;;  %v7548_v22 = vld [vmem:[#allocation16 + $0x8] sm:$0xf0]  ;;  %v8496_v41 = vld [vmem:[#allocation16 + $0xc4] sm:$0xf] }
 0x2bc   :  { %v7795_v61 = vor.u32 %v8535_v37, %v7794_v36  ;;  %v8474_v36 = vld [vmem:[#allocation16 + $0x14] sm:$0xf]  ;;  %v7556_v37 = vld [vmem:[#allocation16 + $0x18] sm:$0xf0] }
 0x2bd   :  { %v4415_v15 = vpop.f32.mrf.mxu0  ;;  %4934 = vmatpush.bf16.msrb.mxu1 %v7627_v35  ;;  %v7559_v29 = vor.u32 %v8474_v36, %v7556_v37  ;;  %v7644_v35 = vld [vmem:[#allocation16 + $0xc8] sm:$0xf0] }
 0x2be   :  { %v4428_v39 = vpop.f32.mrf.mxu1  ;;  %v4416_v23 = vadd.f32 %v4415_v15, %v4071_v28  ;;  %4919 = vmatpush.bf16.msrb.mxu0 %v7579_v49  ;;  %4955 = vmatpush.bf16.msrb.mxu3 %v7795_v61  ;;  %v8482_v28 = vld [vmem:[#allocation16 + $0x54] sm:$0xf]  ;;  %v7588_v49 = vld [vmem:[#allocation16 + $0x58] sm:$0xf0] }
 0x2bf   :  { %5001 = vmatpush.bf16.msra.mxu2 %v7679_v43  ;;  %v7591_v54 = vor.u32 %v8482_v28, %v7588_v49  ;;  %v7647_v49 = vor.u32 %v8496_v41, %v7644_v35 }
 0x2c0   :  { %v4429_v19 = vadd.f32 %v4428_v39, %v4416_v23  ;;  %v8541_v23 = vld [vmem:[#allocation19 + $0x28] sm:$0xff] }
 0x2c2   :  { %4920 = vmatpush.bf16.msrb.mxu0 %v7571_v57  ;;  %v4514_v21 = vmul.f32 0.01, %v4429_v19  ;;  %vm4510_vm4 = vcmp.gt.f32.partialorder %v4429_v19, 0.0  ;;  %4956 = vmatpush.bf16.msrb.mxu3 %v7787_v38  ;;  %v7779_v57 = vor.u32 %v8531_v56, %v7778_v55  ;;  %v8472_v38 = vld [vmem:[#allocation16 + $0x4] sm:$0xf] }
 0x2c3   :  { %v7551_v28 = vor.u32 %v8472_v38, %v7548_v22  ;;  %v8534_v56 = vld [vmem:[#allocation16 + $0x1f4] sm:$0xf] }
 0x2c4   :  { %v4518_v12 = vsel %vm4510_vm4, %v4429_v19, %v4514_v21  ;;  %v7619_v19 = vor.u32 %v8491_v47, %v7618_v50  ;;  %v8494_v47 = vld [vmem:[#allocation16 + $0xb4] sm:$0xf] }
 0x2c5   :  { %v4417_v58 = vpop.f32.mrf.mxu0  ;;  %v9288_v15 = vpack.c.bf16 %v4518_v12, %v4518_v12 }
 0x2c6   :  { %v4430_v46 = vpop.f32.mrf.mxu1  ;;  %4921 = vmatpush.bf16.msrb.mxu0 %v7563_v51  ;;  %v8484_v58 = vld [vmem:[#allocation16 + $0x64] sm:$0xf]  ;;  %4957 = vmatpush.bf16.msrb.mxu3 %v7779_v57  ;;  %v7770_v51 = vld [vmem:[#allocation16 + $0x1c0] sm:$0xf]  ;;  %v7796_v57 = vld [vmem:[#allocation16 + $0x1f8] sm:$0xf0] }
 0x2c7   :  { %v8542_v46 = vld [vmem:[#allocation19 + $0x30] sm:$0xff]  ;;  %v7599_v34 = vor.u32 %v8484_v58, %v7596_v45  ;;  %4935 = vmatpush.bf16.msrb.mxu1 %v7619_v19  ;;  %v7771_v21 = vor.u32 %v8529_v52, %v7770_v51  ;;  %v7799_v50 = vor.u32 %v8534_v56, %v7796_v57  ;;  %v7636_v19 = vld [vmem:[#allocation16 + $0xb8] sm:$0xf0]  ;;  %v8492_v52 = vld [vmem:[#allocation16 + $0xa4] sm:$0xf] }
 0x2c8   :  { %v7746_v45 = vld [vmem:[#allocation16 + $0x190] sm:$0xf]  ;;  %v8547_v56 = vld [vmem:[#allocation19 + $0x58] sm:$0xff] }
 0x2c9   :  { %v8545_v57 = vld [vmem:[#allocation19 + $0x48] sm:$0xff] }
 0x2ca   :  { %4922 = vmatpush.bf16.msrb.mxu0 %v7555_v24  ;;  %4958 = vmatpush.bf16.msrb.mxu3 %v7771_v21  ;;  %v7575_v24 = vor.u32 %v8478_v48, %v7572_v59  ;;  %v8490_v48 = vld [vmem:[#allocation16 + $0x94] sm:$0xf]  ;;  %v7620_v59 = vld [vmem:[#allocation16 + $0x98] sm:$0xf0] }
 0x2ce   :  { %4923 = vmatpush.bf16.msrb.mxu0 %v7547_v1  ;;  %v7567_v1 = vor.u32 %v8476_v16, %v7564_v17 }
 0x2d1   :  { %4924 = vmatmul.bf16.vlgmr.msrb.gmra.mxu0 %v9288_v15 }
 0x2d2   :  { %4968 = vmatpush.bf16.msra.mxu0 %v7607_v32 }
 0x2d6   :  { %4969 = vmatpush.bf16.msra.mxu0 %v7599_v34 }
 0x2da   :  { %4970 = vmatpush.bf16.msra.mxu0 %v7591_v54 }
 0x2dd   :  { %v4467_v0 = vpop.f32.mrf.mxu0 }
 0x2de   :  { %v4468_v3 = vadd.f32 %v4467_v0, %v4073_v4  ;;  %v4480_v5 = vpop.f32.mrf.mxu1  ;;  %v8480_v4 = vld [vmem:[#allocation16 + $0x44] sm:$0xf]  ;;  %v7610_v0 = vld [vmem:[#allocation16 + $0x80] sm:$0xf] }
 0x2df   :  { %v7583_v62 = vor.u32 %v8480_v4, %v7580_v60  ;;  %v7639_v60 = vor.u32 %v8494_v47, %v7636_v19  ;;  %v8544_v47 = vld [vmem:[#allocation19 + $0x40] sm:$0xff] }
 0x2e0   :  { %v4481_v10 = vadd.f32 %v4480_v5, %v4468_v3  ;;  %v8489_v3 = vld [vmem:[#allocation16 + $0x84] sm:$0xf0] }
 0x2e1   :  { %4971 = vmatpush.bf16.msra.mxu0 %v7583_v62  ;;  %v7611_v5 = vor.u32 %v8489_v3, %v7610_v0  ;;  %v7788_v62 = vld [vmem:[#allocation16 + $0x1e8] sm:$0xf0]  ;;  %v8530_v0 = vld [vmem:[#allocation16 + $0x1d4] sm:$0xf]  ;;  %v7780_v3 = vld [vmem:[#allocation16 + $0x1d8] sm:$0xf0] }
 0x2e2   :  { %vm4512_vm5 = vcmp.gt.f32.partialorder %v4481_v10, 0.0  ;;  %v4516_v13 = vmul.f32 0.01, %v4481_v10 }
 0x2e3   :  { %4936 = vmatpush.bf16.msrb.mxu1 %v7611_v5 }
 0x2e4   :  { %v4520_v26 = vsel %vm4512_vm5, %v4481_v10, %v4516_v13  ;;  %v7762_v10 = vld [vmem:[#allocation16 + $0x1b0] sm:$0xf]  ;;  %v7671_v13 = vor.u32 %v8502_v6, %v7668_v8  ;;  %v7783_v6 = vor.u32 %v8530_v0, %v7780_v3  ;;  %v7772_v8 = vld [vmem:[#allocation16 + $0x1c8] sm:$0xf0]  ;;  %v8559_v0 = vld [vmem:[#allocation20 + $0x38] sm:$0xff] }
 0x2e5   :  { %v9290_v39 = vpack.c.bf16 %v4520_v26, %v4520_v26  ;;  %v4469_v9 = vpop.f32.mrf.mxu0  ;;  %v9294_v12 = vpop.f32.mrf.mxu2  ;;  %v7763_v2 = vor.u32 %v8527_v11, %v7762_v10  ;;  %v7660_v26 = vld [vmem:[#allocation16 + $0xe8] sm:$0xf0]  ;;  %4972 = vmatpush.bf16.msra.mxu0 %v7575_v24  ;;  %v8528_v24 = vld [vmem:[#allocation16 + $0x1c4] sm:$0xf]  ;;  %v7623_v11 = vor.u32 %v8490_v48, %v7620_v59  ;;  %v8558_v48 = vld [vmem:[#allocation20 + $0x30] sm:$0xff] }
 0x2e6   :  { %v4482_v43 = vpop.f32.mrf.mxu1  ;;  %v7663_v31 = vor.u32 %v8500_v30, %v7660_v26  ;;  %v8498_v9 = vld [vmem:[#allocation16 + $0xd4] sm:$0xf]  ;;  %v7775_v16 = vor.u32 %v8528_v24, %v7772_v8  ;;  %v8556_v24 = vld [vmem:[#allocation20 + $0x20] sm:$0xff]  ;;  %v4590_v8 = vld [vmem:[#allocation17] sm:$0x3] }
 0x2e7   :  { %4950 = vmatmul.bf16.vlgmr.msrb.gmra.mxu2 %v9290_v39  ;;  %4981 = vmatpush.bf16.msra.mxu1 %v7671_v13  ;;  %v7652_v43 = vld [vmem:[#allocation16 + $0xd8] sm:$0xf0]  ;;  %v8526_v26 = vld [vmem:[#allocation16 + $0x1b4] sm:$0xf] }
 0x2e8   :  { %5312 = vmatpush.bf16.msrb.mxu2 %v8543_v40  ;;  %v7754_v40 = vld [vmem:[#allocation16 + $0x1a0] sm:$0xf]  ;;  %4959 = vmatpush.bf16.msrb.mxu3 %v7763_v2  ;;  %v7655_v58 = vor.u32 %v8498_v9, %v7652_v43  ;;  %v7612_v2 = vld [vmem:[#allocation16 + $0x88] sm:$0xf0]  ;;  %v8522_v9 = vld [vmem:[#allocation16 + $0x194] sm:$0xf] }
 0x2e9   :  { %v7755_v32 = vor.u32 %v8525_v20, %v7754_v40  ;;  %4973 = vmatpush.bf16.msra.mxu0 %v7567_v1  ;;  %v7764_v40 = vld [vmem:[#allocation16 + $0x1b8] sm:$0xf0] }
 0x2ea   :  { %v7767_v1 = vor.u32 %v8526_v26, %v7764_v40  ;;  %v8553_v26 = vld [vmem:[#allocation20 + $0x8] sm:$0xff] }
 0x2eb   :  { %4982 = vmatpush.bf16.msra.mxu1 %v7663_v31  ;;  %v8524_v31 = vld [vmem:[#allocation16 + $0x1a4] sm:$0xf]  ;;  %v8565_v40 = vld [vmem:[#allocation20 + $0x68] sm:$0xff] }
 0x2ec   :  { %5313 = vmatpush.bf16.msrb.mxu2 %v8542_v46  ;;  %4960 = vmatpush.bf16.msrb.mxu3 %v7755_v32  ;;  %v7747_v46 = vor.u32 %v8523_v27, %v7746_v45  ;;  %v7756_v32 = vld [vmem:[#allocation16 + $0x1a8] sm:$0xf0] }
 0x2ed   :  { %4974 = vmatpush.bf16.msra.mxu0 %v7559_v29  ;;  %v7759_v36 = vor.u32 %v8524_v31, %v7756_v32  ;;  %v8563_v32 = vld [vmem:[#allocation20 + $0x58] sm:$0xff] }
 0x2ef   :  { %4983 = vmatpush.bf16.msra.mxu1 %v7655_v58 }
 0x2f0   :  { %5314 = vmatpush.bf16.msrb.mxu2 %v8541_v23  ;;  %4961 = vmatpush.bf16.msrb.mxu3 %v7747_v46  ;;  %v7738_v23 = vld [vmem:[#allocation16 + $0x180] sm:$0xf] }
 0x2f1   :  { %4975 = vmatpush.bf16.msra.mxu0 %v7551_v28  ;;  %v8551_v28 = vld [vmem:[#allocation19 + $0x78] sm:$0xff] }
 0x2f2   :  { %v3942_v61 = vpop.f32.mrf.mxu3 }
 0x2f3   :  { %v3943_v44 = vadd.f32 %v3942_v61, %v9279_v18  ;;  %v8521_v18 = vld [vmem:[#allocation16 + $0x184] sm:$0xf0]  ;;  %4984 = vmatpush.bf16.msra.mxu1 %v7647_v49  ;;  %v7748_v61 = vld [vmem:[#allocation16 + $0x198] sm:$0xf0] }
 0x2f4   :  { %5315 = vmatpush.bf16.msrb.mxu2 %v8540_v7  ;;  %v7739_v55 = vor.u32 %v8521_v18, %v7738_v23  ;;  %v8532_v7 = vld [vmem:[#allocation16 + $0x1e4] sm:$0xf]  ;;  %4976 = vmatmul.bf16.vlgmr.msra.gmra.mxu0 %v9288_v15  ;;  %v8550_v18 = vld [vmem:[#allocation19 + $0x70] sm:$0xff] }
 0x2f5   :  { %vm3998_vm6 = vcmp.gt.f32.partialorder %v3943_v44, 0.0  ;;  %v4000_v34 = vmul.f32 0.01, %v3943_v44  ;;  %v7791_v21 = vor.u32 %v8532_v7, %v7788_v62  ;;  %v8488_v15 = vld [vmem:[#allocation16 + $0x84] sm:$0xf]  ;;  %5190 = vmatpush.bf16.msrb.mxu0 %v8559_v0 }
 0x2f6   :  { %4962 = vmatpush.bf16.msrb.mxu3 %v7739_v55  ;;  %v7615_v30 = vor.u32 %v8488_v15, %v7612_v2  ;;  %v8548_v55 = vld [vmem:[#allocation19 + $0x60] sm:$0xff]  ;;  %v8566_v15 = vld [vmem:[#allocation20 + $0x70] sm:$0xff] }
 0x2f7   :  { %5002 = vmatmul.bf16.vlgmr.msra.gmra.mxu2 %v9290_v39  ;;  %v4443_v39 = vpop.f32.mrf.mxu2  ;;  %v4002_v54 = vsel %vm3998_vm6, %v3943_v44, %v4000_v34  ;;  %4985 = vmatpush.bf16.msra.mxu1 %v7639_v60  ;;  %v7740_v44 = vld [vmem:[#allocation16 + $0x188] sm:$0xf0]  ;;  %v8554_v2 = vld [vmem:[#allocation20 + $0x10] sm:$0xff] }
 0x2f8   :  { %5316 = vmatpush.bf16.msrb.mxu2 %v8539_v63  ;;  %v5026_v51 = vpack.c.bf16 %v4002_v54, %v4002_v54  ;;  %v7628_v63 = vld [vmem:[#allocation16 + $0xa8] sm:$0xf0]  ;;  %v8520_v39 = vld [vmem:[#allocation16 + $0x184] sm:$0xf] }
 0x2f9   :  { %v7631_v5 = vor.u32 %v8492_v52, %v7628_v63  ;;  %v7743_v45 = vor.u32 %v8520_v39, %v7740_v44  ;;  %v8549_v54 = vld [vmem:[#allocation19 + $0x68] sm:$0xff]  ;;  %5191 = vmatpush.bf16.msrb.mxu0 %v8558_v48 }
 0x2fa   :  { %v3944_v4 = vpop.f32.mrf.mxu3  ;;  %5007 = vmatpush.bf16.msra.mxu3 %v7799_v50 }
 0x2fb   :  { %4986 = vmatpush.bf16.msra.mxu1 %v7631_v5 }
 0x2fc   :  { %5317 = vmatpush.bf16.msrb.mxu2 %v8538_v33  ;;  %v4072_v33 = vperm.slane %v9284_v25, 1 }
 0x2fe   :  { %5008 = vmatpush.bf16.msra.mxu3 %v7791_v21  ;;  %v4442_v37 = vadd.f32 %v9294_v12, %v4072_v33  ;;  %v8564_v33 = vld [vmem:[#allocation20 + $0x60] sm:$0xff] }
 0x2ff   :  { %4987 = vmatpush.bf16.msra.mxu1 %v7623_v11  ;;  %v8567_v11 = vld [vmem:[#allocation20 + $0x78] sm:$0xff] }
 0x300   :  { %5318 = vmatpush.bf16.msrb.mxu2 %v8537_v53  ;;  %v7751_v53 = vor.u32 %v8522_v9, %v7748_v61 }
 0x302   :  { %v3994_v10 = vpop.f32.mrf.mxu3  ;;  %5009 = vmatpush.bf16.msra.mxu3 %v7783_v6  ;;  %v8557_v6 = vld [vmem:[#allocation20 + $0x28] sm:$0xff] }
 0x303   :  { %v9300_v13 = vadd.f32 %v3994_v10, %v9281_v14  ;;  %4988 = vmatpush.bf16.msra.mxu1 %v7615_v30  ;;  %5192 = vmatpush.bf16.msrb.mxu0 %v8557_v6  ;;  %v8555_v10 = vld [vmem:[#allocation20 + $0x18] sm:$0xff] }
 0x304   :  { %5319 = vmatpush.bf16.msrb.mxu2 %v8536_v42  ;;  %v4074_v42 = vperm.slane %v9284_v25, 3  ;;  %v8546_v25 = vld [vmem:[#allocation19 + $0x50] sm:$0xff] }
 0x305   :  { %v4493_v17 = vpop.f32.mrf.mxu2  ;;  %v4001_v50 = vmul.f32 0.01, %v9300_v13  ;;  %vm3999_vm9 = vcmp.gt.f32.partialorder %v9300_v13, 0.0 }
 0x306   :  { %5010 = vmatpush.bf16.msra.mxu3 %v7775_v16  ;;  %v4494_v12 = vadd.f32 %v4493_v17, %v4074_v42 }
 0x307   :  { %5320 = vmatmul.bf16.vlgmr.msrb.gmra.mxu2 %v5026_v51  ;;  %v4003_v19 = vsel %vm3999_vm9, %v9300_v13, %v4001_v50  ;;  %5193 = vmatpush.bf16.msrb.mxu0 %v8556_v24  ;;  %v4592_v13 = vperm.slane %v4590_v8, 0 }
 0x308   :  { %v5027_v4 = vpack.c.bf16 %v4003_v19, %v4003_v19 }
 0x30a   :  { %v3996_v20 = vpop.f32.mrf.mxu3  ;;  %5011 = vmatpush.bf16.msra.mxu3 %v7767_v1 }
 0x30b   :  { %5194 = vmatpush.bf16.msrb.mxu0 %v8555_v10  ;;  %v8552_v20 = vld [vmem:[#allocation20] sm:$0xff] }
 0x30d   :  { %v4495_v14 = vpop.f32.mrf.mxu2 }
 0x30e   :  { %5012 = vmatpush.bf16.msra.mxu3 %v7759_v36  ;;  %v4593_v14 = vperm.slane %v4590_v8, 1  ;;  %v8562_v36 = vld [vmem:[#allocation20 + $0x50] sm:$0xff] }
 0x30f   :  { %5195 = vmatpush.bf16.msrb.mxu0 %v8554_v2 }
 0x312   :  { %v4454_v29 = vpop.f32.mrf.mxu3  ;;  %5013 = vmatpush.bf16.msra.mxu3 %v7751_v53  ;;  %v8561_v53 = vld [vmem:[#allocation20 + $0x48] sm:$0xff] }
 0x313   :  { %v4455_v43 = vadd.f32 %v4454_v29, %v4442_v37  ;;  %5196 = vmatpush.bf16.msrb.mxu0 %v8553_v26 }
 0x315   :  { %vm4511_vm7 = vcmp.gt.f32.partialorder %v4455_v43, 0.0  ;;  %v4515_v58 = vmul.f32 0.01, %v4455_v43 }
 0x316   :  { %5014 = vmatpush.bf16.msra.mxu3 %v7743_v45 }
 0x317   :  { %v4519_v27 = vsel %vm4511_vm7, %v4455_v43, %v4515_v58  ;;  %5197 = vmatpush.bf16.msrb.mxu0 %v8552_v20  ;;  %v8560_v43 = vld [vmem:[#allocation20 + $0x40] sm:$0xff] }
 0x318   :  { %v4523_v46 = vpack.c.bf16 %v4519_v27, %v4519_v27 }
 0x31a   :  { %4937 = vmatmul.bf16.vlgmr.msrb.gmra.mxu1 %v4523_v46  ;;  %v4456_v34 = vpop.f32.mrf.mxu3 }
 0x31b   :  { %5203 = vmatpush.bf16.msrb.mxu1 %v8567_v11 }
 0x31f   :  { %5204 = vmatpush.bf16.msrb.mxu1 %v8566_v15 }
 0x323   :  { %5205 = vmatpush.bf16.msrb.mxu1 %v8565_v40 }
 0x327   :  { %5206 = vmatpush.bf16.msrb.mxu1 %v8564_v33 }
 0x32a   :  { %4989 = vmatmul.bf16.vlgmr.msra.gmra.mxu1 %v4523_v46 }
 0x32b   :  { %5207 = vmatpush.bf16.msrb.mxu1 %v8563_v32 }
 0x32f   :  { %5208 = vmatpush.bf16.msrb.mxu1 %v8562_v36 }
 0x332   :  { %v4506_v38 = vpop.f32.mrf.mxu3 }
 0x333   :  { %v4507_v22 = vadd.f32 %v4506_v38, %v4494_v12  ;;  %5209 = vmatpush.bf16.msrb.mxu1 %v8561_v53 }
 0x335   :  { %vm4513_vm8 = vcmp.gt.f32.partialorder %v4507_v22, 0.0  ;;  %v4517_v41 = vmul.f32 0.01, %v4507_v22 }
 0x337   :  { %v4521_v35 = vsel %vm4513_vm8, %v4507_v22, %v4517_v41  ;;  %5210 = vmatpush.bf16.msrb.mxu1 %v8560_v43 }
 0x338   :  { %v4525_v49 = vpack.c.bf16 %v4521_v35, %v4521_v35 }
 0x33a   :  { %v4508_v23 = vpop.f32.mrf.mxu3  ;;  %4963 = vmatmul.bf16.vlgmr.msrb.gmra.mxu3 %v4525_v49 }
 0x33b   :  { %5325 = vmatpush.bf16.msrb.mxu3 %v8551_v28 }
 0x33f   :  { %5326 = vmatpush.bf16.msrb.mxu3 %v8550_v18 }
 0x343   :  { %5327 = vmatpush.bf16.msrb.mxu3 %v8549_v54 }
 0x347   :  { %5328 = vmatpush.bf16.msrb.mxu3 %v8548_v55 }
 0x34a   :  { %5015 = vmatmul.bf16.vlgmr.msra.gmra.mxu3 %v4525_v49 }
 0x34b   :  { %5329 = vmatpush.bf16.msrb.mxu3 %v8547_v56 }
 0x34e   :  { %v4925_v7 = vpop.f32.mrf.mxu0 }
 0x34f   :  { %5330 = vmatpush.bf16.msrb.mxu3 %v8546_v25  ;;  %v4926_v16 = vadd.f32 %v4925_v7, %v4592_v13  ;;  %v8588_v25 = vld [vmem:[#allocation22] ss:$0 sm:$0xff]  ;;  %v5352_v7 = vstv %s9331_s14 }
 0x353   :  { %5331 = vmatpush.bf16.msrb.mxu3 %v8545_v57 }
 0x356   :  { %v4927_v51 = vpop.f32.mrf.mxu0 }
 0x357   :  { %5332 = vmatpush.bf16.msrb.mxu3 %v8544_v47  ;;  %v8589_v47 = vld [vmem:[#allocation23] ss:$0 sm:$0xff] }
 0x35a   :  { %5333 = vmatmul.bf16.vlgmr.msrb.gmra.mxu3 %v5027_v4 }
 0x36a   :  { %v4951_v60 = vpop.f32.mrf.mxu2 }
 0x371   :  { %v4977_v21 = vpop.f32.mrf.mxu0 }
 0x372   :  { %v4953_v62 = vpop.f32.mrf.mxu2  ;;  %v4978_v37 = vadd.f32 %v4977_v21, %v4593_v14 }
 0x379   :  { %v4979_v5 = vpop.f32.mrf.mxu0 }
 0x37a   :  { %v5003_v52 = vpop.f32.mrf.mxu2 }
 0x382   :  { %v5005_v63 = vpop.f32.mrf.mxu2 }
 0x38a   :  { %v9308_v3 = vpop.f32.mrf.mxu2 }
 0x392   :  { %v5323_v59 = vpop.f32.mrf.mxu2 }
 0x397   :  { %v4938_v17 = vpop.f32.mrf.mxu1 }
 0x398   :  { %v4939_v30 = vadd.f32 %v4938_v17, %v4926_v16 }
 0x39a   :  { %v4952_v1 = vadd.f32 %v4951_v60, %v4939_v30 }
 0x39f   :  { %v4940_v31 = vpop.f32.mrf.mxu1 }
 0x3a7   :  { %v4990_v9 = vpop.f32.mrf.mxu1 }
 0x3a8   :  { %v4991_v61 = vadd.f32 %v4990_v9, %v4978_v37 }
 0x3aa   :  { %v5004_v29 = vadd.f32 %v5003_v52, %v4991_v61 }
 0x3af   :  { %v4992_v39 = vpop.f32.mrf.mxu1 }
 0x3bd   :  { %v4964_v44 = vpop.f32.mrf.mxu3 }
 0x3be   :  { %v4965_v58 = vadd.f32 %v4964_v44, %v4952_v1 }
 0x3c0   :  { %vm5020_vm10 = vcmp.gt.f32.partialorder %v4965_v58, 0.0  ;;  %v5022_v45 = vmul.f32 0.01, %v4965_v58 }
 0x3c2   :  { %v5024_v27 = vsel %vm5020_vm10, %v4965_v58, %v5022_v45 }
 0x3c3   :  { %v5060_v46 = vpack.c.bf16 %v5024_v27, %v5024_v27 }
 0x3c5   :  { %v4966_v34 = vpop.f32.mrf.mxu3  ;;  %5198 = vmatmul.bf16.vlgmr.msrb.gmra.mxu0 %v5060_v46 }
 0x3cd   :  { %v5016_v42 = vpop.f32.mrf.mxu3 }
 0x3ce   :  { %v5017_v12 = vadd.f32 %v5016_v42, %v5004_v29 }
 0x3d0   :  { %vm5021_vm11 = vcmp.gt.f32.partialorder %v5017_v12, 0.0  ;;  %v5023_v38 = vmul.f32 0.01, %v5017_v12 }
 0x3d2   :  { %v5025_v22 = vsel %vm5021_vm11, %v5017_v12, %v5023_v38 }
 0x3d3   :  { %v5061_v41 = vpack.c.bf16 %v5025_v22, %v5025_v22 }
 0x3d5   :  { %v5018_v35 = vpop.f32.mrf.mxu3  ;;  %5211 = vmatmul.bf16.vlgmr.msrb.gmra.mxu1 %v5061_v41 }
 0x3dd   :  { %v5334_v28 = vpop.f32.mrf.mxu3 }
 0x3e5   :  { %v5336_v49 = vpop.f32.mrf.mxu3 }
 0x442   :  { %v5199_v23 = vpop.f32.mrf.mxu0 }
 0x44a   :  { %v5201_v18 = vpop.f32.mrf.mxu0 }
 0x452   :  { %v5212_v54 = vpop.f32.mrf.mxu1 }
 0x453   :  { %v5213_v55 = vadd.f32 %v5212_v54, %v5199_v23 }
 0x455   :  { %v5322_v56 = vadd.f32 %v9308_v3, %v5213_v55 }
 0x457   :  { %v5335_v57 = vadd.f32 %v5334_v28, %v5322_v56 }
 0x459   :  { %v5342_v50 = vadd.f32 %v8588_v25, %v5335_v57 }
 0x45a   :  { %v5214_v19 = vpop.f32.mrf.mxu1 }
 0x45b   :  { %v5343_v4 = vmax.f32 %v5342_v50, 0.0 }
 0x45d   :  { %v5348_v60 = vmul.f32 %v8589_v47, %v5343_v4 }
 0x45f   :  { %5349 = vadd.xlane.f32.xlu0 %v5348_v60 }
 0x4d2   :  { %v5350_v62 = vpop.xlane.xlu0 %5349 }
 0x4d3   :  { %v5353_v51 = vadd.f32 %v5352_v7, %v5350_v62 }
 0x4d5   :  { %5355 = vst.msk [vmem:[%s9332_s15] sm:$0xff] %vm5354_vm12, %v5353_v51 }
 0x4d6   :  { %5360 = vsyncpa [#allocation4], 1 }
 0x4d7   :  { %5361 = vsyncpa [#allocation6], 1 }
 0x4d8   :  { %5362 = vsyncpa [#allocation9], 1 }
 0x4d9   :  { %5363 = vsyncpa [#allocation12], 1 }
 0x4da   :  { %5364 = vsyncpa [#allocation15], 1 }
 0x4db   :  { %5365 = vsyncpa [#allocation18], 1 }
 0x4dc   :  { %5366 = vsyncpa [#allocation21], 1 }
 0x4dd   :  { %5367 = vsyncpa [#allocation24], 1 }

</bundles_post_ra>
